<compile_context>
chip_gen: v6e
topology: v6e:2x2x1
jax: 0.10.0
libtpu: 0.0.40
codegen_flags: <defaults>
</compile_context>

<pallas_src>
import jax
import jax.numpy as jnp
from jax.experimental import pallas as pl
from jax.experimental.pallas import tpu as pltpu


def _silu(x):
    # x * sigmoid(x) == x / (1 + exp(-x)); exp and the approximate reciprocal
    # both land in the EUP slot, keeping the VALU free during the epilogues.
    return x * pl.reciprocal(1.0 + jnp.exp(-x), approx=True)


def _sppf_kernel(x_ref, w1_ref, s1_ref, b1_ref, w2_ref, s2_ref, b2_ref, o_ref,
                 pw_ref, ph_ref):
    # x_ref : (1, H, W, Cin) f32        o_ref : (1, H, W, Cout) f32
    # w1_ref: (Cin, Ch)       bf16      w2_ref: (4, Ch, Cout)   bf16
    # s*/b* : (1, C)          f32 folded-BN scale / bias
    # pw_ref: (H, W+4, Ch) f32 VMEM scratch (width-padded pool input)
    # ph_ref: (H+4, W, Ch) f32 VMEM scratch (height-padded pool input)
    _, H, W, Cin = x_ref.shape
    Ch = w1_ref.shape[1]
    Cout = w2_ref.shape[2]

    # Pool inputs are SiLU outputs (bounded below by ~-0.28), so -1e30 behaves
    # exactly like -inf padding for MaxPool2d(padding=2).
    NEG = jnp.float32(-1e30)

    # ---- initialize the 2-wide NEG borders of the reusable pooling scratches ----
    pw_ref[:, 0:2, :] = jnp.full((H, 2, Ch), NEG, jnp.float32)
    pw_ref[:, W + 2:W + 4, :] = jnp.full((H, 2, Ch), NEG, jnp.float32)
    ph_ref[0:2, :, :] = jnp.full((2, W, Ch), NEG, jnp.float32)
    ph_ref[H + 2:H + 4, :, :] = jnp.full((2, W, Ch), NEG, jnp.float32)

    # ---- cv1: 1x1 conv == channel matmul (bf16 -> f32 MXU) + folded BN + SiLU ----
    xb = x_ref[0].reshape(H * W, Cin).astype(jnp.bfloat16)
    h = jnp.dot(xb, w1_ref[...], preferred_element_type=jnp.float32)   # (H*W, Ch)
    h = _silu(h * s1_ref[...] + b1_ref[...])
    x0 = h.reshape(H, W, Ch)

    # ---- separable 5x5 / stride-1 / pad-2 max pool: 1x5 along W, then 5x1 along H ----
    def pool5(a):
        pw_ref[:, 2:W + 2, :] = a
        m = pw_ref[:, 0:W, :]
        for d in range(1, 5):
            m = jnp.maximum(m, pw_ref[:, d:d + W, :])
        ph_ref[2:H + 2, :, :] = m
        out = ph_ref[0:H, :, :]
        for d in range(1, 5):
            out = jnp.maximum(out, ph_ref[d:d + H, :, :])
        return out

    # ---- cv2: split-weight accumulation (no concat of [x0, y1, y2, y3]) ----
    def acc_term(t, k):
        return jnp.dot(t.reshape(H * W, Ch).astype(jnp.bfloat16), w2_ref[k],
                       preferred_element_type=jnp.float32)             # (H*W, Cout)

    z = acc_term(x0, 0)
    y = pool5(x0)
    z = z + acc_term(y, 1)
    y = pool5(y)
    z = z + acc_term(y, 2)
    y = pool5(y)
    z = z + acc_term(y, 3)

    z = _silu(z * s2_ref[...] + b2_ref[...])
    o_ref[0] = z.reshape(H, W, Cout).astype(o_ref.dtype)


def sppf_pallas(x_nhwc, w1, s1, b1, w2, s2, b2):
    """x_nhwc: (N,H,W,Cin) f32.  w1: (Cin,Ch) bf16.  w2: (4,Ch,Cout) bf16.
    s1/b1: (1,Ch) f32, s2/b2: (1,Cout) f32 (folded BatchNorm)."""
    N, H, W, Cin = x_nhwc.shape
    Ch = w1.shape[1]
    Cout = w2.shape[2]

    # Size the scoped VMEM limit from the actual working set (important on v7x).
    f32, bf16 = 4, 2
    est = (2 * H * W * (Cin + Cout) * f32                    # double-buffered in/out blocks
           + 2 * (Cin * Ch + 4 * Ch * Cout) * bf16           # bf16 weights
           + 4 * (Ch + Cout) * f32                           # scale / bias
           + (H * (W + 4) + (H + 4) * W) * Ch * f32          # pooling scratch
           + 6 * H * W * max(Ch, Cout) * f32)                # live intermediates headroom
    vmem_limit = int(min(max(2 * est, 32 * 1024 * 1024), 64 * 1024 * 1024))

    return pl.pallas_call(
        _sppf_kernel,
        out_shape=jax.ShapeDtypeStruct((N, H, W, Cout), jnp.float32),
        grid_spec=pltpu.PrefetchScalarGridSpec(
            num_scalar_prefetch=0,
            grid=(N,),
            in_specs=[
                pl.BlockSpec((1, H, W, Cin), lambda n: (n, 0, 0, 0)),
                pl.BlockSpec((Cin, Ch), lambda n: (0, 0)),
                pl.BlockSpec((1, Ch), lambda n: (0, 0)),
                pl.BlockSpec((1, Ch), lambda n: (0, 0)),
                pl.BlockSpec((4, Ch, Cout), lambda n: (0, 0, 0)),
                pl.BlockSpec((1, Cout), lambda n: (0, 0)),
                pl.BlockSpec((1, Cout), lambda n: (0, 0)),
            ],
            out_specs=pl.BlockSpec((1, H, W, Cout), lambda n: (n, 0, 0, 0)),
            scratch_shapes=[
                pltpu.VMEM((H, W + 4, Ch), jnp.float32),   # width-padded pool scratch
                pltpu.VMEM((H + 4, W, Ch), jnp.float32),   # height-padded pool scratch
            ],
        ),
        compiler_params=pltpu.CompilerParams(
            dimension_semantics=("parallel",),
            vmem_limit_bytes=vmem_limit),
    )(x_nhwc, w1, s1, b1, w2, s2, b2)


def fold_bn(gamma, beta, mean, var, eps=1e-5):
    scale = gamma / jnp.sqrt(var + eps)
    bias = beta - mean * scale
    return scale, bias


def sppf_reference(x_nhwc, w1, s1, b1, w2_flat, s2, b2):
    """Pure-JAX reference (NHWC), matching the kernel's bf16 matmul precision."""
    def conv_bn_silu(a, w, s, b):
        z = jnp.einsum("nhwc,cd->nhwd",
                       a.astype(jnp.bfloat16), w.astype(jnp.bfloat16),
                       preferred_element_type=jnp.float32)
        z = z * s + b
        return z * jax.nn.sigmoid(z)

    h = conv_bn_silu(x_nhwc, w1, s1, b1)

    def pool(a):
        return jax.lax.reduce_window(
            a, -jnp.inf, jax.lax.max,
            window_dimensions=(1, 5, 5, 1),
            window_strides=(1, 1, 1, 1),
            padding=((0, 0), (2, 2), (2, 2), (0, 0)))

    y1 = pool(h)
    y2 = pool(y1)
    y3 = pool(y2)
    cat = jnp.concatenate([h, y1, y2, y3], axis=-1)
    return conv_bn_silu(cat, w2_flat, s2, b2)


if __name__ == "__main__":
    key = jax.random.PRNGKey(0)
    N, Cin, H, W = 2, 4, 16, 16
    Cout = 8
    Ch = Cin // 2  # hidden_channels

    ks = jax.random.split(key, 11)
    # Input in PyTorch NCHW convention, then moved to NHWC for the kernel.
    x_nchw = jax.random.normal(ks[0], (N, Cin, H, W), jnp.float32)
    x_nhwc = jnp.transpose(x_nchw, (0, 2, 3, 1))

    # cv1 parameters: conv weight (Ch, Cin, 1, 1) -> matmul weight (Cin, Ch)
    w1_conv = jax.random.normal(ks[1], (Ch, Cin, 1, 1), jnp.float32) * 0.3
    w1 = jnp.transpose(w1_conv[:, :, 0, 0], (1, 0))           # (Cin, Ch)
    g1 = 1.0 + 0.1 * jax.random.normal(ks[2], (Ch,), jnp.float32)
    be1 = 0.1 * jax.random.normal(ks[3], (Ch,), jnp.float32)
    m1 = 0.1 * jax.random.normal(ks[4], (Ch,), jnp.float32)
    v1 = 1.0 + 0.1 * jnp.abs(jax.random.normal(ks[5], (Ch,), jnp.float32))
    s1, b1 = fold_bn(g1, be1, m1, v1)

    # cv2 parameters: conv weight (Cout, 4*Ch, 1, 1) -> (4*Ch, Cout)
    w2_conv = jax.random.normal(ks[6], (Cout, 4 * Ch, 1, 1), jnp.float32) * 0.3
    w2_flat = jnp.transpose(w2_conv[:, :, 0, 0], (1, 0))      # (4*Ch, Cout)
    g2 = 1.0 + 0.1 * jax.random.normal(ks[7], (Cout,), jnp.float32)
    be2 = 0.1 * jax.random.normal(ks[8], (Cout,), jnp.float32)
    m2 = 0.1 * jax.random.normal(ks[9], (Cout,), jnp.float32)
    v2 = 1.0 + 0.1 * jnp.abs(jax.random.normal(ks[10], (Cout,), jnp.float32))
    s2, b2 = fold_bn(g2, be2, m2, v2)

    # 2D (1, C) shapes for clean in-kernel broadcasting.
    s1_2d, b1_2d = s1.reshape(1, Ch), b1.reshape(1, Ch)
    s2_2d, b2_2d = s2.reshape(1, Cout), b2.reshape(1, Cout)

    # Kernel-side parameter layout: bf16 weights, w2 split into 4 (Ch, Cout) groups
    # matching concat([x, y1, y2, y3]) order.
    w1_bf16 = w1.astype(jnp.bfloat16)
    w2_split_bf16 = w2_flat.reshape(4, Ch, Cout).astype(jnp.bfloat16)

    out = sppf_pallas(x_nhwc, w1_bf16, s1_2d, b1_2d, w2_split_bf16, s2_2d, b2_2d)
    out = jax.block_until_ready(out)

    ref = sppf_reference(x_nhwc, w1, s1_2d, b1_2d, w2_flat, s2_2d, b2_2d)
    assert out.shape == (N, H, W, Cout)
    max_err = float(jnp.max(jnp.abs(out - ref)))
    assert jnp.allclose(out, ref, atol=3e-2, rtol=3e-2), \
        f"mismatch vs reference (max abs err {max_err})"

    print("KERNEL_OK")
</pallas_src>

<mosaic_0001>
module attributes {stable_mosaic.version = 11 : i64} {
  func.func @_sppf_kernel(%arg0: i32, %arg1: memref<1x16x16x4xf32, #tpu.memory_space<vmem>>, %arg2: memref<4x2xbf16, #tpu.memory_space<vmem>>, %arg3: memref<1x2xf32, #tpu.memory_space<vmem>>, %arg4: memref<1x2xf32, #tpu.memory_space<vmem>>, %arg5: memref<4x2x8xbf16, #tpu.memory_space<vmem>>, %arg6: memref<1x8xf32, #tpu.memory_space<vmem>>, %arg7: memref<1x8xf32, #tpu.memory_space<vmem>>, %arg8: memref<1x16x16x8xf32, #tpu.memory_space<vmem>>, %arg9: memref<16x20x2xf32, #tpu.memory_space<vmem>>, %arg10: memref<20x16x2xf32, #tpu.memory_space<vmem>>) attributes {dimension_semantics = [#tpu.dimension_semantics<parallel>], iteration_bounds = array<i64: 2>, scalar_prefetch = 0 : i64, scratch_operands = 2 : i64, tpu.core_type = #tpu.core_type<tc>, window_params = [{transform_indices = @transform_0, window_bounds = array<i64: 1, 16, 16, 4>}, {pipeline_mode = #tpu.pipeline_mode<synchronous>, transform_indices = @transform_1, window_bounds = array<i64: 4, 2>}, {pipeline_mode = #tpu.pipeline_mode<synchronous>, transform_indices = @transform_2, window_bounds = array<i64: 1, 2>}, {pipeline_mode = #tpu.pipeline_mode<synchronous>, transform_indices = @transform_3, window_bounds = array<i64: 1, 2>}, {pipeline_mode = #tpu.pipeline_mode<synchronous>, transform_indices = @transform_4, window_bounds = array<i64: 4, 2, 8>}, {pipeline_mode = #tpu.pipeline_mode<synchronous>, transform_indices = @transform_5, window_bounds = array<i64: 1, 8>}, {pipeline_mode = #tpu.pipeline_mode<synchronous>, transform_indices = @transform_6, window_bounds = array<i64: 1, 8>}, {transform_indices = @transform_7, window_bounds = array<i64: 1, 16, 16, 8>}]} {
    %cst = arith.constant -1.000000e+30 : f32
    %0 = vector.broadcast %cst : f32 to vector<16x2x2xf32>
    %c0 = arith.constant 0 : index
    %c0_0 = arith.constant 0 : index
    %c0_1 = arith.constant 0 : index
    %1 = vector.load %arg9[%c0, %c0_0, %c0_1] : memref<16x20x2xf32, #tpu.memory_space<vmem>>, vector<16x2x2xf32>
    tpu.vector_store %arg9[%c0, %c0_0, %c0_1], %0 {strides = array<i32>} : memref<16x20x2xf32, #tpu.memory_space<vmem>>, vector<16x2x2xf32>,
    %cst_2 = arith.constant -1.000000e+30 : f32
    %2 = vector.broadcast %cst_2 : f32 to vector<16x2x2xf32>
    %c0_3 = arith.constant 0 : index
    %c18 = arith.constant 18 : index
    %c0_4 = arith.constant 0 : index
    %3 = vector.load %arg9[%c0_3, %c18, %c0_4] : memref<16x20x2xf32, #tpu.memory_space<vmem>>, vector<16x2x2xf32>
    tpu.vector_store %arg9[%c0_3, %c18, %c0_4], %2 {strides = array<i32>} : memref<16x20x2xf32, #tpu.memory_space<vmem>>, vector<16x2x2xf32>,
    %cst_5 = arith.constant -1.000000e+30 : f32
    %4 = vector.broadcast %cst_5 : f32 to vector<2x16x2xf32>
    %c0_6 = arith.constant 0 : index
    %c0_7 = arith.constant 0 : index
    %c0_8 = arith.constant 0 : index
    %5 = vector.load %arg10[%c0_6, %c0_7, %c0_8] : memref<20x16x2xf32, #tpu.memory_space<vmem>>, vector<2x16x2xf32>
    tpu.vector_store %arg10[%c0_6, %c0_7, %c0_8], %4 {strides = array<i32>} : memref<20x16x2xf32, #tpu.memory_space<vmem>>, vector<2x16x2xf32>,
    %cst_9 = arith.constant -1.000000e+30 : f32
    %6 = vector.broadcast %cst_9 : f32 to vector<2x16x2xf32>
    %c18_10 = arith.constant 18 : index
    %c0_11 = arith.constant 0 : index
    %c0_12 = arith.constant 0 : index
    %7 = vector.load %arg10[%c18_10, %c0_11, %c0_12] : memref<20x16x2xf32, #tpu.memory_space<vmem>>, vector<2x16x2xf32>
    tpu.vector_store %arg10[%c18_10, %c0_11, %c0_12], %6 {strides = array<i32>} : memref<20x16x2xf32, #tpu.memory_space<vmem>>, vector<2x16x2xf32>,
    %c0_13 = arith.constant 0 : index
    %c0_14 = arith.constant 0 : index
    %c0_15 = arith.constant 0 : index
    %c0_16 = arith.constant 0 : index
    %8 = vector.load %arg1[%c0_13, %c0_14, %c0_15, %c0_16] : memref<1x16x16x4xf32, #tpu.memory_space<vmem>>, vector<1x16x16x4xf32>
    %9 = vector.shape_cast %8 : vector<1x16x16x4xf32> to vector<16x16x4xf32>
    %10 = vector.shape_cast %9 : vector<16x16x4xf32> to vector<256x4xf32>
    %11 = arith.truncf %10 : vector<256x4xf32> to vector<256x4xbf16>
    %c0_17 = arith.constant 0 : index
    %c0_18 = arith.constant 0 : index
    %12 = vector.load %arg2[%c0_17, %c0_18] : memref<4x2xbf16, #tpu.memory_space<vmem>>, vector<4x2xbf16>
    %cst_19 = arith.constant dense<0.000000e+00> : vector<256x2xf32>
    %13 = tpu.matmul %11, %12, %cst_19 {dimension_numbers = #tpu.dot_dimension_numbers<[1], [0], [0], [1], [0, 0, 1, 1], [], []>} : vector<256x4xbf16>, vector<4x2xbf16>, vector<256x2xf32> -> vector<256x2xf32>
    %c0_20 = arith.constant 0 : index
    %c0_21 = arith.constant 0 : index
    %14 = vector.load %arg3[%c0_20, %c0_21] : memref<1x2xf32, #tpu.memory_space<vmem>>, vector<1x2xf32>
    %15 = vector.broadcast %14 : vector<1x2xf32> to vector<256x2xf32>
    %16 = arith.mulf %13, %15 : vector<256x2xf32>
    %c0_22 = arith.constant 0 : index
    %c0_23 = arith.constant 0 : index
    %17 = vector.load %arg4[%c0_22, %c0_23] : memref<1x2xf32, #tpu.memory_space<vmem>>, vector<1x2xf32>
    %18 = vector.broadcast %17 : vector<1x2xf32> to vector<256x2xf32>
    %19 = arith.addf %16, %18 : vector<256x2xf32>
    %cst_24 = arith.constant 0.000000e+00 : f32
    %20 = vector.broadcast %cst_24 : f32 to vector<256x2xf32>
    %21 = arith.subf %20, %19 : vector<256x2xf32>
    %22 = math.exp %21 : vector<256x2xf32>
    %cst_25 = arith.constant 1.000000e+00 : f32
    %23 = vector.broadcast %cst_25 : f32 to vector<256x2xf32>
    %24 = arith.addf %23, %22 : vector<256x2xf32>
    %25 = tpu.reciprocal %24 {approx = true} : vector<256x2xf32> -> vector<256x2xf32>
    %26 = arith.mulf %19, %25 : vector<256x2xf32>
    %27 = vector.shape_cast %26 : vector<256x2xf32> to vector<16x16x2xf32>
    %28 = vector.shape_cast %27 : vector<16x16x2xf32> to vector<256x2xf32>
    %29 = arith.truncf %28 : vector<256x2xf32> to vector<256x2xbf16>
    %c0_26 = arith.constant 0 : index
    %c0_27 = arith.constant 0 : index
    %c0_28 = arith.constant 0 : index
    %30 = vector.load %arg5[%c0_26, %c0_27, %c0_28] : memref<4x2x8xbf16, #tpu.memory_space<vmem>>, vector<1x2x8xbf16>
    %31 = vector.shape_cast %30 : vector<1x2x8xbf16> to vector<2x8xbf16>
    %cst_29 = arith.constant dense<0.000000e+00> : vector<256x8xf32>
    %32 = tpu.matmul %29, %31, %cst_29 {dimension_numbers = #tpu.dot_dimension_numbers<[1], [0], [0], [1], [0, 0, 1, 1], [], []>} : vector<256x2xbf16>, vector<2x8xbf16>, vector<256x8xf32> -> vector<256x8xf32>
    %c0_30 = arith.constant 0 : index
    %c2 = arith.constant 2 : index
    %c0_31 = arith.constant 0 : index
    %33 = vector.load %arg9[%c0_30, %c2, %c0_31] : memref<16x20x2xf32, #tpu.memory_space<vmem>>, vector<16x16x2xf32>
    tpu.vector_store %arg9[%c0_30, %c2, %c0_31], %27 {strides = array<i32>} : memref<16x20x2xf32, #tpu.memory_space<vmem>>, vector<16x16x2xf32>,
    %c0_32 = arith.constant 0 : index
    %c0_33 = arith.constant 0 : index
    %c0_34 = arith.constant 0 : index
    %34 = vector.load %arg9[%c0_32, %c0_33, %c0_34] : memref<16x20x2xf32, #tpu.memory_space<vmem>>, vector<16x16x2xf32>
    %c0_35 = arith.constant 0 : index
    %c1 = arith.constant 1 : index
    %c0_36 = arith.constant 0 : index
    %35 = vector.load %arg9[%c0_35, %c1, %c0_36] : memref<16x20x2xf32, #tpu.memory_space<vmem>>, vector<16x16x2xf32>
    %36 = arith.maximumf %34, %35 : vector<16x16x2xf32>
    %c0_37 = arith.constant 0 : index
    %c2_38 = arith.constant 2 : index
    %c0_39 = arith.constant 0 : index
    %37 = vector.load %arg9[%c0_37, %c2_38, %c0_39] : memref<16x20x2xf32, #tpu.memory_space<vmem>>, vector<16x16x2xf32>
    %38 = arith.maximumf %36, %37 : vector<16x16x2xf32>
    %c0_40 = arith.constant 0 : index
    %c3 = arith.constant 3 : index
    %c0_41 = arith.constant 0 : index
    %39 = vector.load %arg9[%c0_40, %c3, %c0_41] : memref<16x20x2xf32, #tpu.memory_space<vmem>>, vector<16x16x2xf32>
    %40 = arith.maximumf %38, %39 : vector<16x16x2xf32>
    %c0_42 = arith.constant 0 : index
    %c4 = arith.constant 4 : index
    %c0_43 = arith.constant 0 : index
    %41 = vector.load %arg9[%c0_42, %c4, %c0_43] : memref<16x20x2xf32, #tpu.memory_space<vmem>>, vector<16x16x2xf32>
    %42 = arith.maximumf %40, %41 : vector<16x16x2xf32>
    %c2_44 = arith.constant 2 : index
    %c0_45 = arith.constant 0 : index
    %c0_46 = arith.constant 0 : index
    %43 = vector.load %arg10[%c2_44, %c0_45, %c0_46] : memref<20x16x2xf32, #tpu.memory_space<vmem>>, vector<16x16x2xf32>
    tpu.vector_store %arg10[%c2_44, %c0_45, %c0_46], %42 {strides = array<i32>} : memref<20x16x2xf32, #tpu.memory_space<vmem>>, vector<16x16x2xf32>,
    %c0_47 = arith.constant 0 : index
    %c0_48 = arith.constant 0 : index
    %c0_49 = arith.constant 0 : index
    %44 = vector.load %arg10[%c0_47, %c0_48, %c0_49] : memref<20x16x2xf32, #tpu.memory_space<vmem>>, vector<16x16x2xf32>
    %c1_50 = arith.constant 1 : index
    %c0_51 = arith.constant 0 : index
    %c0_52 = arith.constant 0 : index
    %45 = vector.load %arg10[%c1_50, %c0_51, %c0_52] : memref<20x16x2xf32, #tpu.memory_space<vmem>>, vector<16x16x2xf32>
    %46 = arith.maximumf %44, %45 : vector<16x16x2xf32>
    %c2_53 = arith.constant 2 : index
    %c0_54 = arith.constant 0 : index
    %c0_55 = arith.constant 0 : index
    %47 = vector.load %arg10[%c2_53, %c0_54, %c0_55] : memref<20x16x2xf32, #tpu.memory_space<vmem>>, vector<16x16x2xf32>
    %48 = arith.maximumf %46, %47 : vector<16x16x2xf32>
    %c3_56 = arith.constant 3 : index
    %c0_57 = arith.constant 0 : index
    %c0_58 = arith.constant 0 : index
    %49 = vector.load %arg10[%c3_56, %c0_57, %c0_58] : memref<20x16x2xf32, #tpu.memory_space<vmem>>, vector<16x16x2xf32>
    %50 = arith.maximumf %48, %49 : vector<16x16x2xf32>
    %c4_59 = arith.constant 4 : index
    %c0_60 = arith.constant 0 : index
    %c0_61 = arith.constant 0 : index
    %51 = vector.load %arg10[%c4_59, %c0_60, %c0_61] : memref<20x16x2xf32, #tpu.memory_space<vmem>>, vector<16x16x2xf32>
    %52 = arith.maximumf %50, %51 : vector<16x16x2xf32>
    %53 = vector.shape_cast %52 : vector<16x16x2xf32> to vector<256x2xf32>
    %54 = arith.truncf %53 : vector<256x2xf32> to vector<256x2xbf16>
    %c1_62 = arith.constant 1 : index
    %c0_63 = arith.constant 0 : index
    %c0_64 = arith.constant 0 : index
    %55 = vector.load %arg5[%c1_62, %c0_63, %c0_64] : memref<4x2x8xbf16, #tpu.memory_space<vmem>>, vector<1x2x8xbf16>
    %56 = vector.shape_cast %55 : vector<1x2x8xbf16> to vector<2x8xbf16>
    %cst_65 = arith.constant dense<0.000000e+00> : vector<256x8xf32>
    %57 = tpu.matmul %54, %56, %cst_65 {dimension_numbers = #tpu.dot_dimension_numbers<[1], [0], [0], [1], [0, 0, 1, 1], [], []>} : vector<256x2xbf16>, vector<2x8xbf16>, vector<256x8xf32> -> vector<256x8xf32>
    %58 = arith.addf %32, %57 : vector<256x8xf32>
    %c0_66 = arith.constant 0 : index
    %c2_67 = arith.constant 2 : index
    %c0_68 = arith.constant 0 : index
    %59 = vector.load %arg9[%c0_66, %c2_67, %c0_68] : memref<16x20x2xf32, #tpu.memory_space<vmem>>, vector<16x16x2xf32>
    tpu.vector_store %arg9[%c0_66, %c2_67, %c0_68], %52 {strides = array<i32>} : memref<16x20x2xf32, #tpu.memory_space<vmem>>, vector<16x16x2xf32>,
    %c0_69 = arith.constant 0 : index
    %c0_70 = arith.constant 0 : index
    %c0_71 = arith.constant 0 : index
    %60 = vector.load %arg9[%c0_69, %c0_70, %c0_71] : memref<16x20x2xf32, #tpu.memory_space<vmem>>, vector<16x16x2xf32>
    %c0_72 = arith.constant 0 : index
    %c1_73 = arith.constant 1 : index
    %c0_74 = arith.constant 0 : index
    %61 = vector.load %arg9[%c0_72, %c1_73, %c0_74] : memref<16x20x2xf32, #tpu.memory_space<vmem>>, vector<16x16x2xf32>
    %62 = arith.maximumf %60, %61 : vector<16x16x2xf32>
    %c0_75 = arith.constant 0 : index
    %c2_76 = arith.constant 2 : index
    %c0_77 = arith.constant 0 : index
    %63 = vector.load %arg9[%c0_75, %c2_76, %c0_77] : memref<16x20x2xf32, #tpu.memory_space<vmem>>, vector<16x16x2xf32>
    %64 = arith.maximumf %62, %63 : vector<16x16x2xf32>
    %c0_78 = arith.constant 0 : index
    %c3_79 = arith.constant 3 : index
    %c0_80 = arith.constant 0 : index
    %65 = vector.load %arg9[%c0_78, %c3_79, %c0_80] : memref<16x20x2xf32, #tpu.memory_space<vmem>>, vector<16x16x2xf32>
    %66 = arith.maximumf %64, %65 : vector<16x16x2xf32>
    %c0_81 = arith.constant 0 : index
    %c4_82 = arith.constant 4 : index
    %c0_83 = arith.constant 0 : index
    %67 = vector.load %arg9[%c0_81, %c4_82, %c0_83] : memref<16x20x2xf32, #tpu.memory_space<vmem>>, vector<16x16x2xf32>
    %68 = arith.maximumf %66, %67 : vector<16x16x2xf32>
    %c2_84 = arith.constant 2 : index
    %c0_85 = arith.constant 0 : index
    %c0_86 = arith.constant 0 : index
    %69 = vector.load %arg10[%c2_84, %c0_85, %c0_86] : memref<20x16x2xf32, #tpu.memory_space<vmem>>, vector<16x16x2xf32>
    tpu.vector_store %arg10[%c2_84, %c0_85, %c0_86], %68 {strides = array<i32>} : memref<20x16x2xf32, #tpu.memory_space<vmem>>, vector<16x16x2xf32>,
    %c0_87 = arith.constant 0 : index
    %c0_88 = arith.constant 0 : index
    %c0_89 = arith.constant 0 : index
    %70 = vector.load %arg10[%c0_87, %c0_88, %c0_89] : memref<20x16x2xf32, #tpu.memory_space<vmem>>, vector<16x16x2xf32>
    %c1_90 = arith.constant 1 : index
    %c0_91 = arith.constant 0 : index
    %c0_92 = arith.constant 0 : index
    %71 = vector.load %arg10[%c1_90, %c0_91, %c0_92] : memref<20x16x2xf32, #tpu.memory_space<vmem>>, vector<16x16x2xf32>
    %72 = arith.maximumf %70, %71 : vector<16x16x2xf32>
    %c2_93 = arith.constant 2 : index
    %c0_94 = arith.constant 0 : index
    %c0_95 = arith.constant 0 : index
    %73 = vector.load %arg10[%c2_93, %c0_94, %c0_95] : memref<20x16x2xf32, #tpu.memory_space<vmem>>, vector<16x16x2xf32>
    %74 = arith.maximumf %72, %73 : vector<16x16x2xf32>
    %c3_96 = arith.constant 3 : index
    %c0_97 = arith.constant 0 : index
    %c0_98 = arith.constant 0 : index
    %75 = vector.load %arg10[%c3_96, %c0_97, %c0_98] : memref<20x16x2xf32, #tpu.memory_space<vmem>>, vector<16x16x2xf32>
    %76 = arith.maximumf %74, %75 : vector<16x16x2xf32>
    %c4_99 = arith.constant 4 : index
    %c0_100 = arith.constant 0 : index
    %c0_101 = arith.constant 0 : index
    %77 = vector.load %arg10[%c4_99, %c0_100, %c0_101] : memref<20x16x2xf32, #tpu.memory_space<vmem>>, vector<16x16x2xf32>
    %78 = arith.maximumf %76, %77 : vector<16x16x2xf32>
    %79 = vector.shape_cast %78 : vector<16x16x2xf32> to vector<256x2xf32>
    %80 = arith.truncf %79 : vector<256x2xf32> to vector<256x2xbf16>
    %c2_102 = arith.constant 2 : index
    %c0_103 = arith.constant 0 : index
    %c0_104 = arith.constant 0 : index
    %81 = vector.load %arg5[%c2_102, %c0_103, %c0_104] : memref<4x2x8xbf16, #tpu.memory_space<vmem>>, vector<1x2x8xbf16>
    %82 = vector.shape_cast %81 : vector<1x2x8xbf16> to vector<2x8xbf16>
    %cst_105 = arith.constant dense<0.000000e+00> : vector<256x8xf32>
    %83 = tpu.matmul %80, %82, %cst_105 {dimension_numbers = #tpu.dot_dimension_numbers<[1], [0], [0], [1], [0, 0, 1, 1], [], []>} : vector<256x2xbf16>, vector<2x8xbf16>, vector<256x8xf32> -> vector<256x8xf32>
    %84 = arith.addf %58, %83 : vector<256x8xf32>
    %c0_106 = arith.constant 0 : index
    %c2_107 = arith.constant 2 : index
    %c0_108 = arith.constant 0 : index
    %85 = vector.load %arg9[%c0_106, %c2_107, %c0_108] : memref<16x20x2xf32, #tpu.memory_space<vmem>>, vector<16x16x2xf32>
    tpu.vector_store %arg9[%c0_106, %c2_107, %c0_108], %78 {strides = array<i32>} : memref<16x20x2xf32, #tpu.memory_space<vmem>>, vector<16x16x2xf32>,
    %c0_109 = arith.constant 0 : index
    %c0_110 = arith.constant 0 : index
    %c0_111 = arith.constant 0 : index
    %86 = vector.load %arg9[%c0_109, %c0_110, %c0_111] : memref<16x20x2xf32, #tpu.memory_space<vmem>>, vector<16x16x2xf32>
    %c0_112 = arith.constant 0 : index
    %c1_113 = arith.constant 1 : index
    %c0_114 = arith.constant 0 : index
    %87 = vector.load %arg9[%c0_112, %c1_113, %c0_114] : memref<16x20x2xf32, #tpu.memory_space<vmem>>, vector<16x16x2xf32>
    %88 = arith.maximumf %86, %87 : vector<16x16x2xf32>
    %c0_115 = arith.constant 0 : index
    %c2_116 = arith.constant 2 : index
    %c0_117 = arith.constant 0 : index
    %89 = vector.load %arg9[%c0_115, %c2_116, %c0_117] : memref<16x20x2xf32, #tpu.memory_space<vmem>>, vector<16x16x2xf32>
    %90 = arith.maximumf %88, %89 : vector<16x16x2xf32>
    %c0_118 = arith.constant 0 : index
    %c3_119 = arith.constant 3 : index
    %c0_120 = arith.constant 0 : index
    %91 = vector.load %arg9[%c0_118, %c3_119, %c0_120] : memref<16x20x2xf32, #tpu.memory_space<vmem>>, vector<16x16x2xf32>
    %92 = arith.maximumf %90, %91 : vector<16x16x2xf32>
    %c0_121 = arith.constant 0 : index
    %c4_122 = arith.constant 4 : index
    %c0_123 = arith.constant 0 : index
    %93 = vector.load %arg9[%c0_121, %c4_122, %c0_123] : memref<16x20x2xf32, #tpu.memory_space<vmem>>, vector<16x16x2xf32>
    %94 = arith.maximumf %92, %93 : vector<16x16x2xf32>
    %c2_124 = arith.constant 2 : index
    %c0_125 = arith.constant 0 : index
    %c0_126 = arith.constant 0 : index
    %95 = vector.load %arg10[%c2_124, %c0_125, %c0_126] : memref<20x16x2xf32, #tpu.memory_space<vmem>>, vector<16x16x2xf32>
    tpu.vector_store %arg10[%c2_124, %c0_125, %c0_126], %94 {strides = array<i32>} : memref<20x16x2xf32, #tpu.memory_space<vmem>>, vector<16x16x2xf32>,
    %c0_127 = arith.constant 0 : index
    %c0_128 = arith.constant 0 : index
    %c0_129 = arith.constant 0 : index
    %96 = vector.load %arg10[%c0_127, %c0_128, %c0_129] : memref<20x16x2xf32, #tpu.memory_space<vmem>>, vector<16x16x2xf32>
    %c1_130 = arith.constant 1 : index
    %c0_131 = arith.constant 0 : index
    %c0_132 = arith.constant 0 : index
    %97 = vector.load %arg10[%c1_130, %c0_131, %c0_132] : memref<20x16x2xf32, #tpu.memory_space<vmem>>, vector<16x16x2xf32>
    %98 = arith.maximumf %96, %97 : vector<16x16x2xf32>
    %c2_133 = arith.constant 2 : index
    %c0_134 = arith.constant 0 : index
    %c0_135 = arith.constant 0 : index
    %99 = vector.load %arg10[%c2_133, %c0_134, %c0_135] : memref<20x16x2xf32, #tpu.memory_space<vmem>>, vector<16x16x2xf32>
    %100 = arith.maximumf %98, %99 : vector<16x16x2xf32>
    %c3_136 = arith.constant 3 : index
    %c0_137 = arith.constant 0 : index
    %c0_138 = arith.constant 0 : index
    %101 = vector.load %arg10[%c3_136, %c0_137, %c0_138] : memref<20x16x2xf32, #tpu.memory_space<vmem>>, vector<16x16x2xf32>
    %102 = arith.maximumf %100, %101 : vector<16x16x2xf32>
    %c4_139 = arith.constant 4 : index
    %c0_140 = arith.constant 0 : index
    %c0_141 = arith.constant 0 : index
    %103 = vector.load %arg10[%c4_139, %c0_140, %c0_141] : memref<20x16x2xf32, #tpu.memory_space<vmem>>, vector<16x16x2xf32>
    %104 = arith.maximumf %102, %103 : vector<16x16x2xf32>
    %105 = vector.shape_cast %104 : vector<16x16x2xf32> to vector<256x2xf32>
    %106 = arith.truncf %105 : vector<256x2xf32> to vector<256x2xbf16>
    %c3_142 = arith.constant 3 : index
    %c0_143 = arith.constant 0 : index
    %c0_144 = arith.constant 0 : index
    %107 = vector.load %arg5[%c3_142, %c0_143, %c0_144] : memref<4x2x8xbf16, #tpu.memory_space<vmem>>, vector<1x2x8xbf16>
    %108 = vector.shape_cast %107 : vector<1x2x8xbf16> to vector<2x8xbf16>
    %cst_145 = arith.constant dense<0.000000e+00> : vector<256x8xf32>
    %109 = tpu.matmul %106, %108, %cst_145 {dimension_numbers = #tpu.dot_dimension_numbers<[1], [0], [0], [1], [0, 0, 1, 1], [], []>} : vector<256x2xbf16>, vector<2x8xbf16>, vector<256x8xf32> -> vector<256x8xf32>
    %110 = arith.addf %84, %109 : vector<256x8xf32>
    %c0_146 = arith.constant 0 : index
    %c0_147 = arith.constant 0 : index
    %111 = vector.load %arg6[%c0_146, %c0_147] : memref<1x8xf32, #tpu.memory_space<vmem>>, vector<1x8xf32>
    %112 = vector.broadcast %111 : vector<1x8xf32> to vector<256x8xf32>
    %113 = arith.mulf %110, %112 : vector<256x8xf32>
    %c0_148 = arith.constant 0 : index
    %c0_149 = arith.constant 0 : index
    %114 = vector.load %arg7[%c0_148, %c0_149] : memref<1x8xf32, #tpu.memory_space<vmem>>, vector<1x8xf32>
    %115 = vector.broadcast %114 : vector<1x8xf32> to vector<256x8xf32>
    %116 = arith.addf %113, %115 : vector<256x8xf32>
    %cst_150 = arith.constant 0.000000e+00 : f32
    %117 = vector.broadcast %cst_150 : f32 to vector<256x8xf32>
    %118 = arith.subf %117, %116 : vector<256x8xf32>
    %119 = math.exp %118 : vector<256x8xf32>
    %cst_151 = arith.constant 1.000000e+00 : f32
    %120 = vector.broadcast %cst_151 : f32 to vector<256x8xf32>
    %121 = arith.addf %120, %119 : vector<256x8xf32>
    %122 = tpu.reciprocal %121 {approx = true} : vector<256x8xf32> -> vector<256x8xf32>
    %123 = arith.mulf %116, %122 : vector<256x8xf32>
    %124 = vector.shape_cast %123 : vector<256x8xf32> to vector<16x16x8xf32>
    %c0_152 = arith.constant 0 : index
    %c0_153 = arith.constant 0 : index
    %c0_154 = arith.constant 0 : index
    %c0_155 = arith.constant 0 : index
    %125 = vector.load %arg8[%c0_152, %c0_153, %c0_154, %c0_155] : memref<1x16x16x8xf32, #tpu.memory_space<vmem>>, vector<1x16x16x8xf32>
    %126 = vector.shape_cast %125 : vector<1x16x16x8xf32> to vector<16x16x8xf32>
    %127 = vector.shape_cast %124 : vector<16x16x8xf32> to vector<1x16x16x8xf32>
    tpu.vector_store %arg8[%c0_152, %c0_153, %c0_154, %c0_155], %127 {strides = array<i32>} : memref<1x16x16x8xf32, #tpu.memory_space<vmem>>, vector<1x16x16x8xf32>,
    return
  }
  func.func @transform_0(%arg0: i32) -> (i32, i32, i32, i32) {
    %c0_i32 = arith.constant 0 : i32
    %c0_i32_0 = arith.constant 0 : i32
    %c0_i32_1 = arith.constant 0 : i32
    %c0_i32_2 = arith.constant 0 : i32
    return %arg0, %c0_i32, %c0_i32_0, %c0_i32_1 : i32, i32, i32, i32
  }
  func.func @transform_1(%arg0: i32) -> (i32, i32) {
    %c0_i32 = arith.constant 0 : i32
    %c0_i32_0 = arith.constant 0 : i32
    %c0_i32_1 = arith.constant 0 : i32
    return %c0_i32, %c0_i32_0 : i32, i32
  }
  func.func @transform_2(%arg0: i32) -> (i32, i32) {
    %c0_i32 = arith.constant 0 : i32
    %c0_i32_0 = arith.constant 0 : i32
    %c0_i32_1 = arith.constant 0 : i32
    return %c0_i32, %c0_i32_0 : i32, i32
  }
  func.func @transform_3(%arg0: i32) -> (i32, i32) {
    %c0_i32 = arith.constant 0 : i32
    %c0_i32_0 = arith.constant 0 : i32
    %c0_i32_1 = arith.constant 0 : i32
    return %c0_i32, %c0_i32_0 : i32, i32
  }
  func.func @transform_4(%arg0: i32) -> (i32, i32, i32) {
    %c0_i32 = arith.constant 0 : i32
    %c0_i32_0 = arith.constant 0 : i32
    %c0_i32_1 = arith.constant 0 : i32
    %c0_i32_2 = arith.constant 0 : i32
    return %c0_i32, %c0_i32_0, %c0_i32_1 : i32, i32, i32
  }
  func.func @transform_5(%arg0: i32) -> (i32, i32) {
    %c0_i32 = arith.constant 0 : i32
    %c0_i32_0 = arith.constant 0 : i32
    %c0_i32_1 = arith.constant 0 : i32
    return %c0_i32, %c0_i32_0 : i32, i32
  }
  func.func @transform_6(%arg0: i32) -> (i32, i32) {
    %c0_i32 = arith.constant 0 : i32
    %c0_i32_0 = arith.constant 0 : i32
    %c0_i32_1 = arith.constant 0 : i32
    return %c0_i32, %c0_i32_0 : i32, i32
  }
  func.func @transform_7(%arg0: i32) -> (i32, i32, i32, i32) {
    %c0_i32 = arith.constant 0 : i32
    %c0_i32_0 = arith.constant 0 : i32
    %c0_i32_1 = arith.constant 0 : i32
    %c0_i32_2 = arith.constant 0 : i32
    return %arg0, %c0_i32, %c0_i32_0, %c0_i32_1 : i32, i32, i32, i32
  }
}

</mosaic_0001>

<bundles_post_ra>
// kernel: tpu_custom_call.1
= control target key start
LH: loop header
LB: loop body
LE: loop exit
PB: predicated region body
PF: predicated region fallthrough
CT: control target
= control target key end

     0   :  { %s4802_s24 = smov 0   ;;  %s6924_s0 = inlined_call_operand.vmem [shape: f32[2,16,16,4], index: 0, kind: input, shape index: {}]   ;;  %s6925_s1 = inlined_call_operand.vmem [shape: bf16[4,2], index: 1, kind: input, shape index: {}]   ;;  %s6926_s2 = inlined_call_operand.vmem [shape: f32[1,2], index: 2, kind: input, shape index: {}]   ;;  %s6927_s3 = inlined_call_operand.vmem [shape: f32[1,2], index: 3, kind: input, shape index: {}]   ;;  %s6928_s4 = inlined_call_operand.vmem [shape: bf16[4,2,8], index: 4, kind: input, shape index: {}]   ;;  %s6929_s5 = inlined_call_operand.vmem [shape: f32[1,8], index: 5, kind: input, shape index: {}]   ;;  %s6930_s6 = inlined_call_operand.vmem [shape: f32[1,8], index: 6, kind: input, shape index: {}]   ;;  %s6931_s7 = inlined_call_operand.vmem [shape: f32[2,16,16,8], index: 7, kind: output, shape index: {}]  }
   0x1 LB: > { %s4122_s25 = sadd.s32 4294967295, %s4759_s24   ;;  %p4126_p0 = scmp.ge.s32.totalorder %s4759_s24, 1  ;;  %s4759_s24 = sphi %s4802_s24, %s17_s24  }
   0x2   : > { %p237_p1 = scmp.lt.s32.totalorder %s4759_s24, 3 }
   0x4   : > { %p238_p2 = pnand %p4126_p0, %p237_p1 }
   0x5   : > { %p269_p3 = scmp.lt.s32.totalorder (!%p238_p2), %s4122_s25, 1 }
   0x6   : > { %241 = sbr.rel (%p238_p2) target bundleno = 808 (0x328), region = 48 }
   0xb   : > { %v371_v0 = vld [vmem:[%s6925_s1] sm:$0x3]  ;;  %vm421_vm0 = vcmask 1041408   ;;  %vm280_vm1 = vcmask 9216   ;;  %vm313_vm2 = vcmask 15360   ;;  %s6947_s25 = smov (!%p269_p3, %s4122_s25), 1 }
   0xc   : > { %4479 = vmatprep.subr.msk.bf16.mxu0 %vm421_vm0, %v371_v0  ;;  %4480 = vmatprep.subr.msk.bf16.mxu1 %vm421_vm0, %v371_v0  ;;  %v423_v1 = vsel %vm421_vm0, %v371_v0, 0  ;;  %v4761_v2 = vmov -1e+30   ;;  %s4220_s28 = sshll.u32 %s6947_s25, 8  ;;  %vm372_vm3 = vcmask 31744   ;;  %vm1583_vm4 = vcmask 1040384  }
   0xd   : > { %4308 = vmatpush3.bf16.msra.mxu0 %v423_v1  ;;  %4478 = vmatpush3.bf16.msra.mxu1 %v423_v1  ;;  %282 = vst.msk [vmem:[#allocation2 + $0x18] sm:$0x3] %vm280_vm1, %v4761_v2  ;;  %281 = vst.msk [vmem:[#allocation2] sm:$0x3] %vm280_vm1, %v4761_v2  ;;  %s4861_s8 = scalar_lea.vmem %s6924_s0, %s4220_s28  ;;  %v872_v51 = vld [vmem:[%s6928_s4] sm:$0x1]  ;;  %s6637_s9 = scalar_lea.vmem %s6931_s7, %s4220_s28 }
   0xe   : > { %283 = vst.msk [vmem:[#allocation2 + $0x30] sm:$0x3] %vm280_vm1, %v4761_v2  ;;  %284 = vst.msk [vmem:[#allocation2 + $0x48] sm:$0x3] %vm280_vm1, %v4761_v2  ;;  %v323_v3 = vld [vmem:[%s4861_s8] sm:$0xff]  ;;  %v324_v4 = vld [vmem:[%s4861_s8 + $0x8] sm:$0xff]  ;;  %4482 = vmatprep.subr.msk.bf16.mxu0 %vm1583_vm4, %v872_v51 }
   0xf   : > { %285 = vst.msk [vmem:[#allocation2 + $0x60] sm:$0x3] %vm280_vm1, %v4761_v2  ;;  %286 = vst.msk [vmem:[#allocation2 + $0x78] sm:$0x3] %vm280_vm1, %v4761_v2  ;;  %v339_v5 = vld [vmem:[%s4861_s8 + $0x80] sm:$0xff]  ;;  %v355_v6 = vpack.c.bf16 %v324_v4, %v323_v3  ;;  %v340_v7 = vld [vmem:[%s4861_s8 + $0x88] sm:$0xff] }
  0x10   : > { %287 = vst.msk [vmem:[#allocation2 + $0x90] sm:$0x3] %vm280_vm1, %v4761_v2  ;;  %288 = vst.msk [vmem:[#allocation2 + $0xa8] sm:$0x3] %vm280_vm1, %v4761_v2  ;;  %v325_v8 = vld [vmem:[%s4861_s8 + $0x10] sm:$0xff]  ;;  %v326_v9 = vld [vmem:[%s4861_s8 + $0x18] sm:$0xff]  ;;  %v363_v10 = vpack.c.bf16 %v340_v7, %v339_v5 }
  0x11   : > { %289 = vst.msk [vmem:[#allocation2 + $0xc0] sm:$0x3] %vm280_vm1, %v4761_v2  ;;  %290 = vst.msk [vmem:[#allocation2 + $0xd8] sm:$0x3] %vm280_vm1, %v4761_v2  ;;  %v356_v11 = vpack.c.bf16 %v326_v9, %v325_v8  ;;  %v341_v12 = vld [vmem:[%s4861_s8 + $0x90] sm:$0xff]  ;;  %v342_v13 = vld [vmem:[%s4861_s8 + $0x98] sm:$0xff]  ;;  %4309 = vmatprep.mubr.msk.bf16.mxu0 %vm372_vm3, %v355_v6 }
  0x12   : > { %291 = vst.msk [vmem:[#allocation2 + $0xf0] sm:$0x3] %vm280_vm1, %v4761_v2  ;;  %292 = vst.msk [vmem:[#allocation2 + $0x108] sm:$0x3] %vm280_vm1, %v4761_v2  ;;  %v327_v14 = vld [vmem:[%s4861_s8 + $0x20] sm:$0xff]  ;;  %v364_v15 = vpack.c.bf16 %v342_v13, %v341_v12  ;;  %v328_v16 = vld [vmem:[%s4861_s8 + $0x28] sm:$0xff]  ;;  %4325 = vmatprep.mubr.msk.bf16.mxu1 %vm372_vm3, %v363_v10 }
  0x13   : > { %293 = vst.msk [vmem:[#allocation2 + $0x120] sm:$0x3] %vm280_vm1, %v4761_v2  ;;  %294 = vst.msk [vmem:[#allocation2 + $0x138] sm:$0x3] %vm280_vm1, %v4761_v2  ;;  %v343_v17 = vld [vmem:[%s4861_s8 + $0xa0] sm:$0xff]  ;;  %v344_v18 = vld [vmem:[%s4861_s8 + $0xa8] sm:$0xff]  ;;  %4310 = vmatmul.mubr.msk.bf16.vlgmr.msra.gmra.mxu0 %vm372_vm3, %v356_v11  ;;  %v357_v19 = vpack.c.bf16 %v328_v16, %v327_v14 }
  0x14   : > { %295 = vst.msk [vmem:[#allocation2 + $0x150] sm:$0x3] %vm280_vm1, %v4761_v2  ;;  %296 = vst.msk [vmem:[#allocation2 + $0x168] sm:$0x3] %vm280_vm1, %v4761_v2  ;;  %v365_v20 = vpack.c.bf16 %v344_v18, %v343_v17  ;;  %4326 = vmatmul.mubr.msk.bf16.vlgmr.msra.gmra.mxu1 %vm372_vm3, %v364_v15  ;;  %v329_v21 = vld [vmem:[%s4861_s8 + $0x30] sm:$0xff]  ;;  %v330_v22 = vld [vmem:[%s4861_s8 + $0x38] sm:$0xff] }
  0x15   : > { %297 = vst.msk [vmem:[#allocation2 + $0x12] sm:$0x3] %vm280_vm1, %v4761_v2  ;;  %298 = vst.msk [vmem:[#allocation2 + $0x2a] sm:$0x3] %vm280_vm1, %v4761_v2  ;;  %v345_v23 = vld [vmem:[%s4861_s8 + $0xb0] sm:$0xff]  ;;  %4313 = vmatprep.mubr.msk.bf16.mxu0 %vm372_vm3, %v357_v19  ;;  %v346_v24 = vld [vmem:[%s4861_s8 + $0xb8] sm:$0xff]  ;;  %v358_v29 = vpack.c.bf16 %v330_v22, %v329_v21 }
  0x16   : > { %299 = vst.msk [vmem:[#allocation2 + $0x42] sm:$0x3] %vm280_vm1, %v4761_v2  ;;  %300 = vst.msk [vmem:[#allocation2 + $0x5a] sm:$0x3] %vm280_vm1, %v4761_v2  ;;  %4329 = vmatprep.mubr.msk.bf16.mxu1 %vm372_vm3, %v365_v20  ;;  %v331_v25 = vld [vmem:[%s4861_s8 + $0x40] sm:$0xff]  ;;  %v332_v26 = vld [vmem:[%s4861_s8 + $0x48] sm:$0xff]  ;;  %v366_v30 = vpack.c.bf16 %v346_v24, %v345_v23 }
  0x17   : > { %301 = vst.msk [vmem:[#allocation2 + $0x72] sm:$0x3] %vm280_vm1, %v4761_v2  ;;  %302 = vst.msk [vmem:[#allocation2 + $0x8a] sm:$0x3] %vm280_vm1, %v4761_v2  ;;  %v347_v27 = vld [vmem:[%s4861_s8 + $0xc0] sm:$0xff]  ;;  %v348_v28 = vld [vmem:[%s4861_s8 + $0xc8] sm:$0xff]  ;;  %v359_v31 = vpack.c.bf16 %v332_v26, %v331_v25 }
  0x18   : > { %303 = vst.msk [vmem:[#allocation2 + $0xa2] sm:$0x3] %vm280_vm1, %v4761_v2  ;;  %304 = vst.msk [vmem:[#allocation2 + $0xba] sm:$0x3] %vm280_vm1, %v4761_v2  ;;  %v367_v32 = vpack.c.bf16 %v348_v28, %v347_v27  ;;  %v333_v33 = vld [vmem:[%s4861_s8 + $0x50] sm:$0xff]  ;;  %v334_v34 = vld [vmem:[%s4861_s8 + $0x58] sm:$0xff] }
  0x19   : > { %305 = vst.msk [vmem:[#allocation2 + $0xd2] sm:$0x3] %vm280_vm1, %v4761_v2  ;;  %306 = vst.msk [vmem:[#allocation2 + $0xea] sm:$0x3] %vm280_vm1, %v4761_v2  ;;  %v349_v35 = vld [vmem:[%s4861_s8 + $0xd0] sm:$0xff]  ;;  %v350_v36 = vld [vmem:[%s4861_s8 + $0xd8] sm:$0xff]  ;;  %v360_v41 = vpack.c.bf16 %v334_v34, %v333_v33 }
  0x1a   : > { %307 = vst.msk [vmem:[#allocation2 + $0x102] sm:$0x3] %vm280_vm1, %v4761_v2  ;;  %308 = vst.msk [vmem:[#allocation2 + $0x11a] sm:$0x3] %vm280_vm1, %v4761_v2  ;;  %v335_v37 = vld [vmem:[%s4861_s8 + $0x60] sm:$0xff]  ;;  %v336_v38 = vld [vmem:[%s4861_s8 + $0x68] sm:$0xff]  ;;  %v368_v42 = vpack.c.bf16 %v350_v36, %v349_v35 }
  0x1b   : > { %309 = vst.msk [vmem:[#allocation2 + $0x132] sm:$0x3] %vm280_vm1, %v4761_v2  ;;  %310 = vst.msk [vmem:[#allocation2 + $0x14a] sm:$0x3] %vm280_vm1, %v4761_v2  ;;  %4314 = vmatmul.mubr.msk.bf16.gmra.mxu0 %vm372_vm3, %v358_v29  ;;  %v351_v39 = vld [vmem:[%s4861_s8 + $0xe0] sm:$0xff]  ;;  %v352_v40 = vld [vmem:[%s4861_s8 + $0xe8] sm:$0xff]  ;;  %v361_v43 = vpack.c.bf16 %v336_v38, %v335_v37 }
  0x1c   : > { %311 = vst.msk [vmem:[#allocation2 + $0x162] sm:$0x3] %vm280_vm1, %v4761_v2  ;;  %312 = vst.msk [vmem:[#allocation2 + $0x17a] sm:$0x3] %vm280_vm1, %v4761_v2  ;;  %4330 = vmatmul.mubr.msk.bf16.gmra.mxu1 %vm372_vm3, %v366_v30  ;;  %4317 = vmatprep.mubr.msk.bf16.mxu0 %vm372_vm3, %v359_v31  ;;  %v369_v44 = vpack.c.bf16 %v352_v40, %v351_v39  ;;  %v337_v45 = vld [vmem:[%s4861_s8 + $0x70] sm:$0xff]  ;;  %v338_v46 = vld [vmem:[%s4861_s8 + $0x78] sm:$0xff] }
  0x1d   : > { %314 = vst.msk [vmem:[#allocation3] sm:$0xff] %vm313_vm2, %v4761_v2  ;;  %315 = vst.msk [vmem:[#allocation3 + $0x8] sm:$0xff] %vm313_vm2, %v4761_v2  ;;  %4333 = vmatprep.mubr.msk.bf16.mxu1 %vm372_vm3, %v367_v32  ;;  %v353_v47 = vld [vmem:[%s4861_s8 + $0xf0] sm:$0xff]  ;;  %v354_v48 = vld [vmem:[%s4861_s8 + $0xf8] sm:$0xff]  ;;  %v362_v49 = vpack.c.bf16 %v338_v46, %v337_v45  ;;  %v1797_v52 = vsel %vm1583_vm4, %v872_v51, 0  ;;  %vm4034_vm5 = vcmask 64512  }
  0x1e   : > { %316 = vst.msk [vmem:[#allocation3 + $0x10] sm:$0xff] %vm313_vm2, %v4761_v2  ;;  %317 = vst.msk [vmem:[#allocation3 + $0x18] sm:$0xff] %vm313_vm2, %v4761_v2  ;;  %v370_v50 = vpack.c.bf16 %v354_v48, %v353_v47  ;;  %4376 = vmatpush3.bf16.msra.mxu0 %v1797_v52  ;;  %v4919_v53 = vld [vmem:[%s6926_s2] ss:$0 sm:$0xff]  ;;  %v4149_v56 = vld [vmem:[%s6928_s4 + $0x1] sm:$0x1] }
  0x1f   : > { %319 = vst.msk [vmem:[#allocation3 + $0x120] sm:$0xff] %vm313_vm2, %v4761_v2  ;;  %320 = vst.msk [vmem:[#allocation3 + $0x128] sm:$0xff] %vm313_vm2, %v4761_v2  ;;  %v4924_v55 = vld [vmem:[%s6927_s3] ss:$0 sm:$0xff]  ;;  %4481 = vmatprep.subr.msk.bf16.mxu1 %vm1583_vm4, %v4149_v56  ;;  %v1585_v59 = vsel %vm1583_vm4, %v4149_v56, 0 }
  0x20   : > { %321 = vst.msk [vmem:[#allocation3 + $0x130] sm:$0xff] %vm313_vm2, %v4761_v2  ;;  %322 = vst.msk [vmem:[#allocation3 + $0x138] sm:$0xff] %vm313_vm2, %v4761_v2  ;;  %4342 = vmatpush3.bf16.msra.mxu1 %v1585_v59  ;;  %v4949_v8 = vld [vmem:[%s6928_s4 + $0x2] sm:$0x1]  ;;  %v4199_v9 = vld [vmem:[%s6928_s4 + $0x3] sm:$0x1] }
  0x21   : > { %4483 = vmatprep.subr.msk.bf16.mxu1 %vm1583_vm4, %v4949_v8  ;;  %4484 = vmatprep.subr.msk.bf16.mxu0 %vm1583_vm4, %v4199_v9 }
  0x23   : > { %4318 = vmatmul.mubr.msk.bf16.gmra.mxu0 %vm372_vm3, %v360_v41 }
  0x24   : > { %4334 = vmatmul.mubr.msk.bf16.gmra.mxu1 %vm372_vm3, %v368_v42  ;;  %4321 = vmatprep.mubr.msk.bf16.mxu0 %vm372_vm3, %v361_v43 }
  0x25   : > { %4337 = vmatprep.mubr.msk.bf16.mxu1 %vm372_vm3, %v369_v44 }
  0x2b   : > { %4322 = vmatmul.mubr.msk.bf16.gmra.mxu0 %vm372_vm3, %v362_v49 }
  0x2c   : > { %4338 = vmatmul.mubr.msk.bf16.gmra.mxu1 %vm372_vm3, %v370_v50 }
  0xd3   : > { %v4311_v54 = vpop.f32.mrf.mxu0 }
  0xd4   : > { %v595_v57 = vmul.f32 %v4311_v54, %v4919_v53  ;;  %v4327_v58 = vpop.f32.mrf.mxu1 }
  0xd5   : > { %v611_v60 = vmul.f32 %v4327_v58, %v4919_v53  ;;  %v459_v61 = vpop.f32.mrf.mxu0 }
  0xd6   : > { %v4934_v62 = vadd.f32 %v4924_v55, %v595_v57  ;;  %v593_v63 = vmul.f32 %v4919_v53, %v459_v61  ;;  %v523_v0 = vpop.f32.mrf.mxu1 }
  0xd7   : > { %v4938_v1 = vadd.f32 %v4924_v55, %v611_v60  ;;  %v609_v2 = vmul.f32 %v4919_v53, %v523_v0  ;;  %v4312_v3 = vpop.f32.mrf.mxu0 }
  0xd8   : > { %v666_v4 = vsub.f32 0.0, %v4934_v62  ;;  %v4943_v5 = vadd.f32 %v4924_v55, %v593_v63  ;;  %v596_v6 = vmul.f32 %v4312_v3, %v4919_v53  ;;  %v4328_v7 = vpop.f32.mrf.mxu1 }
  0xd9   : > { %v682_v10 = vsub.f32 0.0, %v4938_v1  ;;  %v4956_v11 = vadd.f32 %v4924_v55, %v609_v2  ;;  %v612_v12 = vmul.f32 %v4328_v7, %v4919_v53  ;;  %v462_v13 = vpop.f32.mrf.mxu0 }
  0xda   : > { %v700_v14 = vmul.f32 1.442695, %v666_v4  ;;  %v664_v15 = vsub.f32 0.0, %v4943_v5  ;;  %v4964_v16 = vadd.f32 %v4924_v55, %v596_v6  ;;  %v594_v17 = vmul.f32 %v4919_v53, %v462_v13  ;;  %v526_v18 = vpop.f32.mrf.mxu1 }
  0xdb   : > { %v732_v19 = vmul.f32 1.442695, %v682_v10  ;;  %v680_v20 = vsub.f32 0.0, %v4956_v11  ;;  %v4969_v21 = vadd.f32 %v4924_v55, %v612_v12  ;;  %v610_v22 = vmul.f32 %v4919_v53, %v526_v18  ;;  %v4315_v23 = vpop.f32.mrf.mxu0 }
  0xdc   : > { %4494 = vpow2.f32 %v700_v14  ;;  %v696_v24 = vmul.f32 1.442695, %v664_v15  ;;  %v667_v25 = vsub.f32 0.0, %v4964_v16  ;;  %v4974_v26 = vadd.f32 %v4924_v55, %v594_v17  ;;  %v4331_v27 = vpop.f32.mrf.mxu1 }
  0xdd   : > { %4496 = vpow2.f32 %v732_v19  ;;  %v728_v28 = vmul.f32 1.442695, %v680_v20  ;;  %v683_v29 = vsub.f32 0.0, %v4969_v21  ;;  %v4978_v30 = vadd.f32 %v4924_v55, %v610_v22  ;;  %v475_v31 = vpop.f32.mrf.mxu0 }
  0xde   : > { %4498 = vpow2.f32 %v696_v24  ;;  %v702_v32 = vmul.f32 1.442695, %v667_v25  ;;  %v665_v33 = vsub.f32 0.0, %v4974_v26  ;;  %v599_v34 = vmul.f32 %v4315_v23, %v4919_v53  ;;  %v539_v35 = vpop.f32.mrf.mxu1 }
  0xdf   : > { %4500 = vpow2.f32 %v728_v28  ;;  %v734_v36 = vmul.f32 1.442695, %v683_v29  ;;  %v681_v37 = vsub.f32 0.0, %v4978_v30  ;;  %v615_v38 = vmul.f32 %v4331_v27, %v4919_v53  ;;  %v4316_v39 = vpop.f32.mrf.mxu0 }
  0xe0   : > { %4502 = vpow2.f32 %v702_v32  ;;  %v698_v40 = vmul.f32 1.442695, %v665_v33  ;;  %v4985_v41 = vadd.f32 %v4924_v55, %v599_v34  ;;  %v597_v42 = vmul.f32 %v4919_v53, %v475_v31  ;;  %v4332_v43 = vpop.f32.mrf.mxu1 }
  0xe1   : > { %4504 = vpow2.f32 %v734_v36  ;;  %v730_v44 = vmul.f32 1.442695, %v681_v37  ;;  %v4989_v45 = vadd.f32 %v4924_v55, %v615_v38  ;;  %v613_v46 = vmul.f32 %v4919_v53, %v539_v35  ;;  %v478_v47 = vpop.f32.mrf.mxu0 }
  0xe2   : > { %4506 = vpow2.f32 %v698_v40  ;;  %v670_v48 = vsub.f32 0.0, %v4985_v41  ;;  %v4994_v49 = vadd.f32 %v4924_v55, %v597_v42  ;;  %v600_v50 = vmul.f32 %v4316_v39, %v4919_v53  ;;  %v542_v51 = vpop.f32.mrf.mxu1 }
  0xe3   : > { %4508 = vpow2.f32 %v730_v44  ;;  %v686_v52 = vsub.f32 0.0, %v4989_v45  ;;  %v4999_v54 = vadd.f32 %v4924_v55, %v613_v46  ;;  %v616_v56 = vmul.f32 %v4332_v43, %v4919_v53  ;;  %v4319_v57 = vpop.f32.mrf.mxu0 }
  0xe4   : > { %v708_v58 = vmul.f32 1.442695, %v670_v48  ;;  %v668_v59 = vsub.f32 0.0, %v4994_v49  ;;  %v5004_v60 = vadd.f32 %v4924_v55, %v600_v50  ;;  %v598_v61 = vmul.f32 %v4919_v53, %v478_v47  ;;  %v4335_v63 = vpop.f32.mrf.mxu1 }
  0xe5   : > { %v740_v0 = vmul.f32 1.442695, %v686_v52  ;;  %v684_v2 = vsub.f32 0.0, %v4999_v54  ;;  %v5009_v3 = vadd.f32 %v4924_v55, %v616_v56  ;;  %v614_v4 = vmul.f32 %v4919_v53, %v542_v51  ;;  %v491_v14 = vpop.f32.mrf.mxu0 }
  0xe6   : > { %4510 = vpow2.f32 %v708_v58  ;;  %v704_v6 = vmul.f32 1.442695, %v668_v59  ;;  %v671_v7 = vsub.f32 0.0, %v5004_v60  ;;  %v5014_v9 = vadd.f32 %v4924_v55, %v598_v61  ;;  %v555_v18 = vpop.f32.mrf.mxu1 }
  0xe7   : > { %4512 = vpow2.f32 %v740_v0  ;;  %v736_v10 = vmul.f32 1.442695, %v684_v2  ;;  %v687_v12 = vsub.f32 0.0, %v5009_v3  ;;  %v5018_v13 = vadd.f32 %v4924_v55, %v614_v4  ;;  %v4320_v32 = vpop.f32.mrf.mxu0 }
  0xe8   : > { %4514 = vpow2.f32 %v704_v6  ;;  %v710_v15 = vmul.f32 1.442695, %v671_v7  ;;  %v603_v17 = vmul.f32 %v4319_v57, %v4919_v53  ;;  %v669_v22 = vsub.f32 0.0, %v5014_v9  ;;  %v4336_v37 = vpop.f32.mrf.mxu1 }
  0xe9   : > { %v4495_v19 = vpop.eup %4494  ;;  %4516 = vpow2.f32 %v736_v10  ;;  %v742_v20 = vmul.f32 1.442695, %v687_v12  ;;  %v619_v23 = vmul.f32 %v4335_v63, %v4919_v53  ;;  %v685_v27 = vsub.f32 0.0, %v5018_v13  ;;  %v494_v56 = vpop.f32.mrf.mxu0 }
  0xea   : > { %v4497_v24 = vpop.eup %4496  ;;  %v762_v25 = vadd.f32 1.0, %v4495_v19  ;;  %4518 = vpow2.f32 %v710_v15  ;;  %v5025_v31 = vadd.f32 %v4924_v55, %v603_v17  ;;  %v601_v36 = vmul.f32 %v4919_v53, %v491_v14  ;;  %v558_v63 = vpop.f32.mrf.mxu1 }
  0xeb   : > { %v4499_v28 = vpop.eup %4498  ;;  %v778_v29 = vadd.f32 1.0, %v4497_v24  ;;  %4520 = vpow2.f32 %v742_v20  ;;  %v5028_v35 = vadd.f32 %v4924_v55, %v619_v23  ;;  %v706_v40 = vmul.f32 1.442695, %v669_v22 }
  0xec   : > { %v4501_v33 = vpop.eup %4500  ;;  %4522 = vrcp.f32 %v762_v25  ;;  %v760_v34 = vadd.f32 1.0, %v4499_v28  ;;  %v617_v42 = vmul.f32 %v4919_v53, %v555_v18  ;;  %v738_v46 = vmul.f32 1.442695, %v685_v27  ;;  %v4323_v18 = vpop.f32.mrf.mxu0 }
  0xed   : > { %v4503_v38 = vpop.eup %4502  ;;  %4524 = vrcp.f32 %v778_v29  ;;  %v776_v39 = vadd.f32 1.0, %v4501_v33  ;;  %v5033_v47 = vadd.f32 %v4924_v55, %v601_v36  ;;  %v674_v51 = vsub.f32 0.0, %v5025_v31  ;;  %v4339_v24 = vpop.f32.mrf.mxu1 }
  0xee   : > { %v4505_v43 = vpop.eup %4504  ;;  %4526 = vrcp.f32 %v760_v34  ;;  %v763_v44 = vadd.f32 1.0, %v4503_v38  ;;  %v5037_v52 = vadd.f32 %v4924_v55, %v617_v42  ;;  %v690_v59 = vsub.f32 0.0, %v5028_v35  ;;  %v507_v42 = vpop.f32.mrf.mxu0 }
  0xef   : > { %v4507_v48 = vpop.eup %4506  ;;  %4528 = vrcp.f32 %v776_v39  ;;  %v779_v50 = vadd.f32 1.0, %v4505_v43  ;;  %v604_v61 = vmul.f32 %v4320_v32, %v4919_v53  ;;  %v672_v2 = vsub.f32 0.0, %v5033_v47 }
  0xf0   : > { %v4509_v57 = vpop.eup %4508  ;;  %4530 = vrcp.f32 %v763_v44  ;;  %v761_v58 = vadd.f32 1.0, %v4507_v48  ;;  %v620_v4 = vmul.f32 %v4336_v37, %v4919_v53  ;;  %v688_v6 = vsub.f32 0.0, %v5037_v52 }
  0xf1   : > { %4532 = vrcp.f32 %v779_v50  ;;  %v777_v0 = vadd.f32 1.0, %v4509_v57  ;;  %v5045_v7 = vadd.f32 %v4924_v55, %v604_v61  ;;  %v602_v10 = vmul.f32 %v4919_v53, %v494_v56  ;;  %v571_v50 = vpop.f32.mrf.mxu1 }
  0xf2   : > { %4534 = vrcp.f32 %v761_v58  ;;  %v716_v14 = vmul.f32 1.442695, %v674_v51  ;;  %v5049_v15 = vadd.f32 %v4924_v55, %v620_v4  ;;  %v618_v17 = vmul.f32 %v4919_v53, %v558_v63 }
  0xf3   : > { %v4511_v12 = vpop.eup %4510  ;;  %4536 = vrcp.f32 %v777_v0  ;;  %v675_v22 = vsub.f32 0.0, %v5045_v7  ;;  %v5054_v23 = vadd.f32 %v4924_v55, %v602_v10  ;;  %v748_v28 = vmul.f32 1.442695, %v690_v59 }
  0xf4   : > { %v4513_v19 = vpop.eup %4512  ;;  %v766_v20 = vadd.f32 1.0, %v4511_v12  ;;  %4538 = vpow2.f32 %v706_v40  ;;  %v5057_v29 = vadd.f32 %v4924_v55, %v618_v17  ;;  %v712_v34 = vmul.f32 1.442695, %v672_v2 }
  0xf5   : > { %v4515_v25 = vpop.eup %4514  ;;  %v782_v27 = vadd.f32 1.0, %v4513_v19  ;;  %4540 = vpow2.f32 %v738_v46  ;;  %v744_v36 = vmul.f32 1.442695, %v688_v6  ;;  %v718_v39 = vmul.f32 1.442695, %v675_v22 }
  0xf6   : > { %v4517_v32 = vpop.eup %4516  ;;  %4542 = vrcp.f32 %v766_v20  ;;  %v764_v33 = vadd.f32 1.0, %v4515_v25  ;;  %v691_v40 = vsub.f32 0.0, %v5049_v15  ;;  %v673_v46 = vsub.f32 0.0, %v5054_v23 }
  0xf7   : > { %v4519_v37 = vpop.eup %4518  ;;  %4544 = vrcp.f32 %v782_v27  ;;  %v780_v38 = vadd.f32 1.0, %v4517_v32  ;;  %v607_v48 = vmul.f32 %v4323_v18, %v4919_v53  ;;  %v689_v57 = vsub.f32 0.0, %v5057_v29 }
  0xf8   : > { %v4521_v43 = vpop.eup %4520  ;;  %4546 = vrcp.f32 %v764_v33  ;;  %v767_v44 = vadd.f32 1.0, %v4519_v37  ;;  %v623_v58 = vmul.f32 %v4339_v24, %v4919_v53  ;;  %v605_v0 = vmul.f32 %v4919_v53, %v507_v42 }
  0xf9   : > { %v4523_v51 = vpop.eup %4522  ;;  %4548 = vrcp.f32 %v780_v38  ;;  %v783_v56 = vadd.f32 1.0, %v4521_v43  ;;  %v5068_v63 = vadd.f32 %v4924_v55, %v607_v48  ;;  %v621_v10 = vmul.f32 %v4919_v53, %v571_v50 }
  0xfa   : > { %v4525_v59 = vpop.eup %4524  ;;  %v5065_v61 = vmul.f32 %v4523_v51, %v4934_v62  ;;  %4550 = vrcp.f32 %v767_v44  ;;  %v5075_v6 = vadd.f32 %v4924_v55, %v623_v58  ;;  %v5083_v18 = vadd.f32 %v4924_v55, %v605_v0 }
  0xfb   : > { %v4527_v2 = vpop.eup %4526  ;;  %v5072_v4 = vmul.f32 %v4525_v59, %v4938_v1  ;;  %4552 = vrcp.f32 %v783_v56  ;;  %v678_v17 = vsub.f32 0.0, %v5068_v63  ;;  %v750_v20 = vmul.f32 1.442695, %v691_v40 }
  0xfc   : > { %v4529_v12 = vpop.eup %4528  ;;  %875 = vst.msk [vmem:[#allocation2 + $0x1a] sm:$0xff] %vm313_vm2, %v5065_v61  ;;  %v824_v62 = vmul.f32 %v4527_v2, %v4943_v5  ;;  %4554 = vpow2.f32 %v716_v14  ;;  %v5091_v22 = vadd.f32 %v4924_v55, %v621_v10  ;;  %v714_v14 = vmul.f32 1.442695, %v673_v46 }
  0xfd   : > { %v4531_v1 = vpop.eup %4530  ;;  %891 = vst.msk [vmem:[#allocation2 + $0xda] sm:$0xff] %vm313_vm2, %v5072_v4  ;;  %v5088_v19 = vmul.f32 %v4529_v12, %v4956_v11  ;;  %4556 = vpow2.f32 %v748_v28  ;;  %v694_v25 = vsub.f32 0.0, %v5075_v6  ;;  %v746_v28 = vmul.f32 1.442695, %v689_v57 }
  0xfe   : > { %v4533_v24 = vpop.eup %4532  ;;  %873 = vst.msk [vmem:[#allocation2 + $0x2] sm:$0xff] %vm313_vm2, %v824_v62  ;;  %v827_v5 = vmul.f32 %v4531_v1, %v4964_v16  ;;  %4558 = vpow2.f32 %v712_v34  ;;  %v724_v16 = vmul.f32 1.442695, %v678_v17  ;;  %v676_v34 = vsub.f32 0.0, %v5083_v18 }
  0xff   : > { %v4535_v27 = vpop.eup %4534  ;;  %889 = vst.msk [vmem:[#allocation2 + $0xc2] sm:$0xff] %vm313_vm2, %v5088_v19  ;;  %v5099_v11 = vmul.f32 %v4533_v24, %v4969_v21  ;;  %4560 = vpow2.f32 %v744_v36  ;;  %v692_v36 = vsub.f32 0.0, %v5091_v22 }
 0x100   : > { %v4537_v32 = vpop.eup %4536  ;;  %876 = vst.msk [vmem:[#allocation2 + $0x22] sm:$0xff] %vm313_vm2, %v827_v5  ;;  %v825_v33 = vmul.f32 %v4535_v27, %v4974_v26  ;;  %4562 = vpow2.f32 %v718_v39  ;;  %v756_v39 = vmul.f32 1.442695, %v694_v25  ;;  %v857_v48 = vpack.c.bf16 %v827_v5, %v5065_v61 }
 0x101   : > { %v4539_v37 = vpop.eup %4538  ;;  %892 = vst.msk [vmem:[#allocation2 + $0xe2] sm:$0xff] %vm313_vm2, %v5099_v11  ;;  %v5109_v21 = vmul.f32 %v4537_v32, %v4978_v30  ;;  %4564 = vpow2.f32 %v750_v20  ;;  %v720_v58 = vmul.f32 1.442695, %v676_v34  ;;  %v752_v12 = vmul.f32 1.442695, %v692_v36  ;;  %v4324_v32 = vpop.f32.mrf.mxu0 }
 0x102   : > { %v4541_v40 = vpop.eup %4540  ;;  %v856_v42 = vpack.c.bf16 %v825_v33, %v824_v62  ;;  %874 = vst.msk [vmem:[#allocation2 + $0xa] sm:$0xff] %vm313_vm2, %v825_v33  ;;  %v765_v26 = vadd.f32 1.0, %v4539_v37  ;;  %4566 = vpow2.f32 %v714_v14 }
 0x103   : > { %v4543_v43 = vpop.eup %4542  ;;  %v907_v44 = vld [vmem:[#allocation2 + $0x18] sm:$0xff]  ;;  %890 = vst.msk [vmem:[#allocation2 + $0xca] sm:$0xff] %vm313_vm2, %v5109_v21  ;;  %v781_v30 = vadd.f32 1.0, %v4541_v40  ;;  %4568 = vpow2.f32 %v746_v28 }
 0x104   : > { %v939_v46 = vld [vmem:[#allocation2 + $0x19] sm:$0xff]  ;;  %v4545_v51 = vpop.eup %4544  ;;  %v5119_v57 = vmul.f32 %v4543_v43, %v4985_v41  ;;  %4570 = vrcp.f32 %v765_v26  ;;  %4377 = vmatprep.mubr.msk.bf16.mxu0 %vm313_vm2, %v856_v42 }
 0x105   : > { %v971_v56 = vmax.f32 %v907_v44, %v939_v46  ;;  %v4547_v59 = vpop.eup %4546  ;;  %v1003_v0 = vld [vmem:[#allocation2 + $0x1a] sm:$0xff]  ;;  %v5123_v10 = vmul.f32 %v4545_v51, %v4989_v45  ;;  %4572 = vrcp.f32 %v781_v30  ;;  %4378 = vmatmul.mubr.msk.bf16.vlgmr.msra.gmra.mxu0 %vm313_vm2, %v857_v48  ;;  %v1001_v25 = vld [vmem:[#allocation2 + $0x2] sm:$0xff] }
 0x106   : > { %v905_v61 = vld [vmem:[#allocation2] sm:$0xff]  ;;  %v4549_v62 = vpop.eup %4548  ;;  %879 = vst.msk [vmem:[#allocation2 + $0x4a] sm:$0xff] %vm313_vm2, %v5119_v57  ;;  %v5129_v41 = vmul.f32 %v4547_v59, %v4994_v49  ;;  %4574 = vpow2.f32 %v724_v16 }
 0x107   : > { %v937_v2 = vld [vmem:[#allocation2 + $0x1] sm:$0xff]  ;;  %v1035_v17 = vmax.f32 %v971_v56, %v1003_v0  ;;  %v4551_v20 = vpop.eup %4550  ;;  %895 = vst.msk [vmem:[#allocation2 + $0x10a] sm:$0xff] %vm313_vm2, %v5123_v10  ;;  %v5134_v45 = vmul.f32 %v4549_v62, %v4999_v54  ;;  %4576 = vpow2.f32 %v756_v39 }
 0x108   : > { %v969_v1 = vmax.f32 %v905_v61, %v937_v2  ;;  %v908_v24 = vld [vmem:[#allocation2 + $0x20] sm:$0xff]  ;;  %v4553_v14 = vpop.eup %4552  ;;  %877 = vst.msk [vmem:[#allocation2 + $0x32] sm:$0xff] %vm313_vm2, %v5129_v41  ;;  %v5139_v49 = vmul.f32 %v4551_v20, %v5004_v60  ;;  %4578 = vpow2.f32 %v720_v58  ;;  %v5153_v58 = vmul.f32 %v4324_v32, %v4919_v53 }
 0x109   : > { %v940_v5 = vld [vmem:[#allocation2 + $0x21] sm:$0xff]  ;;  %v4555_v33 = vpop.eup %4554  ;;  %893 = vst.msk [vmem:[#allocation2 + $0xf2] sm:$0xff] %vm313_vm2, %v5134_v45  ;;  %v5144_v40 = vmul.f32 %v4553_v14, %v5009_v3  ;;  %4580 = vpow2.f32 %v752_v12  ;;  %v938_v2 = vld [vmem:[#allocation2 + $0x9] sm:$0xff] }
 0x10a   : > { %v972_v27 = vmax.f32 %v908_v24, %v940_v5  ;;  %v1067_v28 = vld [vmem:[#allocation2 + $0x1b] sm:$0xff]  ;;  %v1033_v16 = vmax.f32 %v969_v1, %v1001_v25  ;;  %v4557_v42 = vpop.eup %4556  ;;  %880 = vst.msk [vmem:[#allocation2 + $0x52] sm:$0xff] %vm313_vm2, %v5139_v49  ;;  %v770_v43 = vadd.f32 1.0, %v4555_v33  ;;  %v1068_v46 = vld [vmem:[#allocation2 + $0x23] sm:$0xff] }
 0x10b   : > { %v1004_v34 = vld [vmem:[#allocation2 + $0x22] sm:$0xff]  ;;  %v1099_v37 = vmax.f32 %v1035_v17, %v1067_v28  ;;  %v4559_v44 = vpop.eup %4558  ;;  %896 = vst.msk [vmem:[#allocation2 + $0x112] sm:$0xff] %vm313_vm2, %v5144_v40  ;;  %v786_v3 = vadd.f32 1.0, %v4557_v42  ;;  %v1002_v5 = vld [vmem:[#allocation2 + $0xa] sm:$0xff] }
 0x10c   : > { %v924_v36 = vld [vmem:[#allocation2 + $0xe0] sm:$0xff]  ;;  %v1036_v26 = vmax.f32 %v972_v27, %v1004_v34  ;;  %v906_v51 = vld [vmem:[#allocation2 + $0x8] sm:$0xff]  ;;  %v4561_v59 = vpop.eup %4560  ;;  %4582 = vrcp.f32 %v770_v43  ;;  %v768_v62 = vadd.f32 1.0, %v4559_v44  ;;  %v4340_v27 = vpop.f32.mrf.mxu1 }
 0x10d   : > { %v956_v54 = vld [vmem:[#allocation2 + $0xe1] sm:$0xff]  ;;  %v4563_v17 = vpop.eup %4562  ;;  %v970_v24 = vmax.f32 %v906_v51, %v938_v2  ;;  %4584 = vrcp.f32 %v786_v3  ;;  %v784_v25 = vadd.f32 1.0, %v4561_v59  ;;  %v943_v51 = vld [vmem:[#allocation2 + $0x49] sm:$0xff]  ;;  %v624_v59 = vmul.f32 %v4340_v27, %v4919_v53 }
 0x10e   : > { %v1131_v39 = vld [vmem:[#allocation2 + $0x1c] sm:$0xff]  ;;  %v988_v60 = vmax.f32 %v924_v36, %v956_v54  ;;  %v1100_v0 = vmax.f32 %v1036_v26, %v1068_v46  ;;  %v1132_v1 = vld [vmem:[#allocation2 + $0x24] sm:$0xff]  ;;  %v4565_v28 = vpop.eup %4564  ;;  %4586 = vrcp.f32 %v768_v62  ;;  %v771_v54 = vadd.f32 1.0, %v4563_v17 }
 0x10f   : > { %v1163_v48 = vmax.f32 %v1099_v37, %v1131_v39  ;;  %v1020_v30 = vld [vmem:[#allocation2 + $0xe2] sm:$0xff]  ;;  %v4567_v42 = vpop.eup %4566  ;;  %v1034_v39 = vmax.f32 %v970_v24, %v1002_v5  ;;  %4588 = vrcp.f32 %v784_v25  ;;  %v787_v3 = vadd.f32 1.0, %v4565_v28  ;;  %v1082_v17 = vld [vmem:[#allocation2 + $0xcb] sm:$0xff] }
 0x110   : > { %v1052_v61 = vmax.f32 %v988_v60, %v1020_v30  ;;  %v1065_v12 = vld [vmem:[#allocation2 + $0x3] sm:$0xff]  ;;  %v1164_v32 = vmax.f32 %v1100_v0, %v1132_v1  ;;  %v1066_v60 = vld [vmem:[#allocation2 + $0xb] sm:$0xff]  ;;  %v4569_v46 = vpop.eup %4568  ;;  %4590 = vrcp.f32 %v771_v54 }
 0x111   : > { %1196 = vst.msk [vmem:[#allocation3 + $0x30] sm:$0xff] %vm313_vm2, %v1163_v48  ;;  %v1084_v20 = vld [vmem:[#allocation2 + $0xe3] sm:$0xff]  ;;  %v1097_v14 = vmax.f32 %v1033_v16, %v1065_v12  ;;  %v4571_v0 = vpop.eup %4570  ;;  %v1098_v2 = vmax.f32 %v1034_v39, %v1066_v60  ;;  %v1130_v12 = vld [vmem:[#allocation2 + $0xc] sm:$0xff]  ;;  %4592 = vrcp.f32 %v787_v3  ;;  %v785_v27 = vadd.f32 1.0, %v4569_v46 }
 0x112   : > { %v1116_v33 = vmax.f32 %v1052_v61, %v1084_v20  ;;  %v1129_v34 = vld [vmem:[#allocation2 + $0x4] sm:$0xff]  ;;  %1197 = vst.msk [vmem:[#allocation3 + $0x38] sm:$0xff] %vm313_vm2, %v1164_v32  ;;  %v5158_v61 = vld [vmem:[#allocation2 + $0xd8] sm:$0xff]  ;;  %v769_v20 = vadd.f32 1.0, %v4567_v42  ;;  %v4573_v24 = vpop.eup %4572  ;;  %v829_v28 = vmul.f32 %v4571_v0, %v5014_v9  ;;  %v1146_v60 = vld [vmem:[#allocation2 + $0xcc] sm:$0xff] }
 0x113   : > { %v922_v37 = vld [vmem:[#allocation2 + $0xc8] sm:$0xff]  ;;  %v1161_v43 = vmax.f32 %v1097_v14, %v1129_v34  ;;  %v909_v14 = vld [vmem:[#allocation2 + $0x30] sm:$0xff]  ;;  %v4575_v32 = vpop.eup %4574  ;;  %v5165_v34 = vld [vmem:[#allocation2 + $0xc0] sm:$0xff] }
 0x114   : > { %v954_v36 = vld [vmem:[#allocation2 + $0xc9] sm:$0xff]  ;;  %v941_v25 = vld [vmem:[#allocation2 + $0x31] sm:$0xff]  ;;  %v4577_v39 = vpop.eup %4576  ;;  %v858_v46 = vpack.c.bf16 %v829_v28, %v5129_v41  ;;  %878 = vst.msk [vmem:[#allocation2 + $0x3a] sm:$0xff] %vm313_vm2, %v829_v28  ;;  %4594 = vrcp.f32 %v769_v20  ;;  %v774_v20 = vadd.f32 1.0, %v4575_v32 }
 0x115   : > { %v1148_v26 = vld [vmem:[#allocation2 + $0xe4] sm:$0xff]  ;;  %v986_v44 = vmax.f32 %v922_v37, %v954_v36  ;;  %1194 = vst.msk [vmem:[#allocation3 + $0x20] sm:$0xff] %vm313_vm2, %v1161_v43  ;;  %v1162_v36 = vmax.f32 %v1098_v2, %v1130_v12  ;;  %v973_v43 = vmax.f32 %v909_v14, %v941_v25  ;;  %v912_v9 = vld [vmem:[#allocation2 + $0x50] sm:$0xff]  ;;  %4596 = vrcp.f32 %v785_v27  ;;  %v510_v14 = vpop.f32.mrf.mxu0 }
 0x116   : > { %v1180_v16 = vmax.f32 %v1116_v33, %v1148_v26  ;;  %v1018_v48 = vld [vmem:[#allocation2 + $0xca] sm:$0xff]  ;;  %v5163_v33 = vld [vmem:[#allocation2 + $0xd9] sm:$0xff]  ;;  %v5167_v37 = vld [vmem:[#allocation2 + $0xc1] sm:$0xff]  ;;  %v5171_v26 = vadd.f32 %v4924_v55, %v5153_v58  ;;  %4381 = vmatprep.mubr.msk.bf16.mxu0 %vm313_vm2, %v858_v46  ;;  %4598 = vrcp.f32 %v774_v20 }
 0x117   : > { %v911_v30 = vld [vmem:[#allocation2 + $0x48] sm:$0xff]  ;;  %v1050_v62 = vmax.f32 %v986_v44, %v1018_v48  ;;  %v944_v44 = vld [vmem:[#allocation2 + $0x51] sm:$0xff]  ;;  %v5179_v48 = vadd.f32 %v4924_v55, %v624_v59  ;;  %1195 = vst.msk [vmem:[#allocation3 + $0x28] sm:$0xff] %vm313_vm2, %v1162_v36  ;;  %v987_v41 = vmax.f32 %v5158_v61, %v5163_v33 }
 0x118   : > { %v975_v1 = vmax.f32 %v911_v30, %v943_v51  ;;  %1213 = vst.msk [vmem:[#allocation3 + $0xb8] sm:$0xff] %vm313_vm2, %v1180_v16  ;;  %v1007_v5 = vld [vmem:[#allocation2 + $0x4a] sm:$0xff]  ;;  %v5176_v16 = vmul.f32 %v4573_v24, %v5018_v13  ;;  %v4579_v30 = vpop.eup %4578  ;;  %v859_v51 = vpack.c.bf16 %v5139_v49, %v5119_v57  ;;  %v976_v3 = vmax.f32 %v912_v9, %v944_v44  ;;  %v1008_v12 = vld [vmem:[#allocation2 + $0x52] sm:$0xff] }
 0x119   : > { %v1114_v54 = vmax.f32 %v1050_v62, %v1082_v17  ;;  %v1071_v0 = vld [vmem:[#allocation2 + $0x4b] sm:$0xff]  ;;  %v4581_v2 = vpop.eup %4580  ;;  %v985_v13 = vmax.f32 %v5165_v34, %v5167_v37  ;;  %v790_v24 = vadd.f32 1.0, %v4577_v39  ;;  %v1072_v28 = vld [vmem:[#allocation2 + $0x53] sm:$0xff]  ;;  %v679_v44 = vsub.f32 0.0, %v5171_v26 }
 0x11a   : > { %v1039_v42 = vmax.f32 %v975_v1, %v1007_v5  ;;  %v928_v62 = vld [vmem:[#allocation2 + $0x110] sm:$0xff]  ;;  %894 = vst.msk [vmem:[#allocation2 + $0xfa] sm:$0xff] %vm313_vm2, %v5176_v16  ;;  %v1040_v49 = vmax.f32 %v976_v3, %v1008_v12  ;;  %v772_v5 = vadd.f32 1.0, %v4579_v30  ;;  %4382 = vmatmul.mubr.msk.bf16.gmra.mxu0 %vm313_vm2, %v859_v51  ;;  %v788_v27 = vadd.f32 1.0, %v4581_v2  ;;  %v5202_v51 = vld [vmem:[#allocation3] sm:$0xff] }
 0x11b   : > { %v1178_v58 = vmax.f32 %v1114_v54, %v1146_v60  ;;  %v1005_v57 = vld [vmem:[#allocation2 + $0x32] sm:$0xff]  ;;  %v695_v46 = vsub.f32 0.0, %v5179_v48  ;;  %4600 = vrcp.f32 %v790_v24 }
 0x11c   : > { %v1103_v59 = vmax.f32 %v1039_v42, %v1071_v0  ;;  %v1135_v17 = vld [vmem:[#allocation2 + $0x4c] sm:$0xff]  ;;  %v5193_v25 = vmax.f32 %v973_v43, %v1005_v57  ;;  %v4583_v42 = vpop.eup %4582  ;;  %v1104_v60 = vmax.f32 %v1040_v49, %v1072_v28  ;;  %v1136_v39 = vld [vmem:[#allocation2 + $0x54] sm:$0xff]  ;;  %4602 = vrcp.f32 %v772_v5 }
 0x11d   : > { %1211 = vst.msk [vmem:[#allocation3 + $0xa8] sm:$0xff] %vm313_vm2, %v1178_v58  ;;  %v960_v1 = vld [vmem:[#allocation2 + $0x111] sm:$0xff]  ;;  %v4585_v32 = vpop.eup %4584  ;;  %v5199_v43 = vmul.f32 %v4583_v42, %v5025_v31  ;;  %v606_v58 = vmul.f32 %v4919_v53, %v510_v14  ;;  %v726_v49 = vmul.f32 1.442695, %v679_v44  ;;  %4604 = vrcp.f32 %v788_v27  ;;  %v1006_v5 = vld [vmem:[#allocation2 + $0x3a] sm:$0xff] }
 0x11e   : > { %v1167_v36 = vmax.f32 %v1103_v59, %v1135_v17  ;;  %v992_v54 = vmax.f32 %v928_v62, %v960_v1  ;;  %v1024_v9 = vld [vmem:[#allocation2 + $0x112] sm:$0xff]  ;;  %v4587_v0 = vpop.eup %4586  ;;  %v1168_v2 = vmax.f32 %v1104_v60, %v1136_v39  ;;  %v5207_v57 = vmul.f32 %v4585_v32, %v5028_v35  ;;  %v5209_v17 = vld [vmem:[#allocation3 + $0x8] sm:$0xff] }
 0x11f   : > { %v5204_v3 = vld [vmem:[#allocation3 + $0x10] sm:$0xff]  ;;  %v910_v59 = vld [vmem:[#allocation2 + $0x38] sm:$0xff]  ;;  %v4589_v31 = vpop.eup %4588  ;;  %883 = vst.msk [vmem:[#allocation2 + $0x7a] sm:$0xff] %vm313_vm2, %v5199_v43  ;;  %v5214_v28 = vmul.f32 %v4587_v0, %v5033_v47  ;;  %4606 = vpow2.f32 %v726_v49  ;;  %v758_v47 = vmul.f32 1.442695, %v695_v46 }
 0x120   : > { %1200 = vst.msk [vmem:[#allocation3 + $0x50] sm:$0xff] %vm313_vm2, %v1167_v36  ;;  %v1056_v30 = vmax.f32 %v992_v54, %v1024_v9  ;;  %v1088_v12 = vld [vmem:[#allocation2 + $0x113] sm:$0xff]  ;;  %v574_v36 = vpop.f32.mrf.mxu1  ;;  %v4591_v35 = vpop.eup %4590  ;;  %1201 = vst.msk [vmem:[#allocation3 + $0x58] sm:$0xff] %vm313_vm2, %v1168_v2  ;;  %v5223_v44 = vmul.f32 %v4589_v31, %v5037_v52  ;;  %v1017_v2 = vld [vmem:[#allocation2 + $0xc2] sm:$0xff]  ;;  %v5235_v52 = vadd.f32 %v4924_v55, %v606_v58 }
 0x121   : > { %v942_v62 = vld [vmem:[#allocation2 + $0x39] sm:$0xff]  ;;  %899 = vst.msk [vmem:[#allocation2 + $0x13a] sm:$0xff] %vm313_vm2, %v5207_v57  ;;  %881 = vst.msk [vmem:[#allocation2 + $0x62] sm:$0xff] %vm313_vm2, %v5214_v28  ;;  %4608 = vpow2.f32 %v758_v47  ;;  %v622_v46 = vmul.f32 %v4919_v53, %v574_v36  ;;  %v925_v49 = vld [vmem:[#allocation2 + $0xf0] sm:$0xff] }
 0x122   : > { %v1120_v1 = vmax.f32 %v1056_v30, %v1088_v12  ;;  %v1152_v20 = vld [vmem:[#allocation2 + $0x114] sm:$0xff]  ;;  %v974_v24 = vmax.f32 %v910_v59, %v942_v62  ;;  %v5228_v30 = vmul.f32 %v4591_v35, %v5045_v7  ;;  %v5230_v12 = vld [vmem:[#allocation2 + $0x108] sm:$0xff]  ;;  %897 = vst.msk [vmem:[#allocation2 + $0x122] sm:$0xff] %vm313_vm2, %v5223_v44  ;;  %v1291_v7 = vmax.f32 %v5202_v51, %v5204_v3  ;;  %v1134_v36 = vld [vmem:[#allocation2 + $0x3c] sm:$0xff] }
 0x123   : > { %v1069_v14 = vld [vmem:[#allocation2 + $0x33] sm:$0xff]  ;;  %v1070_v59 = vld [vmem:[#allocation2 + $0x3b] sm:$0xff]  ;;  %v959_v53 = vld [vmem:[#allocation2 + $0x109] sm:$0xff]  ;;  %v677_v51 = vsub.f32 0.0, %v5235_v52 }
 0x124   : > { %v5216_v54 = vld [vmem:[#allocation3 + $0x18] sm:$0xff]  ;;  %v1101_v42 = vmax.f32 %v5193_v25, %v1069_v14  ;;  %v1184_v27 = vmax.f32 %v1120_v1, %v1152_v20  ;;  %v1038_v32 = vmax.f32 %v974_v24, %v1006_v5  ;;  %v4593_v25 = vpop.eup %4592  ;;  %884 = vst.msk [vmem:[#allocation2 + $0x82] sm:$0xff] %vm313_vm2, %v5228_v30  ;;  %v5250_v5 = vadd.f32 %v4924_v55, %v622_v46  ;;  %v5280_v46 = vld [vmem:[#allocation2 + $0xc3] sm:$0xff] }
 0x125   : > { %v926_v60 = vld [vmem:[#allocation2 + $0xf8] sm:$0xff]  ;;  %v5244_v14 = vmul.f32 %v4593_v25, %v5049_v15  ;;  %v4595_v47 = vpop.eup %4594  ;;  %v991_v37 = vmax.f32 %v5230_v12, %v959_v53  ;;  %v1023_v53 = vld [vmem:[#allocation2 + $0x10a] sm:$0xff] }
 0x126   : > { %v958_v9 = vld [vmem:[#allocation2 + $0xf9] sm:$0xff]  ;;  %v957_v31 = vld [vmem:[#allocation2 + $0xf1] sm:$0xff]  ;;  %1217 = vst.msk [vmem:[#allocation3 + $0xd8] sm:$0xff] %vm313_vm2, %v1184_v27  ;;  %v1102_v1 = vmax.f32 %v1038_v32, %v1070_v59  ;;  %v5264_v27 = vmax.f32 %v985_v13, %v1017_v2  ;;  %v693_v34 = vsub.f32 0.0, %v5250_v5 }
 0x127   : > { %v990_v39 = vmax.f32 %v926_v60, %v958_v9  ;;  %v1019_v0 = vld [vmem:[#allocation2 + $0xda] sm:$0xff]  ;;  %v5254_v9 = vsel %vm1583_vm4, %v4949_v8, 0  ;;  %900 = vst.msk [vmem:[#allocation2 + $0x142] sm:$0xff] %vm313_vm2, %v5244_v14  ;;  %v989_v25 = vmax.f32 %v925_v49, %v957_v31 }
 0x128   : > { %v1022_v62 = vld [vmem:[#allocation2 + $0xfa] sm:$0xff]  ;;  %v5259_v15 = vmax.f32 %v987_v41, %v1019_v0  ;;  %v1166_v55 = vmax.f32 %v1102_v1, %v1134_v36  ;;  %v833_v41 = vmul.f32 %v4595_v47, %v5054_v23  ;;  %v722_v0 = vmul.f32 1.442695, %v677_v51 }
 0x129   : > { %v1133_v20 = vld [vmem:[#allocation2 + $0x34] sm:$0xff]  ;;  %v1054_v24 = vmax.f32 %v990_v39, %v1022_v62  ;;  %v5270_v8 = vld [vmem:[#allocation3 + $0x20] sm:$0xff]  ;;  %v754_v1 = vmul.f32 1.442695, %v693_v34  ;;  %v5365_v34 = vld [vmem:[#allocation2 + $0x10b] sm:$0xff] }
 0x12a   : > { %v1086_v35 = vld [vmem:[#allocation2 + $0xfb] sm:$0xff]  ;;  %v1165_v60 = vmax.f32 %v1101_v42, %v1133_v20  ;;  %v4597_v42 = vpop.eup %4596  ;;  %1199 = vst.msk [vmem:[#allocation3 + $0x48] sm:$0xff] %vm313_vm2, %v1166_v55  ;;  %v860_v23 = vpack.c.bf16 %v833_v41, %v5214_v28  ;;  %882 = vst.msk [vmem:[#allocation2 + $0x6a] sm:$0xff] %vm313_vm2, %v833_v41  ;;  %4610 = vpow2.f32 %v722_v0  ;;  %v5285_v20 = vmax.f32 %v1291_v7, %v5270_v8 }
 0x12b   : > { %v5266_v32 = vld [vmem:[#allocation2 + $0xdb] sm:$0xff]  ;;  %v1118_v39 = vmax.f32 %v1054_v24, %v1086_v35  ;;  %v5278_v62 = vmul.f32 %v4597_v42, %v5057_v29  ;;  %v4599_v12 = vpop.eup %4598  ;;  %v1021_v29 = vld [vmem:[#allocation2 + $0xf2] sm:$0xff]  ;;  %v861_v28 = vpack.c.bf16 %v5228_v30, %v5199_v43  ;;  %v1293_v7 = vmax.f32 %v5204_v3, %v5270_v8  ;;  %v1140_v38 = vld [vmem:[#allocation2 + $0x84] sm:$0xff] }
 0x12c   : > { %v1150_v59 = vld [vmem:[#allocation2 + $0xfc] sm:$0xff]  ;;  %1198 = vst.msk [vmem:[#allocation3 + $0x40] sm:$0xff] %vm313_vm2, %v1165_v60  ;;  %v4601_v51 = vpop.eup %4600  ;;  %v5296_v60 = vmax.f32 %v989_v25, %v1021_v29  ;;  %v5301_v42 = vmul.f32 %v4599_v12, %v5068_v63  ;;  %4612 = vpow2.f32 %v754_v1  ;;  %4385 = vmatprep.mubr.msk.bf16.mxu0 %vm313_vm2, %v860_v23  ;;  %v5304_v43 = vld [vmem:[#allocation3 + $0x30] sm:$0xff]  ;;  %v5308_v3 = vmax.f32 %v991_v37, %v1023_v53 }
 0x12d   : > { %v915_v61 = vld [vmem:[#allocation2 + $0x78] sm:$0xff]  ;;  %v1182_v13 = vmax.f32 %v1118_v39, %v1150_v59  ;;  %v913_v49 = vld [vmem:[#allocation2 + $0x60] sm:$0xff]  ;;  %898 = vst.msk [vmem:[#allocation2 + $0x12a] sm:$0xff] %vm313_vm2, %v5278_v62  ;;  %v4603_v30 = vpop.eup %4602  ;;  %v5315_v63 = vmul.f32 %v4601_v51, %v5075_v6  ;;  %4386 = vmatmul.mubr.msk.bf16.gmra.mxu0 %vm313_vm2, %v861_v28  ;;  %v1420_v6 = vmax.f32 %v5285_v20, %v5304_v43 }
 0x12e   : > { %v947_v33 = vld [vmem:[#allocation2 + $0x79] sm:$0xff]  ;;  %v945_v31 = vld [vmem:[#allocation2 + $0x61] sm:$0xff]  ;;  %v4605_v0 = vpop.eup %4604  ;;  %887 = vst.msk [vmem:[#allocation2 + $0xaa] sm:$0xff] %vm313_vm2, %v5301_v42 }
 0x12f   : > { %v979_v2 = vmax.f32 %v915_v61, %v947_v33  ;;  %1215 = vst.msk [vmem:[#allocation3 + $0xc8] sm:$0xff] %vm313_vm2, %v1182_v13  ;;  %v1011_v36 = vld [vmem:[#allocation2 + $0x7a] sm:$0xff]  ;;  %v977_v35 = vmax.f32 %v913_v49, %v945_v31  ;;  %v1009_v61 = vld [vmem:[#allocation2 + $0x62] sm:$0xff]  ;;  %v5325_v31 = vmul.f32 %v4603_v30, %v5083_v18  ;;  %v4607_v23 = vpop.eup %4606  ;;  %903 = vst.msk [vmem:[#allocation2 + $0x16a] sm:$0xff] %vm313_vm2, %v5315_v63 }
 0x130   : > { %v916_v55 = vld [vmem:[#allocation2 + $0x80] sm:$0xff]  ;;  %v5310_v25 = vld [vmem:[#allocation2 + $0xf3] sm:$0xff]  ;;  %v1357_v18 = vmax.f32 %v1293_v7, %v5304_v43 }
 0x131   : > { %v5298_v47 = vmax.f32 %v979_v2, %v1011_v36  ;;  %v948_v39 = vld [vmem:[#allocation2 + $0x81] sm:$0xff]  ;;  %v5320_v13 = vmax.f32 %v977_v35, %v1009_v61  ;;  %v5336_v36 = vmul.f32 %v4605_v0, %v5091_v22  ;;  %885 = vst.msk [vmem:[#allocation2 + $0x92] sm:$0xff] %vm313_vm2, %v5325_v31  ;;  %v5349_v22 = vld [vmem:[#allocation3 + $0x50] sm:$0xff]  ;;  %v5355_v0 = vld [vmem:[#allocation2 + $0x138] sm:$0xff] }
 0x132   : > { %v980_v33 = vmax.f32 %v916_v55, %v948_v39  ;;  %v5312_v41 = vld [vmem:[#allocation2 + $0x7b] sm:$0xff]  ;;  %v5338_v35 = vld [vmem:[#allocation3 + $0x28] sm:$0xff]  ;;  %v775_v39 = vadd.f32 1.0, %v4607_v23  ;;  %v4750_v7 = vld [vmem:[%s6928_s4 + $0x3] sm:$0x1] }
 0x133   : > { %v1012_v2 = vld [vmem:[#allocation2 + $0x82] sm:$0xff]  ;;  %v1107_v51 = vmax.f32 %v5298_v47, %v5312_v41  ;;  %v3569_v61 = vsel %vm1583_vm4, %v4750_v7, 0  ;;  %901 = vst.msk [vmem:[#allocation2 + $0x152] sm:$0xff] %vm313_vm2, %v5336_v36  ;;  %v1010_v24 = vld [vmem:[#allocation2 + $0x6a] sm:$0xff] }
 0x134   : > { %v932_v37 = vld [vmem:[#allocation2 + $0x140] sm:$0xff]  ;;  %v1044_v53 = vmax.f32 %v980_v33, %v1012_v2  ;;  %v4609_v33 = vpop.eup %4608  ;;  %4444 = vmatpush3.bf16.msra.mxu0 %v3569_v61  ;;  %4614 = vrcp.f32 %v775_v39  ;;  %v930_v59 = vld [vmem:[#allocation2 + $0x128] sm:$0xff] }
 0x135   : > { %v964_v49 = vld [vmem:[#allocation2 + $0x141] sm:$0xff]  ;;  %v5357_v2 = vld [vmem:[#allocation2 + $0x139] sm:$0xff]  ;;  %v962_v58 = vld [vmem:[#allocation2 + $0x129] sm:$0xff] }
 0x136   : > { %v5329_v1 = vld [vmem:[#allocation2 + $0x120] sm:$0xff]  ;;  %v996_v29 = vmax.f32 %v932_v37, %v964_v49  ;;  %v914_v37 = vld [vmem:[#allocation2 + $0x68] sm:$0xff] }
 0x137   : > { %v5331_v12 = vld [vmem:[#allocation2 + $0x121] sm:$0xff]  ;;  %v946_v49 = vld [vmem:[#allocation2 + $0x69] sm:$0xff] }
 0x138   : > { %v1076_v28 = vld [vmem:[#allocation2 + $0x83] sm:$0xff]  ;;  %v993_v7 = vmax.f32 %v5329_v1, %v5331_v12  ;;  %v1074_v39 = vld [vmem:[#allocation2 + $0x6b] sm:$0xff] }
 0x139   : > { %v1028_v55 = vld [vmem:[#allocation2 + $0x142] sm:$0xff]  ;;  %v1108_v47 = vmax.f32 %v1044_v53, %v1076_v28  ;;  %v978_v53 = vmax.f32 %v914_v37, %v946_v49  ;;  %v791_v28 = vadd.f32 1.0, %v4609_v33  ;;  %v994_v49 = vmax.f32 %v930_v59, %v962_v58  ;;  %v1026_v33 = vld [vmem:[#allocation2 + $0x12a] sm:$0xff] }
 0x13a   : > { %v5347_v30 = vld [vmem:[#allocation3 + $0x40] sm:$0xff]  ;;  %v1060_v41 = vmax.f32 %v996_v29, %v1028_v55 }
 0x13b   : > { %v5362_v23 = vmax.f32 %v1420_v6, %v5347_v30  ;;  %v1422_v56 = vmax.f32 %v1357_v18, %v5347_v30  ;;  %v1092_v50 = vld [vmem:[#allocation2 + $0x143] sm:$0xff]  ;;  %v1172_v55 = vmax.f32 %v1108_v47, %v1140_v38  ;;  %v1042_v61 = vmax.f32 %v978_v53, %v1010_v24 }
 0x13c   : > { %v1073_v29 = vld [vmem:[#allocation2 + $0x63] sm:$0xff]  ;;  %v1124_v20 = vmax.f32 %v1060_v41, %v1092_v50  ;;  %4616 = vrcp.f32 %v791_v28  ;;  %v6932_v38 = vmax.f32 %v5209_v17, %v5216_v54  ;;  %v995_v41 = vmax.f32 %v5355_v0, %v5357_v2  ;;  %v4611_v28 = vpop.eup %4610 }
 0x13d   : > { %v1105_v6 = vmax.f32 %v5320_v13, %v1073_v29  ;;  %1960 = vst.msk [vmem:[#allocation2 + $0x2] sm:$0xff] %vm313_vm2, %v5362_v23  ;;  %v5373_v18 = vmax.f32 %v1422_v56, %v5349_v22  ;;  %v1139_v1 = vld [vmem:[#allocation2 + $0x7c] sm:$0xff]  ;;  %v1156_v12 = vld [vmem:[#allocation2 + $0x144] sm:$0xff]  ;;  %1205 = vst.msk [vmem:[#allocation3 + $0x78] sm:$0xff] %vm313_vm2, %v1172_v55  ;;  %v1294_v56 = vmax.f32 %v5216_v54, %v5338_v35 }
 0x13e   : > { %v1137_v37 = vld [vmem:[#allocation2 + $0x64] sm:$0xff]  ;;  %v1356_v50 = vmax.f32 %v6932_v38, %v5338_v35  ;;  %v1188_v13 = vmax.f32 %v1124_v20, %v1156_v12  ;;  %v1171_v47 = vmax.f32 %v1107_v51, %v1139_v1  ;;  %v1147_v58 = vld [vmem:[#allocation2 + $0xdc] sm:$0xff]  ;;  %v1106_v53 = vmax.f32 %v1042_v61, %v1074_v39  ;;  %v1138_v51 = vld [vmem:[#allocation2 + $0x6c] sm:$0xff]  ;;  %v4613_v39 = vpop.eup %4612 }
 0x13f   : > { %1962 = vst.msk [vmem:[#allocation2 + $0x1a] sm:$0xff] %vm313_vm2, %v5373_v18  ;;  %v1169_v24 = vmax.f32 %v1105_v6, %v1137_v37  ;;  %v1145_v59 = vld [vmem:[#allocation2 + $0xc4] sm:$0xff]  ;;  %v1058_v29 = vmax.f32 %v994_v49, %v1026_v33  ;;  %v1295_v20 = vmax.f32 %v5270_v8, %v5304_v43  ;;  %v1119_v54 = vmax.f32 %v5308_v3, %v5365_v34  ;;  %v1149_v12 = vld [vmem:[#allocation2 + $0xf4] sm:$0xff] }
 0x140   : > { %v1025_v17 = vld [vmem:[#allocation2 + $0x122] sm:$0xff]  ;;  %1221 = vst.msk [vmem:[#allocation3 + $0xf8] sm:$0xff] %vm313_vm2, %v1188_v13  ;;  %v1090_v6 = vld [vmem:[#allocation2 + $0x12b] sm:$0xff]  ;;  %1204 = vst.msk [vmem:[#allocation3 + $0x70] sm:$0xff] %vm313_vm2, %v1171_v47  ;;  %v6933_v0 = vmax.f32 %v5264_v27, %v5280_v46  ;;  %v6934_v8 = vmax.f32 %v5259_v15, %v5266_v32  ;;  %v773_v49 = vadd.f32 1.0, %v4611_v28  ;;  %v1297_v32 = vmax.f32 %v5304_v43, %v5347_v30 }
 0x141   : > { %v5390_v55 = vmax.f32 %v993_v7, %v1025_v17  ;;  %1202 = vst.msk [vmem:[#allocation3 + $0x60] sm:$0xff] %vm313_vm2, %v1169_v24  ;;  %v1027_v61 = vld [vmem:[#allocation2 + $0x13a] sm:$0xff]  ;;  %v1170_v7 = vmax.f32 %v1106_v53, %v1138_v51  ;;  %v1122_v37 = vmax.f32 %v1058_v29, %v1090_v6  ;;  %v1359_v13 = vmax.f32 %v1295_v20, %v5347_v30  ;;  %v5406_v24 = vld [vmem:[#allocation2 + $0x123] sm:$0xff]  ;;  %v1154_v27 = vld [vmem:[#allocation2 + $0x12c] sm:$0xff] }
 0x142   : > { %v1177_v2 = vmax.f32 %v6933_v0, %v1145_v59  ;;  %v1179_v1 = vmax.f32 %v6934_v8, %v1147_v58  ;;  %v5401_v38 = vld [vmem:[#allocation3 + $0x38] sm:$0xff]  ;;  %v5409_v47 = vld [vmem:[#allocation3 + $0x48] sm:$0xff]  ;;  %v6935_v58 = vmax.f32 %v5296_v60, %v5310_v25  ;;  %v5419_v17 = vmax.f32 %v995_v41, %v1027_v61 }
 0x143   : > { %v5404_v33 = vld [vmem:[#allocation2 + $0x13b] sm:$0xff]  ;;  %v1421_v46 = vmax.f32 %v1356_v50, %v5401_v38  ;;  %v1358_v15 = vmax.f32 %v1294_v56, %v5401_v38  ;;  %1203 = vst.msk [vmem:[#allocation3 + $0x68] sm:$0xff] %vm313_vm2, %v1170_v7  ;;  %v1186_v50 = vmax.f32 %v1122_v37, %v1154_v27  ;;  %v5422_v53 = vld [vmem:[#allocation2 + $0xa8] sm:$0xff]  ;;  %4618 = vrcp.f32 %v773_v49  ;;  %v933_v27 = vld [vmem:[#allocation2 + $0x150] sm:$0xff] }
 0x144   : > { %1210 = vst.msk [vmem:[#allocation3 + $0xa0] sm:$0xff] %vm313_vm2, %v1177_v2  ;;  %1212 = vst.msk [vmem:[#allocation3 + $0xb0] sm:$0xff] %vm313_vm2, %v1179_v1  ;;  %v1181_v59 = vmax.f32 %v6935_v58, %v1149_v12  ;;  %v5424_v29 = vld [vmem:[#allocation2 + $0xa9] sm:$0xff]  ;;  %v1296_v43 = vmax.f32 %v5338_v35, %v5401_v38  ;;  %v789_v25 = vadd.f32 1.0, %v4613_v39  ;;  %v1992_v51 = vld [vmem:[#allocation2] sm:$0xff]  ;;  %v1121_v0 = vmax.f32 %v5390_v55, %v5406_v24  ;;  %v4615_v58 = vpop.eup %4614 }
 0x145   : > { %v5426_v56 = vld [vmem:[#allocation2 + $0x168] sm:$0xff]  ;;  %v1486_v41 = vmax.f32 %v1421_v46, %v5409_v47  ;;  %v1423_v28 = vmax.f32 %v1358_v15, %v5409_v47  ;;  %1219 = vst.msk [vmem:[#allocation3 + $0xe8] sm:$0xff] %vm313_vm2, %v1186_v50  ;;  %v5440_v35 = vld [vmem:[#allocation2 + $0x90] sm:$0xff]  ;;  %v5444_v8 = vld [vmem:[#allocation3 + $0x58] sm:$0xff]  ;;  %v1424_v12 = vmax.f32 %v1359_v13, %v5349_v22  ;;  %v1298_v61 = vmax.f32 %v5401_v38, %v5409_v47 }
 0x146   : > { %v5432_v60 = vld [vmem:[#allocation2 + $0x169] sm:$0xff]  ;;  %v2024_v6 = vld [vmem:[#allocation2 + $0x1] sm:$0xff]  ;;  %1214 = vst.msk [vmem:[#allocation3 + $0xc0] sm:$0xff] %vm313_vm2, %v1181_v59  ;;  %v5442_v2 = vld [vmem:[#allocation2 + $0x91] sm:$0xff]  ;;  %v1360_v1 = vmax.f32 %v1296_v43, %v5409_v47  ;;  %4620 = vrcp.f32 %v789_v25  ;;  %v1361_v37 = vmax.f32 %v1297_v32, %v5349_v22  ;;  %v1123_v24 = vmax.f32 %v5419_v17, %v5404_v33 }
 0x147   : > { %v1517_v7 = vpack.c.bf16 %v1486_v41, %v5362_v23  ;;  %1961 = vst.msk [vmem:[#allocation2 + $0xa] sm:$0xff] %vm313_vm2, %v1486_v41  ;;  %v1488_v55 = vmax.f32 %v1423_v28, %v5444_v8  ;;  %v1994_v49 = vld [vmem:[#allocation2 + $0x18] sm:$0xff]  ;;  %v983_v13 = vmax.f32 %v5422_v53, %v5424_v29  ;;  %v999_v38 = vmax.f32 %v5426_v56, %v5432_v60  ;;  %v1151_v29 = vld [vmem:[#allocation2 + $0x10c] sm:$0xff]  ;;  %v1153_v56 = vld [vmem:[#allocation2 + $0x124] sm:$0xff] }
 0x148   : > { %v2026_v39 = vld [vmem:[#allocation2 + $0x19] sm:$0xff]  ;;  %v965_v46 = vld [vmem:[#allocation2 + $0x151] sm:$0xff]  ;;  %v2056_v15 = vmax.f32 %v1992_v51, %v2024_v6  ;;  %v981_v32 = vmax.f32 %v5440_v35, %v5442_v2  ;;  %v5470_v43 = vmul.f32 %v4615_v58, %v5171_v26  ;;  %v1425_v60 = vmax.f32 %v1360_v1, %v5444_v8  ;;  %v2088_v35 = vld [vmem:[#allocation2 + $0x2] sm:$0xff] }
 0x149   : > { %v5460_v23 = vld [vmem:[#allocation3 + $0x60] sm:$0xff]  ;;  %4343 = vmatprep.mubr.msk.bf16.mxu1 %vm313_vm2, %v1517_v7  ;;  %v1518_v59 = vpack.c.bf16 %v1488_v55, %v5373_v18  ;;  %1963 = vst.msk [vmem:[#allocation2 + $0x22] sm:$0xff] %vm313_vm2, %v1488_v55  ;;  %v1362_v25 = vmax.f32 %v1298_v61, %v5444_v8  ;;  %v5474_v41 = vld [vmem:[#allocation3 + $0x70] sm:$0xff]  ;;  %v2058_v28 = vmax.f32 %v1994_v49, %v2026_v39  ;;  %v4617_v51 = vpop.eup %4616  ;;  %v5483_v26 = vld [vmem:[#allocation3 + $0xa8] sm:$0xff] }
 0x14a   : > { %v1489_v50 = vmax.f32 %v1424_v12, %v5460_v23  ;;  %v1426_v53 = vmax.f32 %v1361_v37, %v5460_v23  ;;  %v997_v18 = vmax.f32 %v933_v27, %v965_v46  ;;  %v5477_v6 = vld [vmem:[#allocation3 + $0x68] sm:$0xff]  ;;  %v1183_v1 = vmax.f32 %v1119_v54, %v1151_v29  ;;  %v1013_v55 = vld [vmem:[#allocation2 + $0x92] sm:$0xff]  ;;  %888 = vst.msk [vmem:[#allocation2 + $0xb2] sm:$0xff] %vm313_vm2, %v5470_v43 }
 0x14b   : > { %4344 = vmatmul.mubr.msk.bf16.vlgmr.msra.gmra.mxu1 %vm313_vm2, %v1518_v59  ;;  %v1185_v12 = vmax.f32 %v1121_v0, %v1153_v56  ;;  %v1015_v61 = vld [vmem:[#allocation2 + $0xaa] sm:$0xff]  ;;  %v5491_v37 = vmul.f32 %v4617_v51, %v5179_v48  ;;  %v1490_v49 = vmax.f32 %v1425_v60, %v5477_v6  ;;  %v2120_v39 = vmax.f32 %v2056_v15, %v2088_v35  ;;  %v5496_v46 = vld [vmem:[#allocation3 + $0xb8] sm:$0xff] }
 0x14c   : > { %1964 = vst.msk [vmem:[#allocation2 + $0x32] sm:$0xff] %vm313_vm2, %v1489_v50  ;;  %v5481_v2 = vmax.f32 %v1426_v53, %v5474_v41  ;;  %v1031_v7 = vld [vmem:[#allocation2 + $0x16a] sm:$0xff]  ;;  %4410 = vmatpush3.bf16.msra.mxu1 %v5254_v9  ;;  %v1427_v27 = vmax.f32 %v1362_v25, %v5477_v6  ;;  %v5500_v34 = vmax.f32 %v983_v13, %v1015_v61  ;;  %v1029_v0 = vld [vmem:[#allocation2 + $0x152] sm:$0xff]  ;;  %v2090_v48 = vld [vmem:[#allocation2 + $0x1a] sm:$0xff] }
 0x14d   : > { %v5502_v54 = vmax.f32 %v999_v38, %v1031_v7  ;;  %v5504_v58 = vld [vmem:[#allocation3 + $0x78] sm:$0xff]  ;;  %v1299_v9 = vmax.f32 %v5347_v30, %v5349_v22  ;;  %1216 = vst.msk [vmem:[#allocation3 + $0xd0] sm:$0xff] %vm313_vm2, %v1183_v1  ;;  %1218 = vst.msk [vmem:[#allocation3 + $0xe0] sm:$0xff] %vm313_vm2, %v1185_v12  ;;  %v5512_v15 = vmax.f32 %v981_v32, %v1013_v55  ;;  %v5518_v56 = vld [vmem:[#allocation3 + $0xc8] sm:$0xff] }
 0x14e   : > { %1966 = vst.msk [vmem:[#allocation2 + $0x4a] sm:$0xff] %vm313_vm2, %v5481_v2  ;;  %904 = vst.msk [vmem:[#allocation2 + $0x172] sm:$0xff] %vm313_vm2, %v5491_v37  ;;  %v1519_v13 = vpack.c.bf16 %v1490_v49, %v1489_v50  ;;  %v1993_v38 = vld [vmem:[#allocation2 + $0x8] sm:$0xff]  ;;  %v1492_v53 = vmax.f32 %v1427_v27, %v5504_v58  ;;  %v2122_v29 = vmax.f32 %v2058_v28, %v2090_v48  ;;  %v1155_v30 = vld [vmem:[#allocation2 + $0x13c] sm:$0xff] }
 0x14f   : > { %1965 = vst.msk [vmem:[#allocation2 + $0x3a] sm:$0xff] %vm313_vm2, %v1490_v49  ;;  %v2025_v59 = vld [vmem:[#allocation2 + $0x9] sm:$0xff]  ;;  %v5520_v60 = vmax.f32 %v997_v18, %v1029_v0  ;;  %v1300_v32 = vmax.f32 %v5409_v47, %v5444_v8  ;;  %v1312_v50 = vmax.f32 %v5483_v26, %v5496_v46  ;;  %v5530_v18 = vmax.f32 %v1299_v9, %v5460_v23  ;;  %v5532_v7 = vld [vmem:[#allocation3 + $0xd8] sm:$0xff] }
 0x150   : > { %v2057_v25 = vmax.f32 %v1993_v38, %v2025_v59  ;;  %v2152_v51 = vld [vmem:[#allocation2 + $0x3] sm:$0xff]  ;;  %4347 = vmatprep.mubr.msk.bf16.mxu1 %vm313_vm2, %v1519_v13  ;;  %v1520_v12 = vpack.c.bf16 %v1492_v53, %v5481_v2  ;;  %1967 = vst.msk [vmem:[#allocation2 + $0x52] sm:$0xff] %vm313_vm2, %v1492_v53  ;;  %v1187_v55 = vmax.f32 %v1123_v24, %v1155_v30  ;;  %v4619_v49 = vpop.eup %4618  ;;  %v2153_v0 = vld [vmem:[#allocation2 + $0xb] sm:$0xff]  ;;  %v2154_v13 = vld [vmem:[#allocation2 + $0x1b] sm:$0xff] }
 0x151   : > { %v2089_v35 = vld [vmem:[#allocation2 + $0xa] sm:$0xff]  ;;  %v2184_v1 = vmax.f32 %v2120_v39, %v2152_v51  ;;  %v1995_v28 = vld [vmem:[#allocation2 + $0x20] sm:$0xff]  ;;  %v1376_v38 = vmax.f32 %v1312_v50, %v5518_v56  ;;  %v837_v9 = vmul.f32 %v4619_v49, %v5235_v52  ;;  %v2186_v17 = vmax.f32 %v2122_v29, %v2154_v13  ;;  %v1080_v3 = vld [vmem:[#allocation2 + $0xb3] sm:$0xff] }
 0x152   : > { %v2027_v61 = vld [vmem:[#allocation2 + $0x21] sm:$0xff]  ;;  %v2121_v27 = vmax.f32 %v2057_v25, %v2089_v35  ;;  %v2217_v53 = vld [vmem:[#allocation2 + $0xc] sm:$0xff]  ;;  %1220 = vst.msk [vmem:[#allocation3 + $0xf0] sm:$0xff] %vm313_vm2, %v1187_v55  ;;  %v1314_v24 = vmax.f32 %v5496_v46, %v5518_v56  ;;  %v863_v30 = vpack.c.bf16 %v5470_v43, %v5301_v42 }
 0x153   : > { %v2216_v48 = vld [vmem:[#allocation2 + $0x4] sm:$0xff]  ;;  %v2059_v39 = vmax.f32 %v1995_v28, %v2027_v61  ;;  %v920_v25 = vld [vmem:[#allocation2 + $0xb0] sm:$0xff]  ;;  %4348 = vmatmul.mubr.msk.bf16.gmra.mxu1 %vm313_vm2, %v1520_v12  ;;  %v2218_v52 = vld [vmem:[#allocation2 + $0x1c] sm:$0xff]  ;;  %v4621_v29 = vpop.eup %4620  ;;  %886 = vst.msk [vmem:[#allocation2 + $0x9a] sm:$0xff] %vm313_vm2, %v837_v9 }
 0x154   : > { %v5540_v59 = vld [vmem:[#allocation3 + $0xe8] sm:$0xff]  ;;  %v2248_v51 = vmax.f32 %v2184_v1, %v2216_v48  ;;  %v952_v35 = vld [vmem:[#allocation2 + $0xb1] sm:$0xff]  ;;  %v2185_v50 = vmax.f32 %v2121_v27, %v2153_v0  ;;  %v5549_v61 = vld [vmem:[#allocation3 + $0xa0] sm:$0xff]  ;;  %v1441_v1 = vmax.f32 %v1376_v38, %v5532_v7  ;;  %v862_v48 = vpack.c.bf16 %v837_v9, %v5325_v31 }
 0x155   : > { %v2091_v20 = vld [vmem:[#allocation2 + $0x22] sm:$0xff]  ;;  %v984_v49 = vmax.f32 %v920_v25, %v952_v35  ;;  %v1079_v55 = vld [vmem:[#allocation2 + $0xab] sm:$0xff]  ;;  %v2250_v43 = vmax.f32 %v2186_v17, %v2218_v52  ;;  %v1378_v12 = vmax.f32 %v1314_v24, %v5532_v7  ;;  %v5558_v38 = vmul.f32 %v4621_v29, %v5250_v5  ;;  %v5562_v9 = vld [vmem:[#allocation3 + $0xf8] sm:$0xff] }
 0x156   : > { %v2155_v33 = vld [vmem:[#allocation2 + $0x23] sm:$0xff]  ;;  %v2123_v28 = vmax.f32 %v2059_v39, %v2091_v20  ;;  %2280 = vst.msk [vmem:[#allocation3 + $0x20] sm:$0xff] %vm313_vm2, %v2248_v51  ;;  %v1996_v27 = vld [vmem:[#allocation2 + $0x30] sm:$0xff]  ;;  %v1111_v0 = vmax.f32 %v5500_v34, %v1079_v55  ;;  %v2249_v25 = vmax.f32 %v2185_v50, %v2217_v53  ;;  %4389 = vmatprep.mubr.msk.bf16.mxu0 %vm313_vm2, %v862_v48 }
 0x157   : > { %v2219_v42 = vld [vmem:[#allocation2 + $0x24] sm:$0xff]  ;;  %v1016_v20 = vld [vmem:[#allocation2 + $0xb2] sm:$0xff]  ;;  %2282 = vst.msk [vmem:[#allocation3 + $0x30] sm:$0xff] %vm313_vm2, %v2250_v43  ;;  %v5567_v34 = vmax.f32 %v1441_v1, %v5540_v59  ;;  %v1443_v5 = vmax.f32 %v1378_v12, %v5540_v59  ;;  %902 = vst.msk [vmem:[#allocation2 + $0x15a] sm:$0xff] %vm313_vm2, %v5558_v38  ;;  %4390 = vmatmul.mubr.msk.bf16.gmra.mxu0 %vm313_vm2, %v863_v30  ;;  %v1303_v1 = vmax.f32 %v5460_v23, %v5474_v41 }
 0x158   : > { %v936_v39 = vld [vmem:[#allocation2 + $0x170] sm:$0xff]  ;;  %v2187_v35 = vmax.f32 %v2123_v28, %v2155_v33  ;;  %v1048_v51 = vmax.f32 %v984_v49, %v1016_v20  ;;  %2281 = vst.msk [vmem:[#allocation3 + $0x28] sm:$0xff] %vm313_vm2, %v2249_v25  ;;  %v1997_v28 = vld [vmem:[#allocation2 + $0x38] sm:$0xff]  ;;  %v6936_v43 = vpack.c.bf16 %v5109_v21, %v5088_v19  ;;  %v5593_v19 = vmax.f32 %v1300_v32, %v5477_v6 }
 0x159   : > { %v968_v13 = vld [vmem:[#allocation2 + $0x171] sm:$0xff]  ;;  %1981 = vst.msk [vmem:[#allocation2 + $0xfa] sm:$0xff] %vm313_vm2, %v5567_v34 }
 0x15a   : > { %v5560_v31 = vld [vmem:[#allocation3 + $0xb0] sm:$0xff]  ;;  %v1000_v52 = vmax.f32 %v936_v39, %v968_v13  ;;  %v2251_v50 = vmax.f32 %v2187_v35, %v2219_v42  ;;  %v1112_v49 = vmax.f32 %v1048_v51, %v1080_v3  ;;  %4393 = vmatprep.mubr.msk.bf16.mxu0 %vm313_vm2, %v6936_v43  ;;  %v5586_v42 = vmax.f32 %v1443_v5, %v5562_v9  ;;  %v2093_v51 = vld [vmem:[#allocation2 + $0x3a] sm:$0xff] }
 0x15b   : > { %v1143_v17 = vld [vmem:[#allocation2 + $0xac] sm:$0xff]  ;;  %v1144_v53 = vld [vmem:[#allocation2 + $0xb4] sm:$0xff]  ;;  %v1311_v30 = vmax.f32 %v5549_v61, %v5560_v31  ;;  %v1428_v35 = vmax.f32 %v5530_v18, %v5474_v41  ;;  %v1302_v5 = vmax.f32 %v5444_v8, %v5477_v6  ;;  %v2221_v43 = vld [vmem:[#allocation2 + $0x3c] sm:$0xff] }
 0x15c   : > { %v1095_v2 = vld [vmem:[#allocation2 + $0x16b] sm:$0xff]  ;;  %v1175_v29 = vmax.f32 %v1111_v0, %v1143_v17  ;;  %v1096_v12 = vld [vmem:[#allocation2 + $0x173] sm:$0xff]  ;;  %2283 = vst.msk [vmem:[#allocation3 + $0x38] sm:$0xff] %vm313_vm2, %v2251_v50  ;;  %v1176_v13 = vmax.f32 %v1112_v49, %v1144_v53  ;;  %1983 = vst.msk [vmem:[#allocation2 + $0x112] sm:$0xff] %vm313_vm2, %v5586_v42 }
 0x15d   : > { %v1032_v33 = vld [vmem:[#allocation2 + $0x172] sm:$0xff]  ;;  %v1127_v24 = vmax.f32 %v5502_v54, %v1095_v2 }
 0x15e   : > { %v1064_v55 = vmax.f32 %v1000_v52, %v1032_v33  ;;  %v1159_v48 = vld [vmem:[#allocation2 + $0x16c] sm:$0xff]  ;;  %v2029_v2 = vld [vmem:[#allocation2 + $0x39] sm:$0xff]  ;;  %1208 = vst.msk [vmem:[#allocation3 + $0x90] sm:$0xff] %vm313_vm2, %v1175_v29  ;;  %1209 = vst.msk [vmem:[#allocation3 + $0x98] sm:$0xff] %vm313_vm2, %v1176_v13 }
 0x15f   : > { %v2028_v54 = vld [vmem:[#allocation2 + $0x31] sm:$0xff]  ;;  %v2061_v20 = vmax.f32 %v1997_v28, %v2029_v2  ;;  %v1191_v39 = vmax.f32 %v1127_v24, %v1159_v48  ;;  %v2157_v52 = vld [vmem:[#allocation2 + $0x3b] sm:$0xff]  ;;  %v6937_v24 = vmax.f32 %v5349_v22, %v5460_v23  ;;  %v1998_v28 = vld [vmem:[#allocation2 + $0x48] sm:$0xff]  ;;  %v1316_v22 = vmax.f32 %v5518_v56, %v5532_v7 }
 0x160   : > { %v1160_v3 = vld [vmem:[#allocation2 + $0x174] sm:$0xff]  ;;  %v2060_v21 = vmax.f32 %v1996_v27, %v2028_v54  ;;  %v1128_v25 = vmax.f32 %v1064_v55, %v1096_v12  ;;  %v5610_v29 = vld [vmem:[#allocation3 + $0xc0] sm:$0xff] }
 0x161   : > { %v2092_v0 = vld [vmem:[#allocation2 + $0x32] sm:$0xff]  ;;  %v2125_v53 = vmax.f32 %v2061_v20, %v2093_v51  ;;  %v5608_v50 = vmax.f32 %v6937_v24, %v5474_v41  ;;  %1224 = vst.msk [vmem:[#allocation3 + $0x110] sm:$0xff] %vm313_vm2, %v1191_v39  ;;  %v1014_v2 = vld [vmem:[#allocation2 + $0x9a] sm:$0xff]  ;;  %v5626_v47 = vmax.f32 %v1316_v22, %v5540_v59 }
 0x162   : > { %v2156_v17 = vld [vmem:[#allocation2 + $0x33] sm:$0xff]  ;;  %v2124_v33 = vmax.f32 %v2060_v21, %v2092_v0  ;;  %v1192_v8 = vmax.f32 %v1128_v25, %v1160_v3  ;;  %v2030_v3 = vld [vmem:[#allocation2 + $0x49] sm:$0xff] }
 0x163   : > { %v918_v32 = vld [vmem:[#allocation2 + $0x98] sm:$0xff]  ;;  %v2189_v39 = vmax.f32 %v2125_v53, %v2157_v52  ;;  %v2062_v24 = vmax.f32 %v1998_v28, %v2030_v3  ;;  %v6939_v28 = vpack.c.bf16 %v5176_v16, %v5134_v45  ;;  %v2094_v16 = vld [vmem:[#allocation2 + $0x4a] sm:$0xff] }
 0x164   : > { %v950_v27 = vld [vmem:[#allocation2 + $0x99] sm:$0xff]  ;;  %v2188_v0 = vmax.f32 %v2124_v33, %v2156_v17  ;;  %1225 = vst.msk [vmem:[#allocation3 + $0x118] sm:$0xff] %vm313_vm2, %v1192_v8  ;;  %v6938_v17 = vpack.c.bf16 %v5099_v11, %v5072_v4  ;;  %v1375_v4 = vmax.f32 %v1311_v30, %v5610_v29  ;;  %v1313_v11 = vmax.f32 %v5560_v31, %v5610_v29 }
 0x165   : > { %v982_v49 = vmax.f32 %v918_v32, %v950_v27  ;;  %v1077_v55 = vld [vmem:[#allocation2 + $0x93] sm:$0xff]  ;;  %v5623_v32 = vmax.f32 %v1302_v5, %v5504_v58  ;;  %v2253_v53 = vmax.f32 %v2189_v39, %v2221_v43  ;;  %v2126_v39 = vmax.f32 %v2062_v24, %v2094_v16  ;;  %v1158_v24 = vld [vmem:[#allocation2 + $0x15c] sm:$0xff] }
 0x166   : > { %v2220_v48 = vld [vmem:[#allocation2 + $0x34] sm:$0xff]  ;;  %v1109_v12 = vmax.f32 %v5512_v15, %v1077_v55  ;;  %v1142_v55 = vld [vmem:[#allocation2 + $0x9c] sm:$0xff]  ;;  %4394 = vmatmul.mubr.msk.bf16.gmra.mxu0 %vm313_vm2, %v6938_v17  ;;  %v1320_v16 = vmax.f32 %v5540_v59, %v5562_v9 }
 0x167   : > { %v1141_v21 = vld [vmem:[#allocation2 + $0x94] sm:$0xff]  ;;  %v1046_v13 = vmax.f32 %v982_v49, %v1014_v2  ;;  %v2252_v33 = vmax.f32 %v2188_v0, %v2220_v48  ;;  %4397 = vmatprep.mubr.msk.bf16.mxu0 %vm313_vm2, %v6939_v28  ;;  %v870_v48 = vpack.c.bf16 %v5558_v38, %v5336_v36  ;;  %2285 = vst.msk [vmem:[#allocation3 + $0x48] sm:$0xff] %vm313_vm2, %v2253_v53 }
 0x168   : > { %v934_v25 = vld [vmem:[#allocation2 + $0x158] sm:$0xff]  ;;  %v1999_v27 = vld [vmem:[#allocation2 + $0x50] sm:$0xff]  ;;  %v1173_v52 = vmax.f32 %v1109_v12, %v1141_v21 }
 0x169   : > { %v966_v51 = vld [vmem:[#allocation2 + $0x159] sm:$0xff]  ;;  %v5637_v22 = vld [vmem:[#allocation3 + $0x90] sm:$0xff]  ;;  %2284 = vst.msk [vmem:[#allocation3 + $0x40] sm:$0xff] %vm313_vm2, %v2252_v33 }
 0x16a   : > { %v1078_v15 = vld [vmem:[#allocation2 + $0x9b] sm:$0xff]  ;;  %v998_v54 = vmax.f32 %v934_v25, %v966_v51  ;;  %v1093_v20 = vld [vmem:[#allocation2 + $0x153] sm:$0xff]  ;;  %1206 = vst.msk [vmem:[#allocation3 + $0x80] sm:$0xff] %vm313_vm2, %v1173_v52  ;;  %v2158_v12 = vld [vmem:[#allocation2 + $0x4b] sm:$0xff]  ;;  %v1309_v30 = vmax.f32 %v5637_v22, %v5549_v61 }
 0x16b   : > { %v1110_v8 = vmax.f32 %v1046_v13, %v1078_v15  ;;  %v1030_v5 = vld [vmem:[#allocation2 + $0x15a] sm:$0xff]  ;;  %v1125_v49 = vmax.f32 %v5520_v60, %v1093_v20  ;;  %v2031_v2 = vld [vmem:[#allocation2 + $0x51] sm:$0xff]  ;;  %v2190_v53 = vmax.f32 %v2126_v39, %v2158_v12  ;;  %v2313_v12 = vld [vmem:[#allocation3 + $0x8] sm:$0xff]  ;;  %v6940_v39 = vpack.c.bf16 %v5144_v40, %v5123_v10 }
 0x16c   : > { %v1062_v60 = vmax.f32 %v998_v54, %v1030_v5  ;;  %v1157_v43 = vld [vmem:[#allocation2 + $0x154] sm:$0xff]  ;;  %v2063_v45 = vmax.f32 %v1999_v27, %v2031_v2  ;;  %v1318_v54 = vmax.f32 %v5532_v7, %v5540_v59  ;;  %v2312_v13 = vld [vmem:[#allocation3] sm:$0xff]  ;;  %v1373_v27 = vmax.f32 %v1309_v30, %v5560_v31 }
 0x16d   : > { %v1174_v21 = vmax.f32 %v1110_v8, %v1142_v55  ;;  %v1094_v20 = vld [vmem:[#allocation2 + $0x15b] sm:$0xff]  ;;  %v2095_v0 = vld [vmem:[#allocation2 + $0x52] sm:$0xff]  ;;  %v1189_v3 = vmax.f32 %v1125_v49, %v1157_v43  ;;  %v1445_v55 = vmax.f32 %v5626_v47, %v5562_v9 }
 0x16e   : > { %v1126_v25 = vmax.f32 %v1062_v60, %v1094_v20  ;;  %v5654_v51 = vld [vmem:[#allocation3 + $0x98] sm:$0xff]  ;;  %v2127_v15 = vmax.f32 %v2063_v45, %v2095_v0  ;;  %v5657_v17 = vld [vmem:[#allocation3 + $0xd0] sm:$0xff]  ;;  %v5659_v52 = vld [vmem:[#allocation3 + $0xe0] sm:$0xff]  ;;  %v1438_v45 = vmax.f32 %v1373_v27, %v5610_v29  ;;  %4398 = vmatmul.mubr.msk.bf16.gmra.mxu0 %vm313_vm2, %v6940_v39  ;;  %v5692_v27 = vmax.f32 %v1318_v54, %v5562_v9 }
 0x16f   : > { %1207 = vst.msk [vmem:[#allocation3 + $0x88] sm:$0xff] %vm313_vm2, %v1174_v21  ;;  %v2159_v33 = vld [vmem:[#allocation2 + $0x53] sm:$0xff]  ;;  %v1310_v8 = vmax.f32 %v5654_v51, %v5483_v26  ;;  %v1440_v5 = vmax.f32 %v1375_v4, %v5657_v17  ;;  %v1377_v49 = vmax.f32 %v1313_v11, %v5657_v17  ;;  %1222 = vst.msk [vmem:[#allocation3 + $0x100] sm:$0xff] %vm313_vm2, %v1189_v3 }
 0x170   : > { %v5669_v28 = vld [vmem:[#allocation3 + $0x10] sm:$0xff]  ;;  %v1190_v2 = vmax.f32 %v1126_v25, %v1158_v24  ;;  %v2191_v60 = vmax.f32 %v2127_v15, %v2159_v33  ;;  %v5674_v30 = vld [vmem:[#allocation3 + $0x18] sm:$0xff]  ;;  %v5687_v25 = vmax.f32 %v1438_v45, %v5657_v17  ;;  %v6941_v33 = vpack.c.bf16 %v5278_v62, %v5223_v44 }
 0x171   : > { %v2222_v43 = vld [vmem:[#allocation2 + $0x4c] sm:$0xff]  ;;  %v2223_v21 = vld [vmem:[#allocation2 + $0x54] sm:$0xff]  ;;  %v1374_v4 = vmax.f32 %v1310_v8, %v5496_v46  ;;  %v5678_v11 = vmax.f32 %v1440_v5, %v5659_v52  ;;  %v1442_v0 = vmax.f32 %v1377_v49, %v5659_v52  ;;  %v5695_v24 = vmax.f32 %v2312_v13, %v5669_v28  ;;  %v1461_v10 = vld [vmem:[#allocation3 + $0x80] sm:$0xff] }
 0x172   : > { %v2254_v20 = vmax.f32 %v2190_v53, %v2222_v43  ;;  %1223 = vst.msk [vmem:[#allocation3 + $0x108] sm:$0xff] %vm313_vm2, %v1190_v2  ;;  %v2255_v3 = vmax.f32 %v2191_v60, %v2223_v21  ;;  %v5689_v15 = vld [vmem:[#allocation3 + $0xf0] sm:$0xff]  ;;  %4401 = vmatprep.mubr.msk.bf16.mxu0 %vm313_vm2, %v6941_v33  ;;  %v1315_v54 = vmax.f32 %v5610_v29, %v5657_v17  ;;  %1978 = vst.msk [vmem:[#allocation2 + $0xda] sm:$0xff] %vm313_vm2, %v5687_v25 }
 0x173   : > { %v1439_v40 = vmax.f32 %v1374_v4, %v5518_v56  ;;  %1980 = vst.msk [vmem:[#allocation2 + $0xf2] sm:$0xff] %vm313_vm2, %v5678_v11  ;;  %v5706_v53 = vmax.f32 %v1442_v0, %v5689_v15  ;;  %v5711_v13 = vmax.f32 %v2313_v12, %v5674_v30  ;;  %v1493_v44 = vmax.f32 %v1428_v35, %v1461_v10 }
 0x174   : > { %2286 = vst.msk [vmem:[#allocation3 + $0x50] sm:$0xff] %vm313_vm2, %v2254_v20  ;;  %v1430_v62 = vmax.f32 %v5608_v50, %v1461_v10  ;;  %2287 = vst.msk [vmem:[#allocation3 + $0x58] sm:$0xff] %vm313_vm2, %v2255_v3  ;;  %v1367_v8 = vmax.f32 %v1303_v1, %v1461_v10  ;;  %v1305_v5 = vmax.f32 %v5474_v41, %v1461_v10 }
 0x175   : > { %v1307_v49 = vmax.f32 %v1461_v10, %v5637_v22  ;;  %v5726_v2 = vmax.f32 %v1439_v40, %v5532_v7  ;;  %1982 = vst.msk [vmem:[#allocation2 + $0x10a] sm:$0xff] %vm313_vm2, %v5706_v53  ;;  %v1379_v18 = vmax.f32 %v1315_v54, %v5659_v52  ;;  %v1317_v35 = vmax.f32 %v5657_v17, %v5659_v52 }
 0x176   : > { %v1462_v23 = vld [vmem:[#allocation3 + $0x88] sm:$0xff]  ;;  %1968 = vst.msk [vmem:[#allocation2 + $0x62] sm:$0xff] %vm313_vm2, %v1493_v44  ;;  %v1495_v41 = vmax.f32 %v1430_v62, %v5637_v22  ;;  %v1432_v1 = vmax.f32 %v1367_v8, %v5637_v22  ;;  %v1369_v50 = vmax.f32 %v1305_v5, %v5637_v22  ;;  %v1527_v7 = vpack.c.bf16 %v5567_v34, %v5678_v11  ;;  %v5758_v39 = vld [vmem:[#allocation3 + $0x100] sm:$0xff] }
 0x177   : > { %v6942_v60 = vmax.f32 %v5593_v19, %v5504_v58  ;;  %v1431_v45 = vmax.f32 %v5623_v32, %v1462_v23  ;;  %v6943_v17 = vmax.f32 %v5477_v6, %v5504_v58  ;;  %v1306_v21 = vmax.f32 %v5504_v58, %v1462_v23  ;;  %1979 = vst.msk [vmem:[#allocation2 + $0xe2] sm:$0xff] %vm313_vm2, %v5726_v2 }
 0x178   : > { %1970 = vst.msk [vmem:[#allocation2 + $0x7a] sm:$0xff] %vm313_vm2, %v1495_v41  ;;  %v1497_v22 = vmax.f32 %v1432_v1, %v5549_v61  ;;  %v1434_v20 = vmax.f32 %v1369_v50, %v5549_v61  ;;  %v1308_v19 = vmax.f32 %v1462_v23, %v5654_v51  ;;  %v1371_v4 = vmax.f32 %v1307_v49, %v5549_v61 }
 0x179   : > { %v1494_v43 = vmax.f32 %v6942_v60, %v1462_v23  ;;  %v1368_v12 = vmax.f32 %v6943_v17, %v1462_v23  ;;  %v1496_v6 = vmax.f32 %v1431_v45, %v5654_v51  ;;  %v1370_v0 = vmax.f32 %v1306_v21, %v5654_v51  ;;  %v5771_v54 = vld [vmem:[#allocation3 + $0x108] sm:$0xff]  ;;  %v2106_v45 = vld [vmem:[#allocation2 + $0xda] sm:$0xff] }
 0x17a   : > { %v6944_v3 = vpack.c.bf16 %v5244_v14, %v5207_v57  ;;  %1972 = vst.msk [vmem:[#allocation2 + $0x92] sm:$0xff] %vm313_vm2, %v1497_v22  ;;  %v5766_v61 = vmax.f32 %v1434_v20, %v5560_v31  ;;  %v1372_v33 = vmax.f32 %v1308_v19, %v5483_v26  ;;  %v1436_v10 = vmax.f32 %v1371_v4, %v5560_v31  ;;  %v2042_v31 = vld [vmem:[#allocation2 + $0xd9] sm:$0xff]  ;;  %v5792_v49 = vld [vmem:[#allocation2 + $0xf1] sm:$0xff] }
 0x17b   : > { %v1521_v32 = vpack.c.bf16 %v1494_v43, %v1493_v44  ;;  %1969 = vst.msk [vmem:[#allocation2 + $0x6a] sm:$0xff] %vm313_vm2, %v1494_v43  ;;  %v1433_v58 = vmax.f32 %v1368_v12, %v5654_v51  ;;  %v1444_v40 = vmax.f32 %v1379_v18, %v5689_v15  ;;  %v1522_v57 = vpack.c.bf16 %v1496_v6, %v1495_v41  ;;  %v2010_v44 = vld [vmem:[#allocation2 + $0xd8] sm:$0xff]  ;;  %v5813_v12 = vld [vmem:[#allocation3 + $0x110] sm:$0xff] }
 0x17c   : > { %4402 = vmatmul.mubr.msk.bf16.gmra.mxu0 %vm313_vm2, %v6944_v3  ;;  %1971 = vst.msk [vmem:[#allocation2 + $0x82] sm:$0xff] %vm313_vm2, %v1496_v6  ;;  %v1435_v51 = vmax.f32 %v1370_v0, %v5483_v26  ;;  %v2013_v62 = vld [vmem:[#allocation2 + $0xf8] sm:$0xff]  ;;  %1974 = vst.msk [vmem:[#allocation2 + $0xaa] sm:$0xff] %vm313_vm2, %v5766_v61  ;;  %v1437_v8 = vmax.f32 %v1372_v33, %v5496_v46  ;;  %v5785_v5 = vmax.f32 %v1436_v10, %v5610_v29 }
 0x17d   : > { %4351 = vmatprep.mubr.msk.bf16.mxu1 %vm313_vm2, %v1521_v32  ;;  %4405 = vmatprep.mubr.msk.bf16.mxu0 %vm313_vm2, %v870_v48  ;;  %v1498_v14 = vmax.f32 %v1433_v58, %v5483_v26  ;;  %v2074_v36 = vmax.f32 %v2010_v44, %v2042_v31  ;;  %v5788_v38 = vmax.f32 %v1444_v40, %v5758_v39  ;;  %v5790_v48 = vld [vmem:[#allocation2 + $0xf0] sm:$0xff]  ;;  %v2045_v26 = vld [vmem:[#allocation2 + $0xf9] sm:$0xff]  ;;  %v2032_v41 = vld [vmem:[#allocation2 + $0x61] sm:$0xff] }
 0x17e   : > { %4352 = vmatmul.mubr.msk.bf16.gmra.mxu1 %vm313_vm2, %v1522_v57  ;;  %v2000_v23 = vld [vmem:[#allocation2 + $0x60] sm:$0xff]  ;;  %v5797_v1 = vmax.f32 %v1435_v51, %v5496_v46  ;;  %v5803_v29 = vmax.f32 %v1445_v55, %v5771_v54  ;;  %v1381_v50 = vmax.f32 %v1317_v35, %v5689_v15  ;;  %v5807_v43 = vmax.f32 %v1437_v8, %v5518_v56  ;;  %v5835_v10 = vld [vmem:[#allocation3 + $0x118] sm:$0xff] }
 0x17f   : > { %v1523_v18 = vpack.c.bf16 %v1498_v14, %v1497_v22  ;;  %1973 = vst.msk [vmem:[#allocation2 + $0x9a] sm:$0xff] %vm313_vm2, %v1498_v14  ;;  %v2064_v60 = vmax.f32 %v2000_v23, %v2032_v41  ;;  %1976 = vst.msk [vmem:[#allocation2 + $0xc2] sm:$0xff] %vm313_vm2, %v5785_v5  ;;  %v2077_v46 = vmax.f32 %v2013_v62, %v2045_v26  ;;  %v2109_v17 = vld [vmem:[#allocation2 + $0xfa] sm:$0xff]  ;;  %v2096_v55 = vld [vmem:[#allocation2 + $0x62] sm:$0xff] }
 0x180   : > { %1984 = vst.msk [vmem:[#allocation2 + $0x122] sm:$0xff] %vm313_vm2, %v5788_v38  ;;  %v1319_v47 = vmax.f32 %v5659_v52, %v5689_v15  ;;  %1975 = vst.msk [vmem:[#allocation2 + $0xb2] sm:$0xff] %vm313_vm2, %v5797_v1  ;;  %v2002_v56 = vld [vmem:[#allocation2 + $0x78] sm:$0xff]  ;;  %v1526_v21 = vpack.c.bf16 %v5726_v2, %v5687_v25  ;;  %v5822_v22 = vmax.f32 %v2074_v36, %v2106_v45  ;;  %v5833_v3 = vld [vmem:[#allocation2 + $0xe0] sm:$0xff] }
 0x181   : > { %4355 = vmatprep.mubr.msk.bf16.mxu1 %vm313_vm2, %v1523_v18  ;;  %v2034_v35 = vld [vmem:[#allocation2 + $0x79] sm:$0xff]  ;;  %1985 = vst.msk [vmem:[#allocation2 + $0x12a] sm:$0xff] %vm313_vm2, %v5803_v29  ;;  %v2076_v20 = vmax.f32 %v5790_v48, %v5792_v49  ;;  %v1446_v19 = vmax.f32 %v1381_v50, %v5758_v39  ;;  %v2128_v6 = vmax.f32 %v2064_v60, %v2096_v55  ;;  %1977 = vst.msk [vmem:[#allocation2 + $0xca] sm:$0xff] %vm313_vm2, %v5807_v43  ;;  %v5839_v44 = vld [vmem:[#allocation2 + $0xe1] sm:$0xff] }
 0x182   : > { %v2173_v52 = vld [vmem:[#allocation2 + $0xfb] sm:$0xff]  ;;  %v2001_v4 = vld [vmem:[#allocation2 + $0x68] sm:$0xff]  ;;  %v1524_v58 = vpack.c.bf16 %v5797_v1, %v5766_v61  ;;  %v2066_v0 = vmax.f32 %v2002_v56, %v2034_v35  ;;  %v2141_v33 = vmax.f32 %v2077_v46, %v2109_v17  ;;  %v1525_v51 = vpack.c.bf16 %v5807_v43, %v5785_v5 }
 0x183   : > { %v2033_v32 = vld [vmem:[#allocation2 + $0x69] sm:$0xff]  ;;  %v2098_v14 = vld [vmem:[#allocation2 + $0x7a] sm:$0xff]  ;;  %v1447_v61 = vmax.f32 %v5692_v27, %v5771_v54  ;;  %v5844_v62 = vmax.f32 %v1446_v19, %v5813_v12  ;;  %v6945_v18 = vpack.c.bf16 %v5491_v37, %v5315_v63  ;;  %v1383_v50 = vmax.f32 %v1319_v47, %v5758_v39 }
 0x184   : > { %v2065_v40 = vmax.f32 %v2001_v4, %v2033_v32  ;;  %v2160_v57 = vld [vmem:[#allocation2 + $0x63] sm:$0xff]  ;;  %v2130_v41 = vmax.f32 %v2066_v0, %v2098_v14  ;;  %v2205_v1 = vmax.f32 %v2141_v33, %v2173_v52  ;;  %v2161_v43 = vld [vmem:[#allocation2 + $0x6b] sm:$0xff]  ;;  %v2162_v17 = vld [vmem:[#allocation2 + $0x7b] sm:$0xff]  ;;  %v1384_v63 = vmax.f32 %v1320_v16, %v5771_v54 }
 0x185   : > { %v2237_v31 = vld [vmem:[#allocation2 + $0xfc] sm:$0xff]  ;;  %v2097_v36 = vld [vmem:[#allocation2 + $0x6a] sm:$0xff]  ;;  %v2192_v26 = vmax.f32 %v2128_v6, %v2160_v57  ;;  %4406 = vmatmul.mubr.msk.bf16.gmra.mxu0 %vm313_vm2, %v6945_v18  ;;  %v5856_v55 = vmax.f32 %v1447_v61, %v5835_v10  ;;  %1986 = vst.msk [vmem:[#allocation2 + $0x13a] sm:$0xff] %vm313_vm2, %v5844_v62  ;;  %v1448_v32 = vmax.f32 %v1383_v50, %v5813_v12 }
 0x186   : > { %v5846_v8 = vld [vmem:[#allocation3 + $0x120] sm:$0xff]  ;;  %v5853_v60 = vld [vmem:[#allocation3 + $0x128] sm:$0xff]  ;;  %v2129_v27 = vmax.f32 %v2065_v40, %v2097_v36  ;;  %v2194_v35 = vmax.f32 %v2130_v41, %v2162_v17  ;;  %v2004_v19 = vld [vmem:[#allocation2 + $0x90] sm:$0xff]  ;;  %v2269_v4 = vmax.f32 %v2205_v1, %v2237_v31  ;;  %4356 = vmatmul.mubr.msk.bf16.gmra.mxu1 %vm313_vm2, %v1524_v58  ;;  %v2075_v59 = vmax.f32 %v5833_v3, %v5839_v44 }
 0x187   : > { %v2003_v23 = vld [vmem:[#allocation2 + $0x80] sm:$0xff]  ;;  %v2005_v33 = vld [vmem:[#allocation2 + $0x98] sm:$0xff]  ;;  %1987 = vst.msk [vmem:[#allocation2 + $0x142] sm:$0xff] %vm313_vm2, %v5856_v55  ;;  %v1449_v16 = vmax.f32 %v1384_v63, %v5835_v10  ;;  %v2225_v14 = vld [vmem:[#allocation2 + $0x6c] sm:$0xff]  ;;  %4359 = vmatprep.mubr.msk.bf16.mxu1 %vm313_vm2, %v1525_v51  ;;  %v5877_v3 = vmax.f32 %v1448_v32, %v5846_v8  ;;  %v1321_v51 = vmax.f32 %v5689_v15, %v5758_v39 }
 0x188   : > { %v2035_v5 = vld [vmem:[#allocation2 + $0x81] sm:$0xff]  ;;  %v2193_v6 = vmax.f32 %v2129_v27, %v2161_v43  ;;  %v2036_v40 = vld [vmem:[#allocation2 + $0x91] sm:$0xff]  ;;  %v2037_v57 = vld [vmem:[#allocation2 + $0x99] sm:$0xff]  ;;  %2301 = vst.msk [vmem:[#allocation3 + $0xc8] sm:$0xff] %vm313_vm2, %v2269_v4 }
 0x189   : > { %v2224_v45 = vld [vmem:[#allocation2 + $0x64] sm:$0xff]  ;;  %v2067_v46 = vmax.f32 %v2003_v23, %v2035_v5  ;;  %v2226_v52 = vld [vmem:[#allocation2 + $0x7c] sm:$0xff]  ;;  %v2068_v58 = vmax.f32 %v2004_v19, %v2036_v40  ;;  %v5881_v23 = vld [vmem:[#allocation3 + $0x30] sm:$0xff]  ;;  %v5884_v43 = vmax.f32 %v1449_v16, %v5853_v60  ;;  %1988 = vst.msk [vmem:[#allocation2 + $0x152] sm:$0xff] %vm313_vm2, %v5877_v3 }
 0x18a   : > { %v5864_v37 = vld [vmem:[#allocation3 + $0x20] sm:$0xff]  ;;  %v2256_v47 = vmax.f32 %v2192_v26, %v2224_v45  ;;  %v2258_v36 = vmax.f32 %v2194_v35, %v2226_v52  ;;  %v2069_v26 = vmax.f32 %v2005_v33, %v2037_v57  ;;  %v5879_v44 = vld [vmem:[#allocation3 + $0x28] sm:$0xff]  ;;  %v2257_v5 = vmax.f32 %v2193_v6, %v2225_v14  ;;  %v2100_v1 = vld [vmem:[#allocation2 + $0x92] sm:$0xff] }
 0x18b   : > { %v2099_v56 = vld [vmem:[#allocation2 + $0x82] sm:$0xff]  ;;  %v2101_v50 = vld [vmem:[#allocation2 + $0x9a] sm:$0xff]  ;;  %v2132_v45 = vmax.f32 %v2068_v58, %v2100_v1  ;;  %v2007_v63 = vld [vmem:[#allocation2 + $0xb0] sm:$0xff]  ;;  %v2440_v52 = vmax.f32 %v5695_v24, %v5864_v37  ;;  %1989 = vst.msk [vmem:[#allocation2 + $0x15a] sm:$0xff] %vm313_vm2, %v5884_v43 }
 0x18c   : > { %v2131_v0 = vmax.f32 %v2067_v46, %v2099_v56  ;;  %2288 = vst.msk [vmem:[#allocation3 + $0x60] sm:$0xff] %vm313_vm2, %v2256_v47  ;;  %v2163_v31 = vld [vmem:[#allocation2 + $0x83] sm:$0xff]  ;;  %v2164_v27 = vld [vmem:[#allocation2 + $0x93] sm:$0xff]  ;;  %2290 = vst.msk [vmem:[#allocation3 + $0x70] sm:$0xff] %vm313_vm2, %v2258_v36  ;;  %v2133_v46 = vmax.f32 %v2069_v26, %v2101_v50  ;;  %v1322_v56 = vmax.f32 %v5562_v9, %v5771_v54 }
 0x18d   : > { %v2227_v61 = vld [vmem:[#allocation2 + $0x84] sm:$0xff]  ;;  %v5893_v35 = vld [vmem:[#allocation3 + $0x130] sm:$0xff]  ;;  %2289 = vst.msk [vmem:[#allocation3 + $0x68] sm:$0xff] %vm313_vm2, %v2257_v5  ;;  %v2165_v39 = vld [vmem:[#allocation2 + $0x9b] sm:$0xff]  ;;  %v2196_v40 = vmax.f32 %v2132_v45, %v2164_v27  ;;  %v2441_v5 = vmax.f32 %v5711_v13, %v5879_v44 }
 0x18e   : > { %v2107_v18 = vld [vmem:[#allocation2 + $0xe2] sm:$0xff]  ;;  %v2195_v41 = vmax.f32 %v2131_v0, %v2163_v31  ;;  %v2228_v19 = vld [vmem:[#allocation2 + $0x94] sm:$0xff]  ;;  %v1385_v0 = vmax.f32 %v1321_v51, %v5813_v12  ;;  %v2197_v57 = vmax.f32 %v2133_v46, %v2165_v39  ;;  %v2102_v31 = vld [vmem:[#allocation2 + $0xaa] sm:$0xff]  ;;  %4360 = vmatmul.mubr.msk.bf16.gmra.mxu1 %vm313_vm2, %v1526_v21 }
 0x18f   : > { %v2006_v17 = vld [vmem:[#allocation2 + $0xa8] sm:$0xff]  ;;  %v2039_v4 = vld [vmem:[#allocation2 + $0xb1] sm:$0xff]  ;;  %v5898_v6 = vmax.f32 %v2075_v59, %v2107_v18  ;;  %v5907_v33 = vld [vmem:[#allocation3 + $0x40] sm:$0xff]  ;;  %v1386_v59 = vmax.f32 %v1322_v56, %v5835_v10  ;;  %v2260_v1 = vmax.f32 %v2196_v40, %v2228_v19  ;;  %4363 = vmatprep.mubr.msk.bf16.mxu1 %vm313_vm2, %v1527_v7 }
 0x190   : > { %v2038_v47 = vld [vmem:[#allocation2 + $0xa9] sm:$0xff]  ;;  %v2259_v15 = vmax.f32 %v2195_v41, %v2227_v61  ;;  %v5903_v9 = vld [vmem:[#allocation3 + $0x138] sm:$0xff]  ;;  %v2071_v14 = vmax.f32 %v2007_v63, %v2039_v4  ;;  %v2008_v26 = vld [vmem:[#allocation2 + $0xc0] sm:$0xff]  ;;  %v1450_v18 = vmax.f32 %v1385_v0, %v5846_v8  ;;  %v2504_v41 = vmax.f32 %v2440_v52, %v5881_v23 }
 0x191   : > { %v2070_v32 = vmax.f32 %v2006_v17, %v2038_v47  ;;  %v5905_v54 = vld [vmem:[#allocation3 + $0x38] sm:$0xff]  ;;  %v2166_v61 = vld [vmem:[#allocation2 + $0xab] sm:$0xff]  ;;  %v2040_v51 = vld [vmem:[#allocation2 + $0xc1] sm:$0xff]  ;;  %v1451_v10 = vmax.f32 %v1386_v59, %v5853_v60  ;;  %2292 = vst.msk [vmem:[#allocation3 + $0x80] sm:$0xff] %vm313_vm2, %v2260_v1 }
 0x192   : > { %v2229_v16 = vld [vmem:[#allocation2 + $0x9c] sm:$0xff]  ;;  %2291 = vst.msk [vmem:[#allocation3 + $0x78] sm:$0xff] %vm313_vm2, %v2259_v15  ;;  %v2103_v36 = vld [vmem:[#allocation2 + $0xb2] sm:$0xff]  ;;  %v2009_v12 = vld [vmem:[#allocation2 + $0xc8] sm:$0xff]  ;;  %v2072_v56 = vmax.f32 %v2008_v26, %v2040_v51  ;;  %v5923_v39 = vmax.f32 %v1450_v18, %v5893_v35  ;;  %v5936_v0 = vmax.f32 %v2504_v41, %v5907_v33  ;;  %v1528_v51 = vpack.c.bf16 %v5586_v42, %v5706_v53 }
 0x193   : > { %v2134_v58 = vmax.f32 %v2070_v32, %v2102_v31  ;;  %v2261_v50 = vmax.f32 %v2197_v57, %v2229_v16  ;;  %v2135_v27 = vmax.f32 %v2071_v14, %v2103_v36  ;;  %v2041_v45 = vld [vmem:[#allocation2 + $0xc9] sm:$0xff]  ;;  %v2167_v17 = vld [vmem:[#allocation2 + $0xb3] sm:$0xff]  ;;  %v2170_v21 = vld [vmem:[#allocation2 + $0xdb] sm:$0xff]  ;;  %v5932_v4 = vmax.f32 %v1451_v10, %v5903_v9 }
 0x194   : > { %v5916_v46 = vld [vmem:[#allocation3 + $0x48] sm:$0xff]  ;;  %v2073_v15 = vmax.f32 %v2009_v12, %v2041_v45  ;;  %v2505_v32 = vmax.f32 %v2441_v5, %v5905_v54  ;;  %v2231_v40 = vld [vmem:[#allocation2 + $0xb4] sm:$0xff]  ;;  %v2202_v34 = vmax.f32 %v5822_v22, %v2170_v21  ;;  %1990 = vst.msk [vmem:[#allocation2 + $0x16a] sm:$0xff] %vm313_vm2, %v5923_v39  ;;  %2862 = vst.msk [vmem:[#allocation2 + $0x2] sm:$0xff] %vm313_vm2, %v5936_v0 }
 0x195   : > { %v2198_v63 = vmax.f32 %v2134_v58, %v2166_v61  ;;  %v2230_v47 = vld [vmem:[#allocation2 + $0xac] sm:$0xff]  ;;  %v2104_v52 = vld [vmem:[#allocation2 + $0xc2] sm:$0xff]  ;;  %2293 = vst.msk [vmem:[#allocation3 + $0x88] sm:$0xff] %vm313_vm2, %v2261_v50  ;;  %v2199_v19 = vmax.f32 %v2135_v27, %v2167_v17  ;;  %1991 = vst.msk [vmem:[#allocation2 + $0x172] sm:$0xff] %vm313_vm2, %v5932_v4  ;;  %v1529_v42 = vpack.c.bf16 %v5803_v29, %v5788_v38 }
 0x196   : > { %v2105_v25 = vld [vmem:[#allocation2 + $0xca] sm:$0xff]  ;;  %v2136_v16 = vmax.f32 %v2072_v56, %v2104_v52  ;;  %v2234_v58 = vld [vmem:[#allocation2 + $0xdc] sm:$0xff]  ;;  %v2108_v26 = vld [vmem:[#allocation2 + $0xf2] sm:$0xff]  ;;  %v5945_v18 = vmax.f32 %v2505_v32, %v5916_v46  ;;  %4364 = vmatmul.mubr.msk.bf16.gmra.mxu1 %vm313_vm2, %v1528_v51 }
 0x197   : > { %v2168_v2 = vld [vmem:[#allocation2 + $0xc3] sm:$0xff]  ;;  %v2262_v57 = vmax.f32 %v2198_v63, %v2230_v47  ;;  %v2137_v14 = vmax.f32 %v2073_v15, %v2105_v25  ;;  %v2169_v31 = vld [vmem:[#allocation2 + $0xcb] sm:$0xff]  ;;  %v2263_v11 = vmax.f32 %v2199_v19, %v2231_v40  ;;  %v2172_v12 = vld [vmem:[#allocation2 + $0xf3] sm:$0xff]  ;;  %v2266_v1 = vmax.f32 %v2202_v34, %v2234_v58  ;;  %4367 = vmatprep.mubr.msk.bf16.mxu1 %vm313_vm2, %v1529_v42 }
 0x198   : > { %v2171_v61 = vld [vmem:[#allocation2 + $0xe3] sm:$0xff]  ;;  %v2233_v59 = vld [vmem:[#allocation2 + $0xcc] sm:$0xff]  ;;  %v2200_v22 = vmax.f32 %v2136_v16, %v2168_v2  ;;  %v2236_v10 = vld [vmem:[#allocation2 + $0xf4] sm:$0xff]  ;;  %2863 = vst.msk [vmem:[#allocation2 + $0xa] sm:$0xff] %vm313_vm2, %v5945_v18  ;;  %v1532_v42 = vpack.c.bf16 %v5932_v4, %v5923_v39 }
 0x199   : > { %v2232_v7 = vld [vmem:[#allocation2 + $0xc4] sm:$0xff]  ;;  %v2203_v36 = vmax.f32 %v5898_v6, %v2171_v61  ;;  %2294 = vst.msk [vmem:[#allocation3 + $0x90] sm:$0xff] %vm313_vm2, %v2262_v57  ;;  %v2201_v5 = vmax.f32 %v2137_v14, %v2169_v31  ;;  %v2140_v6 = vmax.f32 %v2076_v20, %v2108_v26  ;;  %v2015_v27 = vld [vmem:[#allocation2 + $0x110] sm:$0xff]  ;;  %2295 = vst.msk [vmem:[#allocation3 + $0x98] sm:$0xff] %vm313_vm2, %v2263_v11 }
 0x19a   : > { %v2235_v41 = vld [vmem:[#allocation2 + $0xe4] sm:$0xff]  ;;  %v2047_v63 = vld [vmem:[#allocation2 + $0x111] sm:$0xff]  ;;  %v2264_v47 = vmax.f32 %v2200_v22, %v2232_v7  ;;  %2298 = vst.msk [vmem:[#allocation3 + $0xb0] sm:$0xff] %vm313_vm2, %v2266_v1 }
 0x19b   : > { %v2014_v50 = vld [vmem:[#allocation2 + $0x108] sm:$0xff]  ;;  %v2267_v45 = vmax.f32 %v2203_v36, %v2235_v41  ;;  %v2265_v56 = vmax.f32 %v2201_v5, %v2233_v59  ;;  %v2204_v48 = vmax.f32 %v2140_v6, %v2172_v12  ;;  %v2016_v52 = vld [vmem:[#allocation2 + $0x120] sm:$0xff]  ;;  %v2079_v53 = vmax.f32 %v2015_v27, %v2047_v63  ;;  %v2111_v32 = vld [vmem:[#allocation2 + $0x112] sm:$0xff] }
 0x19c   : > { %v2046_v17 = vld [vmem:[#allocation2 + $0x109] sm:$0xff]  ;;  %v2048_v25 = vld [vmem:[#allocation2 + $0x121] sm:$0xff]  ;;  %2296 = vst.msk [vmem:[#allocation3 + $0xa0] sm:$0xff] %vm313_vm2, %v2264_v47  ;;  %v2175_v61 = vld [vmem:[#allocation2 + $0x113] sm:$0xff]  ;;  %v2378_v5 = vmax.f32 %v5669_v28, %v5864_v37 }
 0x19d   : > { %v2078_v49 = vmax.f32 %v2014_v50, %v2046_v17  ;;  %v2110_v20 = vld [vmem:[#allocation2 + $0x10a] sm:$0xff]  ;;  %2299 = vst.msk [vmem:[#allocation3 + $0xb8] sm:$0xff] %vm313_vm2, %v2267_v45  ;;  %2297 = vst.msk [vmem:[#allocation3 + $0xa8] sm:$0xff] %vm313_vm2, %v2265_v56  ;;  %v2268_v21 = vmax.f32 %v2204_v48, %v2236_v10  ;;  %v2080_v57 = vmax.f32 %v2016_v52, %v2048_v25  ;;  %v2112_v31 = vld [vmem:[#allocation2 + $0x122] sm:$0xff] }
 0x19e   : > { %v2174_v15 = vld [vmem:[#allocation2 + $0x10b] sm:$0xff]  ;;  %v2143_v14 = vmax.f32 %v2079_v53, %v2111_v32  ;;  %v2176_v29 = vld [vmem:[#allocation2 + $0x123] sm:$0xff]  ;;  %v2239_v7 = vld [vmem:[#allocation2 + $0x114] sm:$0xff]  ;;  %v2379_v45 = vmax.f32 %v5674_v30, %v5879_v44  ;;  %v1530_v56 = vpack.c.bf16 %v5856_v55, %v5844_v62  ;;  %v1531_v30 = vpack.c.bf16 %v5884_v43, %v5877_v3 }
 0x19f   : > { %v2017_v19 = vld [vmem:[#allocation2 + $0x128] sm:$0xff]  ;;  %v2142_v40 = vmax.f32 %v2078_v49, %v2110_v20  ;;  %2300 = vst.msk [vmem:[#allocation3 + $0xc0] sm:$0xff] %vm313_vm2, %v2268_v21  ;;  %v2144_v59 = vmax.f32 %v2080_v57, %v2112_v31  ;;  %v2018_v22 = vld [vmem:[#allocation2 + $0x138] sm:$0xff]  ;;  %v2019_v27 = vld [vmem:[#allocation2 + $0x140] sm:$0xff]  ;;  %v2600_v32 = vpack.c.bf16 %v5945_v18, %v5936_v0  ;;  %v5985_v3 = vmax.f32 %v2378_v5, %v5881_v23 }
 0x1a0   : > { %v2049_v2 = vld [vmem:[#allocation2 + $0x129] sm:$0xff]  ;;  %v2207_v58 = vmax.f32 %v2143_v14, %v2175_v61  ;;  %v2021_v17 = vld [vmem:[#allocation2 + $0x158] sm:$0xff]  ;;  %v2051_v20 = vld [vmem:[#allocation2 + $0x141] sm:$0xff]  ;;  %4368 = vmatmul.mubr.msk.bf16.gmra.mxu1 %vm313_vm2, %v1530_v56  ;;  %v5988_v43 = vmax.f32 %v2379_v45, %v5905_v54 }
 0x1a1   : > { %v2081_v16 = vmax.f32 %v2017_v19, %v2049_v2  ;;  %v2113_v38 = vld [vmem:[#allocation2 + $0x12a] sm:$0xff]  ;;  %v2206_v34 = vmax.f32 %v2142_v40, %v2174_v15  ;;  %v2208_v1 = vmax.f32 %v2144_v59, %v2176_v29  ;;  %v2050_v47 = vld [vmem:[#allocation2 + $0x139] sm:$0xff]  ;;  %v2083_v19 = vmax.f32 %v2019_v27, %v2051_v20  ;;  %4371 = vmatprep.mubr.msk.bf16.mxu1 %vm313_vm2, %v1531_v30 }
 0x1a2   : > { %v2238_v11 = vld [vmem:[#allocation2 + $0x10c] sm:$0xff]  ;;  %v2240_v12 = vld [vmem:[#allocation2 + $0x124] sm:$0xff]  ;;  %v2271_v10 = vmax.f32 %v2207_v58, %v2239_v7  ;;  %v2082_v52 = vmax.f32 %v2018_v22, %v2050_v47  ;;  %v2053_v53 = vld [vmem:[#allocation2 + $0x159] sm:$0xff]  ;;  %v2506_v59 = vmax.f32 %v5985_v3, %v5907_v33 }
 0x1a3   : > { %v2145_v36 = vmax.f32 %v2081_v16, %v2113_v38  ;;  %v2177_v26 = vld [vmem:[#allocation2 + $0x12b] sm:$0xff]  ;;  %v2270_v41 = vmax.f32 %v2206_v34, %v2238_v11  ;;  %v2272_v48 = vmax.f32 %v2208_v1, %v2240_v12  ;;  %v2085_v2 = vmax.f32 %v2021_v17, %v2053_v53  ;;  %v2114_v21 = vld [vmem:[#allocation2 + $0x13a] sm:$0xff]  ;;  %v2115_v16 = vld [vmem:[#allocation2 + $0x142] sm:$0xff] }
 0x1a4   : > { %v2241_v50 = vld [vmem:[#allocation2 + $0x12c] sm:$0xff]  ;;  %2303 = vst.msk [vmem:[#allocation3 + $0xd8] sm:$0xff] %vm313_vm2, %v2271_v10  ;;  %v2146_v31 = vmax.f32 %v2082_v52, %v2114_v21  ;;  %v2380_v38 = vmax.f32 %v5864_v37, %v5881_v23  ;;  %v2117_v29 = vld [vmem:[#allocation2 + $0x15a] sm:$0xff]  ;;  %v2147_v11 = vmax.f32 %v2083_v19, %v2115_v16  ;;  %v2381_v37 = vmax.f32 %v5879_v44, %v5905_v54  ;;  %v2243_v20 = vld [vmem:[#allocation2 + $0x144] sm:$0xff] }
 0x1a5   : > { %v2209_v6 = vmax.f32 %v2145_v36, %v2177_v26  ;;  %v2020_v51 = vld [vmem:[#allocation2 + $0x150] sm:$0xff]  ;;  %v2022_v63 = vld [vmem:[#allocation2 + $0x168] sm:$0xff]  ;;  %2302 = vst.msk [vmem:[#allocation3 + $0xd0] sm:$0xff] %vm313_vm2, %v2270_v41  ;;  %2304 = vst.msk [vmem:[#allocation3 + $0xe0] sm:$0xff] %vm313_vm2, %v2272_v48  ;;  %v2507_v36 = vmax.f32 %v5988_v43, %v5916_v46  ;;  %v2149_v26 = vmax.f32 %v2085_v2, %v2117_v29 }
 0x1a6   : > { %v2023_v49 = vld [vmem:[#allocation2 + $0x170] sm:$0xff]  ;;  %v5997_v58 = vld [vmem:[#allocation3 + $0xc0] sm:$0xff]  ;;  %v2383_v44 = vmax.f32 %v5905_v54, %v5916_v46  ;;  %v2445_v43 = vmax.f32 %v2381_v37, %v5916_v46  ;;  %v2539_v29 = vld [vmem:[#allocation3 + $0x58] sm:$0xff] }
 0x1a7   : > { %v2273_v28 = vmax.f32 %v2209_v6, %v2241_v50  ;;  %v2052_v15 = vld [vmem:[#allocation2 + $0x151] sm:$0xff]  ;;  %v2054_v62 = vld [vmem:[#allocation2 + $0x169] sm:$0xff]  ;;  %v2178_v5 = vld [vmem:[#allocation2 + $0x13b] sm:$0xff] }
 0x1a8   : > { %v2084_v25 = vmax.f32 %v2020_v51, %v2052_v15  ;;  %v2055_v55 = vld [vmem:[#allocation2 + $0x171] sm:$0xff]  ;;  %v2086_v40 = vmax.f32 %v2022_v63, %v2054_v62  ;;  %v2179_v41 = vld [vmem:[#allocation2 + $0x143] sm:$0xff]  ;;  %v2181_v50 = vld [vmem:[#allocation2 + $0x15b] sm:$0xff]  ;;  %v2210_v45 = vmax.f32 %v2146_v31, %v2178_v5  ;;  %v2382_v63 = vmax.f32 %v5881_v23, %v5907_v33  ;;  %4372 = vmatmul.mubr.msk.bf16.gmra.mxu1 %vm313_vm2, %v1532_v42 }
 0x1a9   : > { %2305 = vst.msk [vmem:[#allocation3 + $0xe8] sm:$0xff] %vm313_vm2, %v2273_v28  ;;  %v2087_v57 = vmax.f32 %v2023_v49, %v2055_v55  ;;  %v2116_v14 = vld [vmem:[#allocation2 + $0x152] sm:$0xff]  ;;  %v2118_v61 = vld [vmem:[#allocation2 + $0x16a] sm:$0xff]  ;;  %v2211_v10 = vmax.f32 %v2147_v11, %v2179_v41  ;;  %v2213_v56 = vmax.f32 %v2149_v26, %v2181_v50  ;;  %v2242_v49 = vld [vmem:[#allocation2 + $0x13c] sm:$0xff]  ;;  %v2444_v23 = vmax.f32 %v2380_v38, %v5907_v33 }
 0x1aa   : > { %v2119_v34 = vld [vmem:[#allocation2 + $0x172] sm:$0xff]  ;;  %v2148_v7 = vmax.f32 %v2084_v25, %v2116_v14  ;;  %v2150_v12 = vmax.f32 %v2086_v40, %v2118_v61  ;;  %v6001_v6 = vld [vmem:[#allocation3 + $0xc8] sm:$0xff]  ;;  %v2245_v30 = vld [vmem:[#allocation2 + $0x15c] sm:$0xff]  ;;  %v2274_v53 = vmax.f32 %v2210_v45, %v2242_v49  ;;  %4411 = vmatprep.mubr.msk.bf16.mxu1 %vm313_vm2, %v2600_v32  ;;  %v2447_v5 = vmax.f32 %v2383_v44, %v2539_v29 }
 0x1ab   : > { %v2151_v22 = vmax.f32 %v2087_v57, %v2119_v34  ;;  %v2180_v1 = vld [vmem:[#allocation2 + $0x153] sm:$0xff]  ;;  %v2182_v27 = vld [vmem:[#allocation2 + $0x16b] sm:$0xff]  ;;  %v2275_v19 = vmax.f32 %v2211_v10, %v2243_v20  ;;  %v2277_v3 = vmax.f32 %v2213_v56, %v2245_v30  ;;  %v2571_v34 = vmax.f32 %v2507_v36, %v2539_v29  ;;  %v6045_v11 = vld [vmem:[#allocation3 + $0x60] sm:$0xff] }
 0x1ac   : > { %v2183_v51 = vld [vmem:[#allocation2 + $0x173] sm:$0xff]  ;;  %v2212_v17 = vmax.f32 %v2148_v7, %v2180_v1  ;;  %v2214_v48 = vmax.f32 %v2150_v12, %v2182_v27  ;;  %v6014_v62 = vld [vmem:[#allocation3 + $0xe0] sm:$0xff]  ;;  %2306 = vst.msk [vmem:[#allocation3 + $0xf0] sm:$0xff] %vm313_vm2, %v2274_v53  ;;  %v6047_v7 = vld [vmem:[#allocation3 + $0x68] sm:$0xff]  ;;  %v2385_v12 = vmax.f32 %v5916_v46, %v2539_v29  ;;  %v2509_v36 = vmax.f32 %v2445_v43, %v2539_v29 }
 0x1ad   : > { %v6005_v47 = vld [vmem:[#allocation3 + $0xd0] sm:$0xff]  ;;  %v2215_v28 = vmax.f32 %v2151_v22, %v2183_v51  ;;  %v6009_v15 = vld [vmem:[#allocation3 + $0xd8] sm:$0xff]  ;;  %2307 = vst.msk [vmem:[#allocation3 + $0xf8] sm:$0xff] %vm313_vm2, %v2275_v19  ;;  %2309 = vst.msk [vmem:[#allocation3 + $0x108] sm:$0xff] %vm313_vm2, %v2277_v3  ;;  %v2511_v45 = vmax.f32 %v2447_v5, %v6047_v7 }
 0x1ae   : > { %v2244_v52 = vld [vmem:[#allocation2 + $0x154] sm:$0xff]  ;;  %v2400_v25 = vmax.f32 %v5997_v58, %v6005_v47  ;;  %v2246_v2 = vld [vmem:[#allocation2 + $0x16c] sm:$0xff]  ;;  %v2401_v54 = vmax.f32 %v6001_v6, %v6009_v15  ;;  %v2402_v16 = vmax.f32 %v6005_v47, %v6014_v62  ;;  %v2894_v1 = vld [vmem:[#allocation2] sm:$0xff]  ;;  %2865 = vst.msk [vmem:[#allocation2 + $0x22] sm:$0xff] %vm313_vm2, %v2571_v34  ;;  %v6065_v27 = vmax.f32 %v2385_v12, %v6047_v7 }
 0x1af   : > { %v2276_v21 = vmax.f32 %v2212_v17, %v2244_v52  ;;  %v2247_v40 = vld [vmem:[#allocation2 + $0x174] sm:$0xff]  ;;  %v2278_v57 = vmax.f32 %v2214_v48, %v2246_v2  ;;  %v2895_v0 = vld [vmem:[#allocation2 + $0x8] sm:$0xff]  ;;  %v2573_v17 = vmax.f32 %v2509_v36, %v6047_v7  ;;  %v2544_v29 = vld [vmem:[#allocation3 + $0x80] sm:$0xff] }
 0x1b0   : > { %v6016_v55 = vld [vmem:[#allocation3 + $0xe8] sm:$0xff]  ;;  %v6032_v31 = vmax.f32 %v2400_v25, %v6014_v62  ;;  %v2538_v38 = vld [vmem:[#allocation3 + $0x50] sm:$0xff]  ;;  %v2279_v4 = vmax.f32 %v2215_v28, %v2247_v40  ;;  %v6057_v32 = vld [vmem:[#allocation3 + $0x78] sm:$0xff] }
 0x1b1   : > { %v2403_v14 = vmax.f32 %v6009_v15, %v6016_v55  ;;  %v6034_v39 = vld [vmem:[#allocation3 + $0x50] sm:$0xff]  ;;  %2308 = vst.msk [vmem:[#allocation3 + $0x100] sm:$0xff] %vm313_vm2, %v2276_v21  ;;  %v6039_v42 = vmax.f32 %v2401_v54, %v6016_v55  ;;  %v2570_v61 = vmax.f32 %v2506_v59, %v2538_v38  ;;  %2310 = vst.msk [vmem:[#allocation3 + $0x110] sm:$0xff] %vm313_vm2, %v2278_v57  ;;  %v6071_v48 = vld [vmem:[#allocation3 + $0x58] sm:$0xff] }
 0x1b2   : > { %v2384_v26 = vmax.f32 %v5907_v33, %v2538_v38  ;;  %v2446_v22 = vmax.f32 %v2382_v63, %v2538_v38  ;;  %v6052_v41 = vld [vmem:[#allocation3 + $0x70] sm:$0xff]  ;;  %2311 = vst.msk [vmem:[#allocation3 + $0x118] sm:$0xff] %vm313_vm2, %v2279_v4  ;;  %v2508_v59 = vmax.f32 %v2444_v23, %v2538_v38  ;;  %v2926_v33 = vld [vmem:[#allocation2 + $0x1] sm:$0xff]  ;;  %v2386_v46 = vmax.f32 %v6034_v39, %v6045_v11 }
 0x1b3   : > { %v2601_v18 = vpack.c.bf16 %v2571_v34, %v2570_v61  ;;  %2864 = vst.msk [vmem:[#allocation2 + $0x1a] sm:$0xff] %vm313_vm2, %v2570_v61  ;;  %v2927_v37 = vld [vmem:[#allocation2 + $0x9] sm:$0xff]  ;;  %v2958_v63 = vmax.f32 %v2894_v1, %v2926_v33  ;;  %v2513_v49 = vmax.f32 %v6065_v27, %v6057_v32  ;;  %v6081_v44 = vmax.f32 %v2511_v45, %v6057_v32 }
 0x1b4   : > { %v6062_v50 = vmax.f32 %v2384_v26, %v6045_v11  ;;  %v2510_v51 = vmax.f32 %v2446_v22, %v6045_v11  ;;  %v2572_v10 = vmax.f32 %v2508_v59, %v6045_v11  ;;  %v2959_v56 = vmax.f32 %v2895_v0, %v2927_v37  ;;  %v2990_v52 = vld [vmem:[#allocation2 + $0x2] sm:$0xff]  ;;  %v2991_v30 = vld [vmem:[#allocation2 + $0xa] sm:$0xff]  ;;  %v6085_v19 = vld [vmem:[#allocation3 + $0xf8] sm:$0xff]  ;;  %2867 = vst.msk [vmem:[#allocation2 + $0x3a] sm:$0xff] %vm313_vm2, %v2573_v17 }
 0x1b5   : > { %v6083_v53 = vld [vmem:[#allocation3 + $0xf0] sm:$0xff]  ;;  %v6089_v23 = vmax.f32 %v2958_v63, %v2990_v52  ;;  %v2387_v21 = vmax.f32 %v6071_v48, %v6047_v7  ;;  %v2375_v54 = vld [vmem:[#allocation3 + $0x108] sm:$0xff]  ;;  %v2405_v40 = vmax.f32 %v6016_v55, %v6085_v19  ;;  %v2467_v38 = vmax.f32 %v2403_v14, %v6085_v19  ;;  %4412 = vmatmul.mubr.msk.bf16.vlgmr.msra.gmra.mxu1 %vm313_vm2, %v2601_v18 }
 0x1b6   : > { %v2512_v28 = vmax.f32 %v6062_v50, %v6052_v41  ;;  %v6078_v20 = vmax.f32 %v2510_v51, %v6052_v41  ;;  %v2602_v25 = vpack.c.bf16 %v2573_v17, %v2572_v10  ;;  %2866 = vst.msk [vmem:[#allocation2 + $0x32] sm:$0xff] %vm313_vm2, %v2572_v10  ;;  %v6091_v2 = vmax.f32 %v2959_v56, %v2991_v30  ;;  %v2545_v14 = vld [vmem:[#allocation3 + $0x88] sm:$0xff] }
 0x1b7   : > { %v2404_v43 = vmax.f32 %v6014_v62, %v6083_v53  ;;  %v2466_v57 = vmax.f32 %v2402_v16, %v6083_v53  ;;  %2869 = vst.msk [vmem:[#allocation2 + $0x52] sm:$0xff] %vm313_vm2, %v6081_v44  ;;  %v2407_v61 = vmax.f32 %v6085_v19, %v2375_v54  ;;  %v2528_v26 = vmax.f32 %v6032_v31, %v6083_v53  ;;  %v3054_v17 = vld [vmem:[#allocation2 + $0x3] sm:$0xff] }
 0x1b8   : > { %v2374_v3 = vld [vmem:[#allocation3 + $0x100] sm:$0xff]  ;;  %2868 = vst.msk [vmem:[#allocation2 + $0x4a] sm:$0xff] %vm313_vm2, %v6078_v20  ;;  %v2438_v34 = vld [vmem:[#allocation3 + $0x110] sm:$0xff]  ;;  %v2529_v16 = vmax.f32 %v6039_v42, %v6085_v19  ;;  %4415 = vmatprep.mubr.msk.bf16.mxu1 %vm313_vm2, %v2602_v25  ;;  %v2469_v5 = vmax.f32 %v2405_v40, %v2375_v54  ;;  %v2531_v0 = vmax.f32 %v2467_v38, %v2375_v54 }
 0x1b9   : > { %v2406_v4 = vmax.f32 %v6083_v53, %v2374_v3  ;;  %v2439_v12 = vld [vmem:[#allocation3 + $0x118] sm:$0xff]  ;;  %v2468_v22 = vmax.f32 %v2404_v43, %v2374_v3  ;;  %v2530_v1 = vmax.f32 %v2466_v57, %v2374_v3  ;;  %v6113_v33 = vmax.f32 %v2528_v26, %v2374_v3  ;;  %v2993_v3 = vld [vmem:[#allocation2 + $0x22] sm:$0xff] }
 0x1ba   : > { %v2896_v18 = vld [vmem:[#allocation2 + $0x18] sm:$0xff]  ;;  %v2471_v36 = vmax.f32 %v2407_v61, %v2439_v12  ;;  %v6115_v37 = vmax.f32 %v2529_v16, %v2375_v54  ;;  %v2897_v50 = vld [vmem:[#allocation2 + $0x20] sm:$0xff]  ;;  %v2533_v42 = vmax.f32 %v2469_v5, %v2439_v12  ;;  %v6119_v10 = vmax.f32 %v2531_v0, %v2439_v12  ;;  %v3055_v54 = vld [vmem:[#allocation2 + $0xb] sm:$0xff] }
 0x1bb   : > { %v2470_v59 = vmax.f32 %v2406_v4, %v2438_v34  ;;  %v2928_v31 = vld [vmem:[#allocation2 + $0x19] sm:$0xff]  ;;  %v2929_v27 = vld [vmem:[#allocation2 + $0x21] sm:$0xff]  ;;  %v2532_v51 = vmax.f32 %v2468_v22, %v2438_v34  ;;  %v6117_v45 = vmax.f32 %v2530_v1, %v2438_v34  ;;  %2886 = vst.msk [vmem:[#allocation2 + $0x122] sm:$0xff] %vm313_vm2, %v6113_v33  ;;  %v6127_v52 = vmax.f32 %v2512_v28, %v2544_v29  ;;  %v3119_v22 = vld [vmem:[#allocation2 + $0xc] sm:$0xff] }
 0x1bc   : > { %v2535_v56 = vmax.f32 %v2471_v36, %v5853_v60  ;;  %2887 = vst.msk [vmem:[#allocation2 + $0x12a] sm:$0xff] %vm313_vm2, %v6115_v37  ;;  %v6129_v30 = vmax.f32 %v2513_v49, %v2545_v14  ;;  %v2992_v25 = vld [vmem:[#allocation2 + $0x1a] sm:$0xff]  ;;  %v6135_v57 = vmax.f32 %v2533_v42, %v5853_v60  ;;  %2889 = vst.msk [vmem:[#allocation2 + $0x142] sm:$0xff] %vm313_vm2, %v6119_v10  ;;  %v3118_v61 = vld [vmem:[#allocation2 + $0x4] sm:$0xff] }
 0x1bd   : > { %v2534_v63 = vmax.f32 %v2470_v59, %v5846_v8  ;;  %v3056_v43 = vld [vmem:[#allocation2 + $0x1b] sm:$0xff]  ;;  %v6132_v40 = vmax.f32 %v2532_v51, %v5846_v8  ;;  %2888 = vst.msk [vmem:[#allocation2 + $0x13a] sm:$0xff] %vm313_vm2, %v6117_v45  ;;  %v2898_v28 = vld [vmem:[#allocation2 + $0x30] sm:$0xff]  ;;  %v2960_v29 = vmax.f32 %v2896_v18, %v2928_v31  ;;  %v2961_v4 = vmax.f32 %v2897_v50, %v2929_v27  ;;  %v3057_v51 = vld [vmem:[#allocation2 + $0x23] sm:$0xff] }
 0x1be   : > { %v2899_v38 = vld [vmem:[#allocation2 + $0x38] sm:$0xff]  ;;  %v6145_v8 = vmax.f32 %v2535_v56, %v5903_v9  ;;  %2870 = vst.msk [vmem:[#allocation2 + $0x62] sm:$0xff] %vm313_vm2, %v6127_v52  ;;  %2871 = vst.msk [vmem:[#allocation2 + $0x6a] sm:$0xff] %vm313_vm2, %v6129_v30  ;;  %v3086_v12 = vmax.f32 %v6089_v23, %v3054_v17  ;;  %v3087_v59 = vmax.f32 %v6091_v2, %v3055_v54 }
 0x1bf   : > { %v2930_v49 = vld [vmem:[#allocation2 + $0x31] sm:$0xff]  ;;  %v6142_v34 = vmax.f32 %v2534_v63, %v5893_v35  ;;  %v2900_v60 = vld [vmem:[#allocation2 + $0x48] sm:$0xff]  ;;  %v2931_v16 = vld [vmem:[#allocation2 + $0x39] sm:$0xff]  ;;  %2890 = vst.msk [vmem:[#allocation2 + $0x152] sm:$0xff] %vm313_vm2, %v6132_v40  ;;  %v3024_v0 = vmax.f32 %v2960_v29, %v2992_v25  ;;  %v3025_v18 = vmax.f32 %v2961_v4, %v2993_v3 }
 0x1c0   : > { %v2901_v26 = vld [vmem:[#allocation2 + $0x50] sm:$0xff]  ;;  %v2962_v14 = vmax.f32 %v2898_v28, %v2930_v49  ;;  %2891 = vst.msk [vmem:[#allocation2 + $0x15a] sm:$0xff] %vm313_vm2, %v6135_v57  ;;  %v2963_v5 = vmax.f32 %v2899_v38, %v2931_v16  ;;  %2893 = vst.msk [vmem:[#allocation2 + $0x172] sm:$0xff] %vm313_vm2, %v6145_v8  ;;  %v2995_v50 = vld [vmem:[#allocation2 + $0x3a] sm:$0xff]  ;;  %v3150_v42 = vmax.f32 %v3086_v12, %v3118_v61 }
 0x1c1   : > { %v2932_v35 = vld [vmem:[#allocation2 + $0x49] sm:$0xff]  ;;  %v2933_v9 = vld [vmem:[#allocation2 + $0x51] sm:$0xff]  ;;  %2892 = vst.msk [vmem:[#allocation2 + $0x16a] sm:$0xff] %vm313_vm2, %v6142_v34  ;;  %v3088_v3 = vmax.f32 %v3024_v0, %v3056_v43  ;;  %v3089_v28 = vmax.f32 %v3025_v18, %v3057_v51  ;;  %v3151_v2 = vmax.f32 %v3087_v59, %v3119_v22  ;;  %v3059_v49 = vld [vmem:[#allocation2 + $0x3b] sm:$0xff]  ;;  %v2604_v43 = vpack.c.bf16 %v6129_v30, %v6127_v52 }
 0x1c2   : > { %v2994_v1 = vld [vmem:[#allocation2 + $0x32] sm:$0xff]  ;;  %v2964_v23 = vmax.f32 %v2900_v60, %v2932_v35  ;;  %v2965_v36 = vmax.f32 %v2901_v26, %v2933_v9  ;;  %v2996_v31 = vld [vmem:[#allocation2 + $0x4a] sm:$0xff]  ;;  %v3027_v63 = vmax.f32 %v2963_v5, %v2995_v50  ;;  %v3120_v4 = vld [vmem:[#allocation2 + $0x1c] sm:$0xff]  ;;  %3182 = vst.msk [vmem:[#allocation3 + $0x20] sm:$0xff] %vm313_vm2, %v3150_v42  ;;  %v2603_v60 = vpack.c.bf16 %v6081_v44, %v6078_v20 }
 0x1c3   : > { %v3026_v27 = vmax.f32 %v2962_v14, %v2994_v1  ;;  %v2997_v17 = vld [vmem:[#allocation2 + $0x52] sm:$0xff]  ;;  %v3121_v16 = vld [vmem:[#allocation2 + $0x24] sm:$0xff]  ;;  %v3152_v12 = vmax.f32 %v3088_v3, %v3120_v4  ;;  %3183 = vst.msk [vmem:[#allocation3 + $0x28] sm:$0xff] %vm313_vm2, %v3151_v2  ;;  %v3123_v0 = vld [vmem:[#allocation2 + $0x3c] sm:$0xff]  ;;  %v2388_v20 = vmax.f32 %v6045_v11, %v6052_v41  ;;  %v2451_v51 = vmax.f32 %v2387_v21, %v6057_v32 }
 0x1c4   : > { %v3058_v56 = vld [vmem:[#allocation2 + $0x33] sm:$0xff]  ;;  %v3060_v25 = vld [vmem:[#allocation2 + $0x4b] sm:$0xff]  ;;  %v3028_v54 = vmax.f32 %v2964_v23, %v2996_v31  ;;  %v3029_v38 = vmax.f32 %v2965_v36, %v2997_v17  ;;  %v3091_v61 = vmax.f32 %v3027_v63, %v3059_v49  ;;  %v3153_v35 = vmax.f32 %v3089_v28, %v3121_v16  ;;  %v6167_v22 = vld [vmem:[#allocation3 + $0x80] sm:$0xff]  ;;  %4416 = vmatmul.mubr.msk.bf16.gmra.mxu1 %vm313_vm2, %v2603_v60 }
 0x1c5   : > { %v3090_v29 = vmax.f32 %v3026_v27, %v3058_v56  ;;  %v3061_v26 = vld [vmem:[#allocation2 + $0x53] sm:$0xff]  ;;  %v6172_v44 = vld [vmem:[#allocation3 + $0x88] sm:$0xff]  ;;  %v6174_v36 = vld [vmem:[#allocation2 + $0x60] sm:$0xff]  ;;  %3184 = vst.msk [vmem:[#allocation3 + $0x30] sm:$0xff] %vm313_vm2, %v3152_v12  ;;  %4419 = vmatprep.mubr.msk.bf16.mxu1 %vm313_vm2, %v2604_v43  ;;  %v2389_v31 = vmax.f32 %v6047_v7, %v6057_v32  ;;  %v2450_v27 = vmax.f32 %v2386_v46, %v6052_v41 }
 0x1c6   : > { %v3122_v14 = vld [vmem:[#allocation2 + $0x34] sm:$0xff]  ;;  %v3092_v5 = vmax.f32 %v3028_v54, %v3060_v25  ;;  %v3093_v1 = vmax.f32 %v3029_v38, %v3061_v26  ;;  %v3124_v18 = vld [vmem:[#allocation2 + $0x4c] sm:$0xff]  ;;  %v6176_v50 = vld [vmem:[#allocation2 + $0x61] sm:$0xff]  ;;  %v3155_v30 = vmax.f32 %v3091_v61, %v3123_v0  ;;  %3185 = vst.msk [vmem:[#allocation3 + $0x38] sm:$0xff] %vm313_vm2, %v3153_v35  ;;  %v2515_v48 = vmax.f32 %v2451_v51, %v6172_v44 }
 0x1c7   : > { %v2546_v9 = vld [vmem:[#allocation3 + $0x90] sm:$0xff]  ;;  %v3154_v59 = vmax.f32 %v3090_v29, %v3122_v14  ;;  %v2547_v23 = vld [vmem:[#allocation3 + $0x98] sm:$0xff]  ;;  %v2966_v3 = vmax.f32 %v6174_v36, %v6176_v50  ;;  %v2514_v7 = vmax.f32 %v2450_v27, %v6167_v22  ;;  %v2390_v21 = vmax.f32 %v6052_v41, %v6167_v22  ;;  %v2548_v61 = vld [vmem:[#allocation3 + $0xa0] sm:$0xff] }
 0x1c8   : > { %v3125_v52 = vld [vmem:[#allocation2 + $0x54] sm:$0xff]  ;;  %v3156_v28 = vmax.f32 %v3092_v5, %v3124_v18  ;;  %v2924_v39 = vld [vmem:[#allocation2 + $0x168] sm:$0xff]  ;;  %3187 = vst.msk [vmem:[#allocation3 + $0x48] sm:$0xff] %vm313_vm2, %v3155_v30  ;;  %v2391_v16 = vmax.f32 %v6057_v32, %v6172_v44  ;;  %v2452_v60 = vmax.f32 %v2388_v20, %v6167_v22  ;;  %v2453_v26 = vmax.f32 %v2389_v31, %v6172_v44 }
 0x1c9   : > { %v6191_v42 = vld [vmem:[#allocation3 + $0x90] sm:$0xff]  ;;  %v6193_v17 = vld [vmem:[#allocation3 + $0x98] sm:$0xff]  ;;  %v3157_v2 = vmax.f32 %v3093_v1, %v3125_v52  ;;  %3186 = vst.msk [vmem:[#allocation3 + $0x40] sm:$0xff] %vm313_vm2, %v3154_v59  ;;  %v2903_v5 = vld [vmem:[#allocation2 + $0x68] sm:$0xff]  ;;  %v2578_v1 = vmax.f32 %v2514_v7, %v2546_v9  ;;  %v2579_v50 = vmax.f32 %v2515_v48, %v2547_v23 }
 0x1ca   : > { %v2922_v63 = vld [vmem:[#allocation2 + $0x150] sm:$0xff]  ;;  %v2923_v56 = vld [vmem:[#allocation2 + $0x158] sm:$0xff]  ;;  %3188 = vst.msk [vmem:[#allocation3 + $0x50] sm:$0xff] %vm313_vm2, %v3156_v28  ;;  %v2516_v52 = vmax.f32 %v2452_v60, %v6191_v42  ;;  %v2517_v32 = vmax.f32 %v2453_v26, %v6193_v17  ;;  %v2549_v20 = vld [vmem:[#allocation3 + $0xa8] sm:$0xff]  ;;  %v2392_v9 = vmax.f32 %v6167_v22, %v6191_v42 }
 0x1cb   : > { %v2954_v25 = vld [vmem:[#allocation2 + $0x151] sm:$0xff]  ;;  %v2955_v46 = vld [vmem:[#allocation2 + $0x159] sm:$0xff]  ;;  %v2956_v38 = vld [vmem:[#allocation2 + $0x169] sm:$0xff]  ;;  %3189 = vst.msk [vmem:[#allocation3 + $0x58] sm:$0xff] %vm313_vm2, %v3157_v2 }
 0x1cc   : > { %v2925_v11 = vld [vmem:[#allocation2 + $0x170] sm:$0xff]  ;;  %v2986_v54 = vmax.f32 %v2922_v63, %v2954_v25  ;;  %v2987_v29 = vmax.f32 %v2923_v56, %v2955_v46  ;;  %v2988_v14 = vmax.f32 %v2924_v39, %v2956_v38  ;;  %v3019_v35 = vld [vmem:[#allocation2 + $0x15a] sm:$0xff]  ;;  %2872 = vst.msk [vmem:[#allocation2 + $0x7a] sm:$0xff] %vm313_vm2, %v2578_v1  ;;  %2873 = vst.msk [vmem:[#allocation2 + $0x82] sm:$0xff] %vm313_vm2, %v2579_v50 }
 0x1cd   : > { %v2957_v49 = vld [vmem:[#allocation2 + $0x171] sm:$0xff]  ;;  %v3083_v27 = vld [vmem:[#allocation2 + $0x15b] sm:$0xff]  ;;  %v2935_v2 = vld [vmem:[#allocation2 + $0x69] sm:$0xff]  ;;  %v2580_v23 = vmax.f32 %v2516_v52, %v2548_v61  ;;  %v2581_v39 = vmax.f32 %v2517_v32, %v2549_v20 }
 0x1ce   : > { %v3018_v4 = vld [vmem:[#allocation2 + $0x152] sm:$0xff]  ;;  %v2989_v12 = vmax.f32 %v2925_v11, %v2957_v49  ;;  %v3020_v41 = vld [vmem:[#allocation2 + $0x16a] sm:$0xff]  ;;  %v3051_v18 = vmax.f32 %v2987_v29, %v3019_v35  ;;  %v3147_v28 = vld [vmem:[#allocation2 + $0x15c] sm:$0xff]  ;;  %v2605_v11 = vpack.c.bf16 %v2579_v50, %v2578_v1  ;;  %v2967_v38 = vmax.f32 %v2903_v5, %v2935_v2 }
 0x1cf   : > { %v3050_v43 = vmax.f32 %v2986_v54, %v3018_v4  ;;  %v3021_v0 = vld [vmem:[#allocation2 + $0x172] sm:$0xff]  ;;  %v3052_v30 = vmax.f32 %v2988_v14, %v3020_v41  ;;  %v2998_v49 = vld [vmem:[#allocation2 + $0x62] sm:$0xff]  ;;  %v2999_v26 = vld [vmem:[#allocation2 + $0x6a] sm:$0xff]  ;;  %2874 = vst.msk [vmem:[#allocation2 + $0x92] sm:$0xff] %vm313_vm2, %v2580_v23  ;;  %v2606_v61 = vpack.c.bf16 %v2581_v39, %v2580_v23  ;;  %v6219_v35 = vmax.f32 %v2390_v21, %v6191_v42 }
 0x1d0   : > { %v3082_v59 = vld [vmem:[#allocation2 + $0x153] sm:$0xff]  ;;  %v3084_v36 = vld [vmem:[#allocation2 + $0x16b] sm:$0xff]  ;;  %v3053_v31 = vmax.f32 %v2989_v12, %v3021_v0  ;;  %v3115_v56 = vmax.f32 %v3051_v18, %v3083_v27  ;;  %v3062_v29 = vld [vmem:[#allocation2 + $0x63] sm:$0xff]  ;;  %v3030_v14 = vmax.f32 %v2966_v3, %v2998_v49  ;;  %2875 = vst.msk [vmem:[#allocation2 + $0x9a] sm:$0xff] %vm313_vm2, %v2581_v39  ;;  %4420 = vmatmul.mubr.msk.bf16.gmra.mxu1 %vm313_vm2, %v2605_v11 }
 0x1d1   : > { %v3085_v51 = vld [vmem:[#allocation2 + $0x173] sm:$0xff]  ;;  %v3114_v63 = vmax.f32 %v3050_v43, %v3082_v59  ;;  %v3116_v46 = vmax.f32 %v3052_v30, %v3084_v36  ;;  %v3063_v12 = vld [vmem:[#allocation2 + $0x6b] sm:$0xff]  ;;  %v3031_v5 = vmax.f32 %v2967_v38, %v2999_v26  ;;  %v3310_v1 = vld [vmem:[#allocation3 + $0x20] sm:$0xff]  ;;  %v6225_v3 = vmax.f32 %v2391_v16, %v6193_v17  ;;  %4423 = vmatprep.mubr.msk.bf16.mxu1 %vm313_vm2, %v2606_v61 }
 0x1d2   : > { %v3146_v25 = vld [vmem:[#allocation2 + $0x154] sm:$0xff]  ;;  %v3117_v54 = vmax.f32 %v3053_v31, %v3085_v51  ;;  %v3148_v7 = vld [vmem:[#allocation2 + $0x16c] sm:$0xff]  ;;  %v3179_v60 = vmax.f32 %v3115_v56, %v3147_v28  ;;  %v3094_v59 = vmax.f32 %v3030_v14, %v3062_v29  ;;  %v3342_v36 = vmax.f32 %v5695_v24, %v3310_v1  ;;  %v6232_v52 = vld [vmem:[#allocation3 + $0x40] sm:$0xff] }
 0x1d3   : > { %v3178_v48 = vmax.f32 %v3114_v63, %v3146_v25  ;;  %v3149_v4 = vld [vmem:[#allocation2 + $0x174] sm:$0xff]  ;;  %v3180_v41 = vmax.f32 %v3116_v46, %v3148_v7  ;;  %v3311_v0 = vld [vmem:[#allocation3 + $0x28] sm:$0xff]  ;;  %v3095_v16 = vmax.f32 %v3031_v5, %v3063_v12  ;;  %v2905_v49 = vld [vmem:[#allocation2 + $0x80] sm:$0xff] }
 0x1d4   : > { %v3181_v43 = vmax.f32 %v3117_v54, %v3149_v4  ;;  %v6222_v18 = vld [vmem:[#allocation3 + $0x30] sm:$0xff]  ;;  %3211 = vst.msk [vmem:[#allocation3 + $0x108] sm:$0xff] %vm313_vm2, %v3179_v60  ;;  %v3343_v21 = vmax.f32 %v5711_v13, %v3311_v0  ;;  %v6230_v50 = vld [vmem:[#allocation3 + $0x38] sm:$0xff]  ;;  %v6234_v32 = vld [vmem:[#allocation3 + $0x48] sm:$0xff] }
 0x1d5   : > { %3210 = vst.msk [vmem:[#allocation3 + $0x100] sm:$0xff] %vm313_vm2, %v3178_v48  ;;  %v4751_v20 = vld [vmem:[#allocation3 + $0x10] sm:$0xff]  ;;  %3212 = vst.msk [vmem:[#allocation3 + $0x110] sm:$0xff] %vm313_vm2, %v3180_v41  ;;  %v3126_v31 = vld [vmem:[#allocation2 + $0x64] sm:$0xff]  ;;  %v3282_v63 = vmax.f32 %v3310_v1, %v6222_v18  ;;  %v3283_v56 = vmax.f32 %v3311_v0, %v6230_v50  ;;  %v3406_v28 = vmax.f32 %v3342_v36, %v6222_v18 }
 0x1d6   : > { %v3280_v30 = vmax.f32 %v4751_v20, %v3310_v1  ;;  %3213 = vst.msk [vmem:[#allocation3 + $0x118] sm:$0xff] %vm313_vm2, %v3181_v43  ;;  %v3127_v27 = vld [vmem:[#allocation2 + $0x6c] sm:$0xff]  ;;  %v4752_v24 = vld [vmem:[#allocation3 + $0x18] sm:$0xff]  ;;  %v3158_v25 = vmax.f32 %v3094_v59, %v3126_v31  ;;  %v3407_v2 = vmax.f32 %v3343_v21, %v6230_v50  ;;  %v2937_v29 = vld [vmem:[#allocation2 + $0x81] sm:$0xff] }
 0x1d7   : > { %v3281_v51 = vmax.f32 %v4752_v24, %v3311_v0  ;;  %v6239_v13 = vld [vmem:[#allocation3 + $0x50] sm:$0xff]  ;;  %v6246_v39 = vld [vmem:[#allocation3 + $0x58] sm:$0xff]  ;;  %v3159_v54 = vmax.f32 %v3095_v16, %v3127_v27  ;;  %v3346_v48 = vmax.f32 %v3282_v63, %v6232_v52  ;;  %v6251_v38 = vmax.f32 %v3283_v56, %v6234_v32  ;;  %v3001_v20 = vld [vmem:[#allocation2 + $0x82] sm:$0xff] }
 0x1d8   : > { %v3344_v23 = vmax.f32 %v3280_v30, %v6222_v18  ;;  %v2904_v11 = vld [vmem:[#allocation2 + $0x78] sm:$0xff]  ;;  %3190 = vst.msk [vmem:[#allocation3 + $0x60] sm:$0xff] %vm313_vm2, %v3158_v25  ;;  %v3470_v4 = vmax.f32 %v3406_v28, %v6232_v52  ;;  %v3471_v60 = vmax.f32 %v3407_v2, %v6234_v32  ;;  %v2969_v5 = vmax.f32 %v2905_v49, %v2937_v29  ;;  %v2906_v0 = vld [vmem:[#allocation2 + $0x90] sm:$0xff]  ;;  %v3065_v25 = vld [vmem:[#allocation2 + $0x83] sm:$0xff] }
 0x1d9   : > { %v2936_v46 = vld [vmem:[#allocation2 + $0x79] sm:$0xff]  ;;  %v3345_v7 = vmax.f32 %v3281_v51, %v6230_v50  ;;  %3191 = vst.msk [vmem:[#allocation3 + $0x68] sm:$0xff] %vm313_vm2, %v3159_v54  ;;  %v3410_v41 = vmax.f32 %v3346_v48, %v6239_v13  ;;  %v3411_v43 = vmax.f32 %v6251_v38, %v6246_v39  ;;  %v3284_v16 = vmax.f32 %v6222_v18, %v6232_v52  ;;  %v2938_v31 = vld [vmem:[#allocation2 + $0x91] sm:$0xff] }
 0x1da   : > { %v3408_v26 = vmax.f32 %v3344_v23, %v6232_v52  ;;  %v2968_v14 = vmax.f32 %v2904_v11, %v2936_v46  ;;  %v3000_v12 = vld [vmem:[#allocation2 + $0x7a] sm:$0xff]  ;;  %v3502_v36 = vpack.c.bf16 %v3471_v60, %v3470_v4  ;;  %v3033_v51 = vmax.f32 %v2969_v5, %v3001_v20  ;;  %v3002_v11 = vld [vmem:[#allocation2 + $0x92] sm:$0xff]  ;;  %v3129_v4 = vld [vmem:[#allocation2 + $0x84] sm:$0xff] }
 0x1db   : > { %v3409_v61 = vmax.f32 %v3345_v7, %v6234_v32  ;;  %v3064_v1 = vld [vmem:[#allocation2 + $0x7b] sm:$0xff]  ;;  %v3285_v63 = vmax.f32 %v6230_v50, %v6234_v32  ;;  %v2970_v56 = vmax.f32 %v2906_v0, %v2938_v31  ;;  %v6270_v2 = vmax.f32 %v3284_v16, %v6239_v13  ;;  %v3066_v46 = vld [vmem:[#allocation2 + $0x93] sm:$0xff] }
 0x1dc   : > { %v2907_v59 = vld [vmem:[#allocation2 + $0x98] sm:$0xff]  ;;  %v3472_v21 = vmax.f32 %v3408_v26, %v6239_v13  ;;  %v3032_v30 = vmax.f32 %v2968_v14, %v3000_v12  ;;  %4445 = vmatprep.mubr.msk.bf16.mxu0 %vm313_vm2, %v3502_v36  ;;  %v3286_v18 = vmax.f32 %v6232_v52, %v6239_v13  ;;  %v3097_v7 = vmax.f32 %v3033_v51, %v3065_v25  ;;  %v2486_v29 = vld [vmem:[#allocation3 + $0xa0] sm:$0xff]  ;;  %v2487_v12 = vld [vmem:[#allocation3 + $0xa8] sm:$0xff] }
 0x1dd   : > { %v2939_v27 = vld [vmem:[#allocation2 + $0x99] sm:$0xff]  ;;  %v3473_v24 = vmax.f32 %v3409_v61, %v6246_v39  ;;  %v6275_v38 = vmax.f32 %v3285_v63, %v6246_v39  ;;  %v3034_v49 = vmax.f32 %v2970_v56, %v3002_v11  ;;  %v3287_v14 = vmax.f32 %v6234_v32, %v6246_v39  ;;  %v2550_v31 = vld [vmem:[#allocation3 + $0xb0] sm:$0xff] }
 0x1de   : > { %v3096_v28 = vmax.f32 %v3032_v30, %v3064_v1  ;;  %v2971_v23 = vmax.f32 %v2907_v59, %v2939_v27  ;;  %v3128_v48 = vld [vmem:[#allocation2 + $0x7c] sm:$0xff]  ;;  %v2518_v61 = vmax.f32 %v6219_v35, %v2486_v29  ;;  %v3161_v5 = vmax.f32 %v3097_v7, %v3129_v4  ;;  %v3130_v30 = vld [vmem:[#allocation2 + $0x94] sm:$0xff] }
 0x1df   : > { %v3503_v54 = vpack.c.bf16 %v3473_v24, %v3472_v21  ;;  %v3003_v50 = vld [vmem:[#allocation2 + $0x9a] sm:$0xff]  ;;  %v3098_v0 = vmax.f32 %v3034_v49, %v3066_v46  ;;  %v2393_v59 = vmax.f32 %v6172_v44, %v6193_v17  ;;  %v2519_v36 = vmax.f32 %v6225_v3, %v2487_v12  ;;  %v2488_v46 = vld [vmem:[#allocation3 + $0xb0] sm:$0xff] }
 0x1e0   : > { %v3160_v60 = vmax.f32 %v3096_v28, %v3128_v48  ;;  %v3035_v26 = vmax.f32 %v2971_v23, %v3003_v50  ;;  %v6281_v52 = vld [vmem:[#allocation3 + $0x60] sm:$0xff]  ;;  %v6286_v21 = vld [vmem:[#allocation3 + $0x68] sm:$0xff]  ;;  %v2394_v16 = vmax.f32 %v6191_v42, %v2486_v29  ;;  %v2551_v27 = vld [vmem:[#allocation3 + $0xb8] sm:$0xff]  ;;  %3193 = vst.msk [vmem:[#allocation3 + $0x78] sm:$0xff] %vm313_vm2, %v3161_v5  ;;  %v2582_v25 = vmax.f32 %v2518_v61, %v2550_v31 }
 0x1e1   : > { %4446 = vmatmul.mubr.msk.bf16.vlgmr.msra.gmra.mxu0 %vm313_vm2, %v3503_v54  ;;  %v3067_v1 = vld [vmem:[#allocation2 + $0x9b] sm:$0xff]  ;;  %v3474_v20 = vmax.f32 %v3410_v41, %v6281_v52  ;;  %v3412_v35 = vmax.f32 %v6270_v2, %v6281_v52  ;;  %v3475_v24 = vmax.f32 %v3411_v43, %v6286_v21  ;;  %v3413_v44 = vmax.f32 %v6275_v38, %v6286_v21  ;;  %v2491_v50 = vld [vmem:[#allocation3 + $0xc8] sm:$0xff] }
 0x1e2   : > { %3192 = vst.msk [vmem:[#allocation3 + $0x70] sm:$0xff] %vm313_vm2, %v3160_v60  ;;  %v3099_v32 = vmax.f32 %v3035_v26, %v3067_v1  ;;  %v3131_v3 = vld [vmem:[#allocation2 + $0x9c] sm:$0xff]  ;;  %v3162_v41 = vmax.f32 %v3098_v0, %v3130_v30  ;;  %v3350_v51 = vmax.f32 %v3286_v18, %v6281_v52  ;;  %v3351_v56 = vmax.f32 %v3287_v14, %v6286_v21 }
 0x1e3   : > { %v2583_v28 = vmax.f32 %v2519_v36, %v2551_v27  ;;  %v3504_v2 = vpack.c.bf16 %v3475_v24, %v3474_v20  ;;  %v3288_v43 = vmax.f32 %v6239_v13, %v6281_v52  ;;  %v2395_v23 = vmax.f32 %v6193_v17, %v2487_v12  ;;  %v6306_v54 = vld [vmem:[#allocation3 + $0xb8] sm:$0xff]  ;;  %2876 = vst.msk [vmem:[#allocation2 + $0xaa] sm:$0xff] %vm313_vm2, %v2582_v25  ;;  %v2490_v38 = vld [vmem:[#allocation3 + $0xc0] sm:$0xff]  ;;  %v2492_v24 = vld [vmem:[#allocation3 + $0xd0] sm:$0xff] }
 0x1e4   : > { %v3163_v63 = vmax.f32 %v3099_v32, %v3131_v3  ;;  %3194 = vst.msk [vmem:[#allocation3 + $0x80] sm:$0xff] %vm313_vm2, %v3162_v41  ;;  %v2456_v11 = vmax.f32 %v2392_v9, %v2486_v29  ;;  %v2457_v18 = vmax.f32 %v2393_v59, %v2487_v12  ;;  %v2396_v48 = vmax.f32 %v2486_v29, %v2488_v46 }
 0x1e5   : > { %2877 = vst.msk [vmem:[#allocation2 + $0xb2] sm:$0xff] %vm313_vm2, %v2583_v28  ;;  %v2607_v7 = vpack.c.bf16 %v2583_v28, %v2582_v25  ;;  %v2397_v13 = vmax.f32 %v2487_v12, %v6306_v54  ;;  %4449 = vmatprep.mubr.msk.bf16.mxu0 %vm313_vm2, %v3504_v2  ;;  %v3289_v22 = vmax.f32 %v6246_v39, %v6286_v21  ;;  %v2493_v2 = vld [vmem:[#allocation3 + $0xd8] sm:$0xff] }
 0x1e6   : > { %3195 = vst.msk [vmem:[#allocation3 + $0x88] sm:$0xff] %vm313_vm2, %v3163_v63  ;;  %v2520_v42 = vmax.f32 %v2456_v11, %v2488_v46  ;;  %v2458_v17 = vmax.f32 %v2394_v16, %v2488_v46  ;;  %v2459_v9 = vmax.f32 %v2395_v23, %v6306_v54  ;;  %v2521_v49 = vmax.f32 %v2457_v18, %v6306_v54  ;;  %v2918_v18 = vld [vmem:[#allocation2 + $0x120] sm:$0xff] }
 0x1e7   : > { %4424 = vmatmul.mubr.msk.bf16.gmra.mxu1 %vm313_vm2, %v2607_v7  ;;  %v2398_v4 = vmax.f32 %v2488_v46, %v2490_v38  ;;  %v2399_v29 = vmax.f32 %v6306_v54, %v2491_v50  ;;  %v2460_v60 = vmax.f32 %v2396_v48, %v2490_v38  ;;  %v2461_v61 = vmax.f32 %v2397_v13, %v2491_v50  ;;  %v6322_v5 = vld [vmem:[#allocation3 + $0x78] sm:$0xff]  ;;  %v2494_v54 = vld [vmem:[#allocation3 + $0xe0] sm:$0xff] }
 0x1e8   : > { %v2584_v14 = vmax.f32 %v2520_v42, %v5997_v58  ;;  %v2522_v12 = vmax.f32 %v2458_v17, %v2490_v38  ;;  %v2523_v39 = vmax.f32 %v2459_v9, %v2491_v50  ;;  %v2585_v36 = vmax.f32 %v2521_v49, %v6001_v6  ;;  %v2950_v7 = vld [vmem:[#allocation2 + $0x121] sm:$0xff] }
 0x1e9   : > { %v6319_v26 = vld [vmem:[#allocation3 + $0x70] sm:$0xff]  ;;  %v3477_v20 = vmax.f32 %v3413_v44, %v6322_v5  ;;  %v3415_v32 = vmax.f32 %v3351_v56, %v6322_v5  ;;  %v6333_v58 = vmax.f32 %v3289_v22, %v6322_v5  ;;  %v3291_v16 = vmax.f32 %v6286_v21, %v6322_v5 }
 0x1ea   : > { %v3476_v1 = vmax.f32 %v3412_v35, %v6319_v26  ;;  %v3414_v0 = vmax.f32 %v3350_v51, %v6319_v26  ;;  %v6327_v59 = vmax.f32 %v3288_v43, %v6319_v26  ;;  %2878 = vst.msk [vmem:[#allocation2 + $0xc2] sm:$0xff] %vm313_vm2, %v2584_v14  ;;  %v3290_v30 = vmax.f32 %v6281_v52, %v6319_v26  ;;  %v2908_v51 = vld [vmem:[#allocation2 + $0xa8] sm:$0xff] }
 0x1eb   : > { %v6338_v35 = vld [vmem:[#allocation3 + $0x80] sm:$0xff]  ;;  %2879 = vst.msk [vmem:[#allocation2 + $0xca] sm:$0xff] %vm313_vm2, %v2585_v36  ;;  %v2608_v6 = vpack.c.bf16 %v2585_v36, %v2584_v14  ;;  %v2586_v31 = vmax.f32 %v2522_v12, %v6005_v47  ;;  %v2587_v27 = vmax.f32 %v2523_v39, %v6009_v15  ;;  %v2462_v63 = vmax.f32 %v2398_v4, %v2492_v24  ;;  %v2940_v25 = vld [vmem:[#allocation2 + $0xa9] sm:$0xff] }
 0x1ec   : > { %v3505_v44 = vpack.c.bf16 %v3477_v20, %v3476_v1  ;;  %v3478_v41 = vmax.f32 %v3414_v0, %v6338_v35  ;;  %v2909_v52 = vld [vmem:[#allocation2 + $0xb0] sm:$0xff]  ;;  %v3416_v21 = vmax.f32 %v6327_v59, %v6338_v35  ;;  %v6354_v15 = vmax.f32 %v3290_v30, %v6338_v35  ;;  %v2495_v14 = vld [vmem:[#allocation3 + $0xe8] sm:$0xff] }
 0x1ed   : > { %v6345_v3 = vld [vmem:[#allocation3 + $0x88] sm:$0xff]  ;;  %v2941_v28 = vld [vmem:[#allocation2 + $0xb1] sm:$0xff]  ;;  %4427 = vmatprep.mubr.msk.bf16.mxu1 %vm313_vm2, %v2608_v6  ;;  %2880 = vst.msk [vmem:[#allocation2 + $0xda] sm:$0xff] %vm313_vm2, %v2586_v31  ;;  %2881 = vst.msk [vmem:[#allocation2 + $0xe2] sm:$0xff] %vm313_vm2, %v2587_v27  ;;  %v2972_v43 = vmax.f32 %v2908_v51, %v2940_v25  ;;  %v2524_v46 = vmax.f32 %v2460_v60, %v2492_v24  ;;  %v2525_v17 = vmax.f32 %v2461_v61, %v2493_v2 }
 0x1ee   : > { %v3479_v56 = vmax.f32 %v3415_v32, %v6345_v3  ;;  %v3417_v47 = vmax.f32 %v6333_v58, %v6345_v3  ;;  %4450 = vmatmul.mubr.msk.bf16.gmra.mxu0 %vm313_vm2, %v3505_v44  ;;  %v2973_v23 = vmax.f32 %v2909_v52, %v2941_v28  ;;  %v6361_v11 = vmax.f32 %v3291_v16, %v6345_v3  ;;  %v3004_v13 = vld [vmem:[#allocation2 + $0xaa] sm:$0xff]  ;;  %v3005_v22 = vld [vmem:[#allocation2 + $0xb2] sm:$0xff]  ;;  %v2921_v51 = vld [vmem:[#allocation2 + $0x140] sm:$0xff] }
 0x1ef   : > { %v3068_v42 = vld [vmem:[#allocation2 + $0xab] sm:$0xff]  ;;  %v2609_v9 = vpack.c.bf16 %v2587_v27, %v2586_v31  ;;  %v2463_v38 = vmax.f32 %v2399_v29, %v2493_v2  ;;  %v3036_v50 = vmax.f32 %v2972_v43, %v3004_v13  ;;  %v2588_v4 = vmax.f32 %v2524_v46, %v6014_v62  ;;  %v3069_v60 = vld [vmem:[#allocation2 + $0xb3] sm:$0xff]  ;;  %v3014_v29 = vld [vmem:[#allocation2 + $0x122] sm:$0xff] }
 0x1f0   : > { %v3506_v48 = vpack.c.bf16 %v3479_v56, %v3478_v41  ;;  %v3037_v49 = vmax.f32 %v2973_v23, %v3005_v22  ;;  %v2526_v12 = vmax.f32 %v2462_v63, %v2494_v54  ;;  %v2919_v39 = vld [vmem:[#allocation2 + $0x128] sm:$0xff]  ;;  %v2589_v20 = vmax.f32 %v2525_v17, %v6016_v55  ;;  %v2920_v55 = vld [vmem:[#allocation2 + $0x138] sm:$0xff] }
 0x1f1   : > { %v2951_v1 = vld [vmem:[#allocation2 + $0x129] sm:$0xff]  ;;  %v2910_v0 = vld [vmem:[#allocation2 + $0xc0] sm:$0xff]  ;;  %4428 = vmatmul.mubr.msk.bf16.gmra.mxu1 %vm313_vm2, %v2609_v9  ;;  %v2527_v61 = vmax.f32 %v2463_v38, %v2495_v14  ;;  %v2982_v32 = vmax.f32 %v2918_v18, %v2950_v7  ;;  %v3100_v16 = vmax.f32 %v3036_v50, %v3068_v42  ;;  %2882 = vst.msk [vmem:[#allocation2 + $0xf2] sm:$0xff] %vm313_vm2, %v2588_v4  ;;  %v3133_v56 = vld [vmem:[#allocation2 + $0xb4] sm:$0xff] }
 0x1f2   : > { %4453 = vmatprep.mubr.msk.bf16.mxu0 %vm313_vm2, %v3506_v48  ;;  %v2942_v36 = vld [vmem:[#allocation2 + $0xc1] sm:$0xff]  ;;  %v3101_v62 = vmax.f32 %v3037_v49, %v3069_v60  ;;  %v3132_v6 = vld [vmem:[#allocation2 + $0xac] sm:$0xff]  ;;  %v6371_v44 = vmax.f32 %v2526_v12, %v6083_v53  ;;  %v2952_v52 = vld [vmem:[#allocation2 + $0x139] sm:$0xff]  ;;  %2883 = vst.msk [vmem:[#allocation2 + $0xfa] sm:$0xff] %vm313_vm2, %v2589_v20  ;;  %v2610_v43 = vpack.c.bf16 %v2589_v20, %v2588_v4 }
 0x1f3   : > { %v6367_v30 = vld [vmem:[#allocation2 + $0x123] sm:$0xff]  ;;  %v2974_v24 = vmax.f32 %v2910_v0, %v2942_v36  ;;  %v2591_v23 = vmax.f32 %v2527_v61, %v6085_v19  ;;  %v2983_v46 = vmax.f32 %v2919_v39, %v2951_v1  ;;  %v3164_v54 = vmax.f32 %v3100_v16, %v3132_v6  ;;  %v3079_v42 = vld [vmem:[#allocation2 + $0x12b] sm:$0xff]  ;;  %v3016_v20 = vld [vmem:[#allocation2 + $0x13a] sm:$0xff] }
 0x1f4   : > { %v2911_v31 = vld [vmem:[#allocation2 + $0xc8] sm:$0xff]  ;;  %v3165_v18 = vmax.f32 %v3101_v62, %v3133_v56  ;;  %v2912_v48 = vld [vmem:[#allocation2 + $0xd8] sm:$0xff]  ;;  %v2913_v13 = vld [vmem:[#allocation2 + $0xe0] sm:$0xff]  ;;  %2884 = vst.msk [vmem:[#allocation2 + $0x10a] sm:$0xff] %vm313_vm2, %v6371_v44  ;;  %v3046_v22 = vmax.f32 %v2982_v32, %v3014_v29  ;;  %4431 = vmatprep.mubr.msk.bf16.mxu1 %vm313_vm2, %v2610_v43  ;;  %v2612_v4 = vpack.c.bf16 %v6115_v37, %v6113_v33 }
 0x1f5   : > { %v2943_v27 = vld [vmem:[#allocation2 + $0xc9] sm:$0xff]  ;;  %v2953_v63 = vld [vmem:[#allocation2 + $0x141] sm:$0xff]  ;;  %v2944_v9 = vld [vmem:[#allocation2 + $0xd9] sm:$0xff]  ;;  %2885 = vst.msk [vmem:[#allocation2 + $0x112] sm:$0xff] %vm313_vm2, %v2591_v23  ;;  %v2611_v49 = vpack.c.bf16 %v2591_v23, %v6371_v44  ;;  %v2984_v33 = vmax.f32 %v2920_v55, %v2952_v52  ;;  %v3292_v52 = vmax.f32 %v6319_v26, %v6338_v35 }
 0x1f6   : > { %v3015_v41 = vld [vmem:[#allocation2 + $0x12a] sm:$0xff]  ;;  %v2975_v25 = vmax.f32 %v2911_v31, %v2943_v27  ;;  %v3006_v28 = vld [vmem:[#allocation2 + $0xc2] sm:$0xff]  ;;  %3196 = vst.msk [vmem:[#allocation3 + $0x90] sm:$0xff] %vm313_vm2, %v3164_v54  ;;  %3197 = vst.msk [vmem:[#allocation3 + $0x98] sm:$0xff] %vm313_vm2, %v3165_v18  ;;  %v2976_v1 = vmax.f32 %v2912_v48, %v2944_v9  ;;  %v3110_v0 = vmax.f32 %v3046_v22, %v6367_v30 }
 0x1f7   : > { %v3070_v2 = vld [vmem:[#allocation2 + $0xc3] sm:$0xff]  ;;  %v3038_v53 = vmax.f32 %v2974_v24, %v3006_v28  ;;  %v3047_v19 = vmax.f32 %v2983_v46, %v3015_v41  ;;  %v3071_v14 = vld [vmem:[#allocation2 + $0xcb] sm:$0xff]  ;;  %v3008_v29 = vld [vmem:[#allocation2 + $0xda] sm:$0xff]  ;;  %v2985_v37 = vmax.f32 %v2921_v51, %v2953_v63  ;;  %v3048_v46 = vmax.f32 %v2984_v33, %v3016_v20 }
 0x1f8   : > { %v3007_v7 = vld [vmem:[#allocation2 + $0xca] sm:$0xff]  ;;  %v2945_v38 = vld [vmem:[#allocation2 + $0xe1] sm:$0xff]  ;;  %v3040_v24 = vmax.f32 %v2976_v1, %v3008_v29  ;;  %v3010_v9 = vld [vmem:[#allocation2 + $0xf2] sm:$0xff] }
 0x1f9   : > { %v3039_v17 = vmax.f32 %v2975_v25, %v3007_v7  ;;  %v3142_v50 = vld [vmem:[#allocation2 + $0x124] sm:$0xff]  ;;  %v3102_v12 = vmax.f32 %v3038_v53, %v3070_v2  ;;  %v2977_v60 = vmax.f32 %v2913_v13, %v2945_v38  ;;  %v3143_v36 = vld [vmem:[#allocation2 + $0x12c] sm:$0xff]  ;;  %v3072_v62 = vld [vmem:[#allocation2 + $0xdb] sm:$0xff]  ;;  %v3111_v6 = vmax.f32 %v3047_v19, %v3079_v42  ;;  %4432 = vmatmul.mubr.msk.bf16.gmra.mxu1 %vm313_vm2, %v2611_v49 }
 0x1fa   : > { %v3134_v39 = vld [vmem:[#allocation2 + $0xc4] sm:$0xff]  ;;  %v3135_v31 = vld [vmem:[#allocation2 + $0xcc] sm:$0xff]  ;;  %v3174_v41 = vmax.f32 %v3110_v0, %v3142_v50  ;;  %v3080_v56 = vld [vmem:[#allocation2 + $0x13b] sm:$0xff]  ;;  %v3104_v55 = vmax.f32 %v3040_v24, %v3072_v62  ;;  %4435 = vmatprep.mubr.msk.bf16.mxu1 %vm313_vm2, %v2612_v4  ;;  %v3293_v42 = vmax.f32 %v6322_v5, %v6345_v3 }
 0x1fb   : > { %v3017_v61 = vld [vmem:[#allocation2 + $0x142] sm:$0xff]  ;;  %v3103_v32 = vmax.f32 %v3039_v17, %v3071_v14  ;;  %v3166_v27 = vmax.f32 %v3102_v12, %v3134_v39  ;;  %v2914_v30 = vld [vmem:[#allocation2 + $0xf0] sm:$0xff]  ;;  %v3175_v23 = vmax.f32 %v3111_v6, %v3143_v36  ;;  %v2915_v63 = vld [vmem:[#allocation2 + $0xf8] sm:$0xff]  ;;  %v3112_v26 = vmax.f32 %v3048_v46, %v3080_v56 }
 0x1fc   : > { %v3009_v16 = vld [vmem:[#allocation2 + $0xe2] sm:$0xff]  ;;  %v2946_v43 = vld [vmem:[#allocation2 + $0xf1] sm:$0xff]  ;;  %v3049_v54 = vmax.f32 %v2985_v37, %v3017_v61  ;;  %v2947_v18 = vld [vmem:[#allocation2 + $0xf9] sm:$0xff]  ;;  %3206 = vst.msk [vmem:[#allocation3 + $0xe0] sm:$0xff] %vm313_vm2, %v3174_v41  ;;  %v2615_v39 = vpack.c.bf16 %v6145_v8, %v6142_v34  ;;  %v2613_v61 = vpack.c.bf16 %v6119_v10, %v6117_v45 }
 0x1fd   : > { %v3041_v44 = vmax.f32 %v2977_v60, %v3009_v16  ;;  %v3081_v25 = vld [vmem:[#allocation2 + $0x143] sm:$0xff]  ;;  %v3167_v28 = vmax.f32 %v3103_v32, %v3135_v31  ;;  %3198 = vst.msk [vmem:[#allocation3 + $0xa0] sm:$0xff] %vm313_vm2, %v3166_v27  ;;  %v2978_v7 = vmax.f32 %v2914_v30, %v2946_v43  ;;  %v2979_v17 = vmax.f32 %v2915_v63, %v2947_v18  ;;  %v3011_v49 = vld [vmem:[#allocation2 + $0xfa] sm:$0xff]  ;;  %v6397_v1 = vld [vmem:[#allocation3 + $0x90] sm:$0xff]  ;;  %v6428_v30 = vpop.f32.mrf.mxu0 }
 0x1fe   : > { %v3073_v2 = vld [vmem:[#allocation2 + $0xe3] sm:$0xff]  ;;  %3207 = vst.msk [vmem:[#allocation3 + $0xe8] sm:$0xff] %vm313_vm2, %v3175_v23  ;;  %v3113_v38 = vmax.f32 %v3049_v54, %v3081_v25  ;;  %v3074_v4 = vld [vmem:[#allocation2 + $0xf3] sm:$0xff]  ;;  %v3480_v32 = vmax.f32 %v3416_v21, %v6397_v1  ;;  %v3418_v16 = vmax.f32 %v6354_v15, %v6397_v1  ;;  %v3075_v45 = vld [vmem:[#allocation2 + $0xfb] sm:$0xff]  ;;  %v3356_v59 = vmax.f32 %v3292_v52, %v6397_v1 }
 0x1ff   : > { %v3105_v51 = vmax.f32 %v3041_v44, %v3073_v2  ;;  %v3144_v53 = vld [vmem:[#allocation2 + $0x13c] sm:$0xff]  ;;  %v3145_v48 = vld [vmem:[#allocation2 + $0x144] sm:$0xff]  ;;  %3199 = vst.msk [vmem:[#allocation3 + $0xa8] sm:$0xff] %vm313_vm2, %v3167_v28  ;;  %v3042_v14 = vmax.f32 %v2978_v7, %v3010_v9  ;;  %v3043_v5 = vmax.f32 %v2979_v17, %v3011_v49  ;;  %v2917_v10 = vld [vmem:[#allocation2 + $0x110] sm:$0xff]  ;;  %v3294_v37 = vmax.f32 %v6338_v35, %v6397_v1 }
 0x200   : > { %v3136_v13 = vld [vmem:[#allocation2 + $0xdc] sm:$0xff]  ;;  %v3137_v22 = vld [vmem:[#allocation2 + $0xe4] sm:$0xff]  ;;  %v3176_v36 = vmax.f32 %v3112_v26, %v3144_v53  ;;  %v3177_v20 = vmax.f32 %v3113_v38, %v3145_v48  ;;  %v2949_v6 = vld [vmem:[#allocation2 + $0x111] sm:$0xff]  ;;  %v2614_v2 = vpack.c.bf16 %v6135_v57, %v6132_v40 }
 0x201   : > { %v3168_v19 = vmax.f32 %v3104_v55, %v3136_v13  ;;  %v3169_v50 = vmax.f32 %v3105_v51, %v3137_v22  ;;  %v2916_v12 = vld [vmem:[#allocation2 + $0x108] sm:$0xff]  ;;  %v6399_v60 = vld [vmem:[#allocation3 + $0x98] sm:$0xff]  ;;  %v3106_v33 = vmax.f32 %v3042_v14, %v3074_v4  ;;  %v3107_v58 = vmax.f32 %v3043_v5, %v3075_v45  ;;  %4436 = vmatmul.mubr.msk.bf16.gmra.mxu1 %vm313_vm2, %v2613_v61 }
 0x202   : > { %v2948_v0 = vld [vmem:[#allocation2 + $0x109] sm:$0xff]  ;;  %v3481_v29 = vmax.f32 %v3417_v47, %v6399_v60  ;;  %v3419_v62 = vmax.f32 %v6361_v11, %v6399_v60  ;;  %v3357_v21 = vmax.f32 %v3293_v42, %v6399_v60  ;;  %3208 = vst.msk [vmem:[#allocation3 + $0xf0] sm:$0xff] %vm313_vm2, %v3176_v36  ;;  %3209 = vst.msk [vmem:[#allocation3 + $0xf8] sm:$0xff] %vm313_vm2, %v3177_v20  ;;  %v3138_v15 = vld [vmem:[#allocation2 + $0xf4] sm:$0xff]  ;;  %4439 = vmatprep.mubr.msk.bf16.mxu1 %vm313_vm2, %v2614_v2  ;;  %v6436_v42 = vpop.f32.mrf.mxu0 }
 0x203   : > { %3200 = vst.msk [vmem:[#allocation3 + $0xb0] sm:$0xff] %vm313_vm2, %v3168_v19  ;;  %3201 = vst.msk [vmem:[#allocation3 + $0xb8] sm:$0xff] %vm313_vm2, %v3169_v50  ;;  %v3139_v11 = vld [vmem:[#allocation2 + $0xfc] sm:$0xff]  ;;  %v3295_v31 = vmax.f32 %v6345_v3, %v6399_v60  ;;  %v2980_v27 = vmax.f32 %v2916_v12, %v2948_v0  ;;  %v3170_v44 = vmax.f32 %v3106_v33, %v3138_v15  ;;  %v3012_v25 = vld [vmem:[#allocation2 + $0x10a] sm:$0xff] }
 0x204   : > { %v3507_v47 = vpack.c.bf16 %v3481_v29, %v3480_v32  ;;  %v3450_v24 = vld [vmem:[#allocation3 + $0xa0] sm:$0xff]  ;;  %v3171_v41 = vmax.f32 %v3107_v58, %v3139_v11  ;;  %v2981_v56 = vmax.f32 %v2917_v10, %v2949_v6  ;;  %v3076_v28 = vld [vmem:[#allocation2 + $0x10b] sm:$0xff]  ;;  %v3077_v40 = vld [vmem:[#allocation2 + $0x113] sm:$0xff]  ;;  %v6445_v0 = vpop.f32.mrf.mxu0 }
 0x205   : > { %v3482_v43 = vmax.f32 %v3418_v16, %v3450_v24  ;;  %v3420_v23 = vmax.f32 %v3356_v59, %v3450_v24  ;;  %v3358_v3 = vmax.f32 %v3294_v37, %v3450_v24  ;;  %v3013_v46 = vld [vmem:[#allocation2 + $0x112] sm:$0xff]  ;;  %v3044_v54 = vmax.f32 %v2980_v27, %v3012_v25  ;;  %3202 = vst.msk [vmem:[#allocation3 + $0xc0] sm:$0xff] %vm313_vm2, %v3170_v44  ;;  %v3458_v37 = vld [vmem:[#allocation3 + $0xe0] sm:$0xff] }
 0x206   : > { %4454 = vmatmul.mubr.msk.bf16.gmra.mxu0 %vm313_vm2, %v3507_v47  ;;  %v3451_v35 = vld [vmem:[#allocation3 + $0xa8] sm:$0xff]  ;;  %3203 = vst.msk [vmem:[#allocation3 + $0xc8] sm:$0xff] %vm313_vm2, %v3171_v41  ;;  %v3045_v63 = vmax.f32 %v2981_v56, %v3013_v46  ;;  %v3296_v18 = vmax.f32 %v6397_v1, %v3450_v24  ;;  %v3141_v38 = vld [vmem:[#allocation2 + $0x114] sm:$0xff]  ;;  %v6448_v6 = vpop.f32.mrf.mxu0 }
 0x207   : > { %v3483_v55 = vmax.f32 %v3419_v62, %v3451_v35  ;;  %v3421_v51 = vmax.f32 %v3357_v21, %v3451_v35  ;;  %v3359_v52 = vmax.f32 %v3295_v31, %v3451_v35  ;;  %v3108_v57 = vmax.f32 %v3044_v54, %v3076_v28  ;;  %v3140_v26 = vld [vmem:[#allocation2 + $0x10c] sm:$0xff] }
 0x208   : > { %v3109_v13 = vmax.f32 %v3045_v63, %v3077_v40  ;;  %v3297_v22 = vmax.f32 %v6399_v60, %v3451_v35  ;;  %v6451_v11 = vpop.f32.mrf.mxu0  ;;  %v3459_v31 = vld [vmem:[#allocation3 + $0xe8] sm:$0xff] }
 0x209   : > { %v3508_v7 = vpack.c.bf16 %v3483_v55, %v3482_v43  ;;  %v3172_v49 = vmax.f32 %v3108_v57, %v3140_v26  ;;  %4440 = vmatmul.mubr.msk.bf16.gmra.mxu1 %vm313_vm2, %v2615_v39  ;;  %v3461_v15 = vld [vmem:[#allocation3 + $0xf8] sm:$0xff]  ;;  %v3460_v2 = vld [vmem:[#allocation3 + $0xf0] sm:$0xff]  ;;  %v3463_v55 = vld [vmem:[#allocation3 + $0x108] sm:$0xff] }
 0x20a   : > { %v3452_v53 = vld [vmem:[#allocation3 + $0xb0] sm:$0xff]  ;;  %v3453_v48 = vld [vmem:[#allocation3 + $0xb8] sm:$0xff]  ;;  %v3173_v14 = vmax.f32 %v3109_v13, %v3141_v38  ;;  %v1849_v63 = vpop.f32.mrf.mxu0 }
 0x20b   : > { %v3484_v17 = vmax.f32 %v3420_v23, %v3452_v53  ;;  %v3485_v9 = vmax.f32 %v3421_v51, %v3453_v48  ;;  %4457 = vmatprep.mubr.msk.bf16.mxu0 %vm313_vm2, %v3508_v7  ;;  %v3422_v19 = vmax.f32 %v3358_v3, %v3452_v53  ;;  %v3423_v50 = vmax.f32 %v3359_v52, %v3453_v48  ;;  %v3465_v26 = vld [vmem:[#allocation3 + $0x118] sm:$0xff] }
 0x20c   : > { %v3360_v12 = vmax.f32 %v3296_v18, %v3452_v53  ;;  %3204 = vst.msk [vmem:[#allocation3 + $0xd0] sm:$0xff] %vm313_vm2, %v3172_v49  ;;  %3205 = vst.msk [vmem:[#allocation3 + $0xd8] sm:$0xff] %vm313_vm2, %v3173_v14  ;;  %v3361_v1 = vmax.f32 %v3297_v22, %v3453_v48  ;;  %v3298_v60 = vmax.f32 %v3450_v24, %v3452_v53  ;;  %v3454_v36 = vld [vmem:[#allocation3 + $0xc0] sm:$0xff]  ;;  %v4384_v38 = vpop.f32.mrf.mxu0 }
 0x20d   : > { %v3509_v4 = vpack.c.bf16 %v3485_v9, %v3484_v17  ;;  %v3299_v5 = vmax.f32 %v3451_v35, %v3453_v48  ;;  %v3455_v20 = vld [vmem:[#allocation3 + $0xc8] sm:$0xff]  ;;  %v3486_v61 = vmax.f32 %v3422_v19, %v3454_v36  ;;  %v3300_v59 = vmax.f32 %v3452_v53, %v3454_v36  ;;  %v3462_v53 = vld [vmem:[#allocation3 + $0x100] sm:$0xff] }
 0x20e   : > { %v3487_v32 = vmax.f32 %v3423_v50, %v3455_v20  ;;  %v3424_v29 = vmax.f32 %v3360_v12, %v3454_v36  ;;  %v3425_v62 = vmax.f32 %v3361_v1, %v3455_v20  ;;  %v3362_v45 = vmax.f32 %v3298_v60, %v3454_v36 }
 0x20f   : > { %4458 = vmatmul.mubr.msk.bf16.gmra.mxu0 %vm313_vm2, %v3509_v4  ;;  %v3363_v10 = vmax.f32 %v3299_v5, %v3455_v20  ;;  %v3301_v21 = vmax.f32 %v3453_v48, %v3455_v20  ;;  %v3307_v3 = vmax.f32 %v3459_v31, %v3461_v15  ;;  %v3306_v18 = vmax.f32 %v3458_v37, %v3460_v2  ;;  %v3464_v4 = vld [vmem:[#allocation3 + $0x110] sm:$0xff] }
 0x210   : > { %v3510_v16 = vpack.c.bf16 %v3487_v32, %v3486_v61  ;;  %v3309_v12 = vmax.f32 %v3461_v15, %v3463_v55  ;;  %v1852_v61 = vpop.f32.mrf.mxu0 }
 0x211   : > { %v3371_v22 = vmax.f32 %v3307_v3, %v3463_v55  ;;  %v3370_v50 = vmax.f32 %v3306_v18, %v3462_v53 }
 0x212   : > { %4461 = vmatprep.mubr.msk.bf16.mxu0 %vm313_vm2, %v3510_v16  ;;  %v3466_v16 = vld [vmem:[#allocation3 + $0x120] sm:$0xff] }
 0x213   : > { %v3456_v34 = vld [vmem:[#allocation3 + $0xd0] sm:$0xff]  ;;  %v3457_v8 = vld [vmem:[#allocation3 + $0xd8] sm:$0xff]  ;;  %v3435_v60 = vmax.f32 %v3371_v22, %v3465_v26  ;;  %v3434_v32 = vmax.f32 %v3370_v50, %v3464_v4 }
 0x214   : > { %v3488_v39 = vmax.f32 %v3424_v29, %v3456_v34  ;;  %v3489_v33 = vmax.f32 %v3425_v62, %v3457_v8  ;;  %v3426_v58 = vmax.f32 %v3362_v45, %v3456_v34  ;;  %v3427_v47 = vmax.f32 %v3363_v10, %v3457_v8 }
 0x215   : > { %v3364_v27 = vmax.f32 %v3300_v59, %v3456_v34  ;;  %v3365_v24 = vmax.f32 %v3301_v21, %v3457_v8  ;;  %v3302_v44 = vmax.f32 %v3454_v36, %v3456_v34  ;;  %v3303_v41 = vmax.f32 %v3455_v20, %v3457_v8  ;;  %v3467_v36 = vld [vmem:[#allocation3 + $0x128] sm:$0xff]  ;;  %v4387_v21 = vpop.f32.mrf.mxu0 }
 0x216   : > { %v3511_v56 = vpack.c.bf16 %v3489_v33, %v3488_v39  ;;  %v3490_v25 = vmax.f32 %v3426_v58, %v3458_v37  ;;  %v3491_v28 = vmax.f32 %v3427_v47, %v3459_v31  ;;  %v3304_v51 = vmax.f32 %v3456_v34, %v3458_v37  ;;  %v3469_v58 = vld [vmem:[#allocation3 + $0x138] sm:$0xff] }
 0x217   : > { %v3429_v35 = vmax.f32 %v3365_v24, %v3459_v31  ;;  %v3366_v43 = vmax.f32 %v3302_v44, %v3458_v37  ;;  %v3367_v23 = vmax.f32 %v3303_v41, %v3459_v31  ;;  %v3428_v54 = vmax.f32 %v3364_v27, %v3458_v37  ;;  %v6458_v37 = vpop.f32.mrf.mxu1 }
 0x218   : > { %4462 = vmatmul.mubr.msk.bf16.gmra.mxu0 %vm313_vm2, %v3511_v56  ;;  %v3512_v46 = vpack.c.bf16 %v3491_v28, %v3490_v25  ;;  %v3305_v52 = vmax.f32 %v3457_v8, %v3459_v31  ;;  %v3368_v9 = vmax.f32 %v3304_v51, %v3460_v2  ;;  %v3308_v20 = vmax.f32 %v3460_v2, %v3462_v53  ;;  %v3468_v31 = vld [vmem:[#allocation3 + $0x130] sm:$0xff] }
 0x219   : > { %v3430_v40 = vmax.f32 %v3366_v43, %v3460_v2  ;;  %v3431_v57 = vmax.f32 %v3367_v23, %v3461_v15  ;;  %v3493_v7 = vmax.f32 %v3429_v35, %v3461_v15  ;;  %v3492_v17 = vmax.f32 %v3428_v54, %v3460_v2  ;;  %v6461_v24 = vpop.f32.mrf.mxu1 }
 0x21a   : > { %4465 = vmatprep.mubr.msk.bf16.mxu0 %vm313_vm2, %v3512_v46  ;;  %v3369_v48 = vmax.f32 %v3305_v52, %v3461_v15  ;;  %v3432_v5 = vmax.f32 %v3368_v9, %v3462_v53  ;;  %v3373_v62 = vmax.f32 %v3309_v12, %v3465_v26  ;;  %v3499_v45 = vmax.f32 %v3435_v60, %v3467_v36  ;;  %v1865_v15 = vpop.f32.mrf.mxu0 }
 0x21b   : > { %v3495_v13 = vmax.f32 %v3431_v57, %v3463_v55  ;;  %v3494_v19 = vmax.f32 %v3430_v40, %v3462_v53  ;;  %v3513_v49 = vpack.c.bf16 %v3493_v7, %v3492_v17  ;;  %v3372_v59 = vmax.f32 %v3308_v20, %v3464_v4  ;;  %v6463_v56 = vpop.f32.mrf.mxu1 }
 0x21c   : > { %v3433_v14 = vmax.f32 %v3369_v48, %v3463_v55  ;;  %v3496_v10 = vmax.f32 %v3432_v5, %v3464_v4  ;;  %v3498_v34 = vmax.f32 %v3434_v32, %v3466_v16  ;;  %v3437_v39 = vmax.f32 %v3373_v62, %v3467_v36  ;;  %v4388_v41 = vpop.f32.mrf.mxu0 }
 0x21d   : > { %v3514_v1 = vpack.c.bf16 %v3495_v13, %v3494_v19  ;;  %v3436_v47 = vmax.f32 %v3372_v59, %v3466_v16  ;;  %v6465_v28 = vpop.f32.mrf.mxu1 }
 0x21e   : > { %v3497_v29 = vmax.f32 %v3433_v14, %v3465_v26  ;;  %v3516_v33 = vpack.c.bf16 %v3499_v45, %v3498_v34  ;;  %v3501_v27 = vmax.f32 %v3437_v39, %v3469_v58  ;;  %v1868_v2 = vpop.f32.mrf.mxu0 }
 0x21f   : > { %v3500_v44 = vmax.f32 %v3436_v47, %v3468_v31  ;;  %v4349_v35 = vpop.f32.mrf.mxu1 }
 0x220   : > { %4466 = vmatmul.mubr.msk.bf16.gmra.mxu0 %vm313_vm2, %v3513_v49  ;;  %v3515_v8 = vpack.c.bf16 %v3497_v29, %v3496_v10  ;;  %v6469_v43 = vadd.f32 %v6451_v11, %v4349_v35  ;;  %v4391_v46 = vpop.f32.mrf.mxu0 }
 0x221   : > { %4469 = vmatprep.mubr.msk.bf16.mxu0 %vm313_vm2, %v3514_v1  ;;  %v3517_v25 = vpack.c.bf16 %v3501_v27, %v3500_v44  ;;  %v1637_v23 = vpop.f32.mrf.mxu1 }
 0x222   : > { %v6471_v3 = vadd.f32 %v1849_v63, %v1637_v23  ;;  %v1881_v51 = vpop.f32.mrf.mxu0 }
 0x223   : > { %v4350_v54 = vpop.f32.mrf.mxu1 }
 0x224   : > { %v6473_v55 = vadd.f32 %v4384_v38, %v4350_v54  ;;  %v4392_v57 = vpop.f32.mrf.mxu0 }
 0x225   : > { %v1640_v52 = vpop.f32.mrf.mxu1 }
 0x226   : > { %v6475_v40 = vadd.f32 %v1852_v61, %v1640_v52  ;;  %v1884_v18 = vpop.f32.mrf.mxu0 }
 0x228   : > { %4470 = vmatmul.mubr.msk.bf16.gmra.mxu0 %vm313_vm2, %v3515_v8  ;;  %v4395_v7 = vpop.f32.mrf.mxu0 }
 0x229   : > { %4473 = vmatprep.mubr.msk.bf16.mxu0 %vm313_vm2, %v3516_v33 }
 0x22a   : > { %v1897_v53 = vpop.f32.mrf.mxu0 }
 0x22c   : > { %v4396_v48 = vpop.f32.mrf.mxu0 }
 0x22e   : > { %v1900_v13 = vpop.f32.mrf.mxu0 }
 0x230   : > { %4474 = vmatmul.mubr.msk.bf16.gmra.mxu0 %vm313_vm2, %v3517_v25  ;;  %v4399_v17 = vpop.f32.mrf.mxu0 }
 0x232   : > { %v1913_v19 = vpop.f32.mrf.mxu0 }
 0x234   : > { %v4400_v12 = vpop.f32.mrf.mxu0 }
 0x236   : > { %v1916_v20 = vpop.f32.mrf.mxu0 }
 0x23c   : > { %v4403_v62 = vpop.f32.mrf.mxu0 }
 0x23e   : > { %v4353_v22 = vpop.f32.mrf.mxu1  ;;  %v1929_v34 = vpop.f32.mrf.mxu0 }
 0x23f   : > { %v6477_v11 = vadd.f32 %v4387_v21, %v4353_v22 }
 0x240   : > { %v1653_v63 = vpop.f32.mrf.mxu1  ;;  %v4404_v47 = vpop.f32.mrf.mxu0 }
 0x241   : > { %v6479_v9 = vadd.f32 %v1865_v15, %v1653_v63 }
 0x242   : > { %v4354_v26 = vpop.f32.mrf.mxu1 }
 0x243   : > { %v6481_v38 = vadd.f32 %v4388_v41, %v4354_v26  ;;  %v1932_v41 = vpop.f32.mrf.mxu0 }
 0x244   : > { %v1656_v50 = vpop.f32.mrf.mxu1 }
 0x245   : > { %v6483_v49 = vadd.f32 %v1868_v2, %v1656_v50 }
 0x246   : > { %v4357_v14 = vpop.f32.mrf.mxu1 }
 0x247   : > { %v6485_v4 = vadd.f32 %v4391_v46, %v4357_v14  ;;  %v4407_v46 = vpop.f32.mrf.mxu0 }
 0x248   : > { %v1669_v1 = vpop.f32.mrf.mxu1 }
 0x249   : > { %v6487_v60 = vadd.f32 %v1881_v51, %v1669_v1 }
 0x24a   : > { %v4358_v5 = vpop.f32.mrf.mxu1 }
 0x24b   : > { %v6489_v36 = vadd.f32 %v4392_v57, %v4358_v5 }
 0x24c   : > { %v1672_v61 = vpop.f32.mrf.mxu1 }
 0x24d   : > { %v6491_v32 = vadd.f32 %v1884_v18, %v1672_v61  ;;  %v1945_v18 = vpop.f32.mrf.mxu0 }
 0x24e   : > { %v4361_v29 = vpop.f32.mrf.mxu1 }
 0x24f   : > { %v6493_v16 = vadd.f32 %v4395_v7, %v4361_v29  ;;  %v4408_v22 = vpop.f32.mrf.mxu0 }
 0x250   : > { %v1685_v45 = vpop.f32.mrf.mxu1 }
 0x251   : > { %v6495_v10 = vadd.f32 %v1897_v53, %v1685_v45  ;;  %v1948_v50 = vpop.f32.mrf.mxu0 }
 0x252   : > { %v4362_v59 = vpop.f32.mrf.mxu1 }
 0x253   : > { %v6497_v21 = vadd.f32 %v4396_v48, %v4362_v59 }
 0x254   : > { %v1688_v8 = vpop.f32.mrf.mxu1 }
 0x255   : > { %v6499_v39 = vadd.f32 %v1900_v13, %v1688_v8 }
 0x256   : > { %v4365_v33 = vpop.f32.mrf.mxu1 }
 0x257   : > { %v6501_v58 = vadd.f32 %v4399_v17, %v4365_v33  ;;  %v1842_v33 = vadd.f32 %v6428_v30, %v6458_v37  ;;  %v6545_v30 = vld [vmem:[%s6930_s6] ss:$0 sm:$0xff]  ;;  %v1837_v37 = vadd.f32 %v6448_v6, %v6465_v28 }
 0x258   : > { %v1701_v15 = vpop.f32.mrf.mxu1 }
 0x259   : > { %v6503_v31 = vadd.f32 %v1913_v19, %v1701_v15 }
 0x25a   : > { %v4366_v27 = vpop.f32.mrf.mxu1 }
 0x25b   : > { %v6505_v44 = vadd.f32 %v4400_v12, %v4366_v27 }
 0x25c   : > { %v1704_v25 = vpop.f32.mrf.mxu1 }
 0x25d   : > { %v6507_v2 = vadd.f32 %v1916_v20, %v1704_v25  ;;  %v6538_v25 = vld [vmem:[%s6929_s5] ss:$0 sm:$0xff] }
 0x260   : > { %v4369_v35 = vpop.f32.mrf.mxu1 }
 0x261   : > { %v6509_v23 = vadd.f32 %v4403_v62, %v4369_v35  ;;  %v1845_v35 = vadd.f32 %v6445_v0, %v6463_v56 }
 0x262   : > { %v1717_v54 = vpop.f32.mrf.mxu1 }
 0x263   : > { %v6511_v51 = vadd.f32 %v1929_v34, %v1717_v54 }
 0x264   : > { %v4370_v52 = vpop.f32.mrf.mxu1 }
 0x265   : > { %v6513_v57 = vadd.f32 %v4404_v47, %v4370_v52  ;;  %v1834_v47 = vadd.f32 %v6436_v42, %v6461_v24 }
 0x266   : > { %v1720_v7 = vpop.f32.mrf.mxu1 }
 0x267   : > { %v6515_v53 = vadd.f32 %v1932_v41, %v1720_v7 }
 0x268   : > { %v4373_v48 = vpop.f32.mrf.mxu1 }
 0x269   : > { %v6517_v13 = vadd.f32 %v4407_v46, %v4373_v48 }
 0x26a   : > { %v1733_v17 = vpop.f32.mrf.mxu1 }
 0x26b   : > { %v6519_v63 = vadd.f32 %v1945_v18, %v1733_v17 }
 0x26c   : > { %v4374_v26 = vpop.f32.mrf.mxu1 }
 0x26d   : > { %v6521_v19 = vadd.f32 %v4408_v22, %v4374_v26 }
 0x26e   : > { %v1736_v14 = vpop.f32.mrf.mxu1 }
 0x26f   : > { %v6523_v12 = vadd.f32 %v1948_v50, %v1736_v14 }
 0x275   : > { %v4413_v1 = vpop.f32.mrf.mxu1 }
 0x276   : > { %v2832_v15 = vadd.f32 %v4413_v1, %v1842_v33 }
 0x277   : > { %v2703_v5 = vpop.f32.mrf.mxu1 }
 0x278   : > { %v2830_v46 = vadd.f32 %v2703_v5, %v1834_v47 }
 0x279   : > { %v4414_v20 = vpop.f32.mrf.mxu1 }
 0x27a   : > { %v2833_v24 = vadd.f32 %v4414_v20, %v1845_v35 }
 0x27b   : > { %v2706_v61 = vpop.f32.mrf.mxu1 }
 0x27c   : > { %v2831_v56 = vadd.f32 %v2706_v61, %v1837_v37 }
 0x284   : > { %v4417_v29 = vpop.f32.mrf.mxu1 }
 0x286   : > { %v2719_v62 = vpop.f32.mrf.mxu1 }
 0x288   : > { %v4418_v45 = vpop.f32.mrf.mxu1 }
 0x28a   : > { %v2722_v59 = vpop.f32.mrf.mxu1 }
 0x290   : > { %v6525_v34 = vpop.f32.mrf.mxu1 }
 0x292   : > { %v6527_v8 = vpop.f32.mrf.mxu1 }
 0x294   : > { %v6533_v27 = vpop.f32.mrf.mxu1 }
 0x296   : > { %v6550_v7 = vpop.f32.mrf.mxu1 }
 0x2a1   : > { %v4447_v41 = vpop.f32.mrf.mxu0 }
 0x2a2   : > { %v3734_v54 = vadd.f32 %v4447_v41, %v2832_v15 }
 0x2a3   : > { %v3605_v42 = vpop.f32.mrf.mxu0 }
 0x2a4   : > { %v3773_v52 = vmul.f32 %v6538_v25, %v3734_v54  ;;  %v3732_v18 = vadd.f32 %v3605_v42, %v2830_v46  ;;  %v2836_v54 = vadd.f32 %v4417_v29, %v6469_v43 }
 0x2a5   : > { %v4448_v48 = vpop.f32.mrf.mxu0 }
 0x2a6   : > { %v6553_v0 = vadd.f32 %v6545_v30, %v3773_v52  ;;  %v3771_v22 = vmul.f32 %v6538_v25, %v3732_v18  ;;  %v3735_v17 = vadd.f32 %v4448_v48, %v2833_v24  ;;  %v2834_v18 = vadd.f32 %v2719_v62, %v6471_v3 }
 0x2a7   : > { %v3608_v26 = vpop.f32.mrf.mxu0  ;;  %v6561_v1 = vpop.f32.mrf.mxu1 }
 0x2a8   : > { %v3844_v50 = vsub.f32 0.0, %v6553_v0  ;;  %v6558_v14 = vadd.f32 %v6545_v30, %v3771_v22  ;;  %v3774_v6 = vmul.f32 %v6538_v25, %v3735_v17  ;;  %v3733_v28 = vadd.f32 %v3608_v26, %v2831_v56 }
 0x2a9   : > { %v6568_v47 = vpop.f32.mrf.mxu1  ;;  %v2837_v17 = vadd.f32 %v4418_v45, %v6473_v55 }
 0x2aa   : > { %v3878_v5 = vmul.f32 1.442695, %v3844_v50  ;;  %v3842_v20 = vsub.f32 0.0, %v6558_v14  ;;  %v6565_v33 = vadd.f32 %v6545_v30, %v3774_v6  ;;  %v3772_v61 = vmul.f32 %v6538_v25, %v3733_v28 }
 0x2ab   : > { %v6574_v46 = vpop.f32.mrf.mxu1  ;;  %v2835_v28 = vadd.f32 %v2722_v59, %v6475_v40 }
 0x2ac   : > { %4622 = vpow2.f32 %v3878_v5  ;;  %v3874_v15 = vmul.f32 1.442695, %v3842_v20  ;;  %v3845_v41 = vsub.f32 0.0, %v6565_v33  ;;  %v6572_v35 = vadd.f32 %v6545_v30, %v3772_v61 }
 0x2ad   : > { %v6578_v24 = vpop.f32.mrf.mxu1 }
 0x2ae   : > { %4624 = vpow2.f32 %v3874_v15  ;;  %v3880_v42 = vmul.f32 1.442695, %v3845_v41  ;;  %v3843_v37 = vsub.f32 0.0, %v6572_v35  ;;  %v4451_v52 = vpop.f32.mrf.mxu0 }
 0x2af   : > { %v3738_v56 = vadd.f32 %v4451_v52, %v2836_v54 }
 0x2b0   : > { %4626 = vpow2.f32 %v3880_v42  ;;  %v3876_v48 = vmul.f32 1.442695, %v3843_v37  ;;  %v3621_v22 = vpop.f32.mrf.mxu0 }
 0x2b1   : > { %v3777_v26 = vmul.f32 %v6538_v25, %v3738_v56  ;;  %v3736_v50 = vadd.f32 %v3621_v22, %v2834_v18  ;;  %v6583_v6 = vpop.f32.mrf.mxu1 }
 0x2b2   : > { %4628 = vpow2.f32 %v3876_v48  ;;  %v4452_v43 = vpop.f32.mrf.mxu0 }
 0x2b3   : > { %v6586_v29 = vadd.f32 %v6545_v30, %v3777_v26  ;;  %v3775_v5 = vmul.f32 %v6538_v25, %v3736_v50  ;;  %v3739_v3 = vadd.f32 %v4452_v43, %v2837_v17  ;;  %v6590_v62 = vpop.f32.mrf.mxu1 }
 0x2b4   : > { %v3624_v20 = vpop.f32.mrf.mxu0 }
 0x2b5   : > { %v3848_v61 = vsub.f32 0.0, %v6586_v29  ;;  %v6594_v55 = vadd.f32 %v6545_v30, %v3775_v5  ;;  %v3778_v45 = vmul.f32 %v6538_v25, %v3739_v3  ;;  %v3737_v15 = vadd.f32 %v3624_v20, %v2835_v28  ;;  %v6597_v41 = vpop.f32.mrf.mxu1 }
 0x2b7   : > { %v3886_v54 = vmul.f32 1.442695, %v3848_v61  ;;  %v3846_v42 = vsub.f32 0.0, %v6594_v55  ;;  %v6601_v40 = vadd.f32 %v6545_v30, %v3778_v45  ;;  %v3776_v59 = vmul.f32 %v6538_v25, %v3737_v15  ;;  %v6604_v37 = vpop.f32.mrf.mxu1 }
 0x2b9   : > { %v4623_v52 = vpop.eup %4622  ;;  %4630 = vpow2.f32 %v3886_v54  ;;  %v3882_v48 = vmul.f32 1.442695, %v3846_v42  ;;  %v3849_v56 = vsub.f32 0.0, %v6601_v40  ;;  %v6607_v22 = vpop.f32.mrf.mxu1  ;;  %v6610_v26 = vadd.f32 %v6545_v30, %v3776_v59 }
 0x2ba   : > { %v3940_v18 = vadd.f32 1.0, %v4623_v52  ;;  %v2840_v42 = vadd.f32 %v6525_v34, %v6477_v11 }
 0x2bb   : > { %v4625_v17 = vpop.eup %4624  ;;  %v3888_v43 = vmul.f32 1.442695, %v3849_v56  ;;  %v6612_v28 = vpop.f32.mrf.mxu1  ;;  %v3847_v3 = vsub.f32 0.0, %v6610_v26 }
 0x2bc   : > { %4632 = vrcp.f32 %v3940_v18  ;;  %v3938_v50 = vadd.f32 1.0, %v4625_v17  ;;  %v2838_v18 = vadd.f32 %v6527_v8, %v6479_v9  ;;  %v2841_v17 = vadd.f32 %v6533_v27, %v6481_v38 }
 0x2bd   : > { %v4627_v5 = vpop.eup %4626  ;;  %4634 = vpow2.f32 %v3882_v48  ;;  %v3884_v45 = vmul.f32 1.442695, %v3847_v3  ;;  %v6615_v15 = vpop.f32.mrf.mxu1  ;;  %v2839_v38 = vadd.f32 %v6550_v7, %v6483_v49  ;;  %v2844_v27 = vadd.f32 %v6561_v1, %v6485_v4 }
 0x2be   : > { %4636 = vrcp.f32 %v3938_v50  ;;  %v3941_v20 = vadd.f32 1.0, %v4627_v5 }
 0x2bf   : > { %v4629_v61 = vpop.eup %4628  ;;  %4638 = vpow2.f32 %v3888_v43  ;;  %v6619_v52 = vpop.f32.mrf.mxu1 }
 0x2c0   : > { %4640 = vrcp.f32 %v3941_v20  ;;  %v3939_v54 = vadd.f32 1.0, %v4629_v61 }
 0x2c1   : > { %4642 = vpow2.f32 %v3884_v45  ;;  %v6626_v20 = vpop.f32.mrf.mxu1  ;;  %v2842_v45 = vadd.f32 %v6568_v47, %v6487_v60  ;;  %v2843_v47 = vadd.f32 %v6578_v24, %v6491_v32 }
 0x2c2   : > { %4644 = vrcp.f32 %v3939_v54 }
 0x2c6   : > { %v4455_v59 = vpop.f32.mrf.mxu0  ;;  %v4631_v5 = vpop.eup %4630 }
 0x2c7   : > { %v3742_v48 = vadd.f32 %v4455_v59, %v2840_v42  ;;  %v3944_v11 = vadd.f32 1.0, %v4631_v5  ;;  %v2845_v42 = vadd.f32 %v6574_v46, %v6489_v36  ;;  %v6655_v36 = vpop.f32.mrf.mxu1 }
 0x2c8   : > { %v3637_v56 = vpop.f32.mrf.mxu0 }
 0x2c9   : > { %v3781_v50 = vmul.f32 %v6538_v25, %v3742_v48  ;;  %v3740_v43 = vadd.f32 %v3637_v56, %v2838_v18  ;;  %v4633_v8 = vpop.eup %4632  ;;  %4646 = vrcp.f32 %v3944_v11 }
 0x2ca   : > { %v4456_v3 = vpop.f32.mrf.mxu0  ;;  %v4635_v59 = vpop.eup %4634  ;;  %v4004_v18 = vmul.f32 %v4633_v8, %v6553_v0 }
 0x2cb   : > { %v6629_v34 = vadd.f32 %v6545_v30, %v3781_v50  ;;  %v3779_v61 = vmul.f32 %v6538_v25, %v3740_v43  ;;  %v3743_v9 = vadd.f32 %v4456_v3, %v2841_v17  ;;  %v4637_v49 = vpop.eup %4636  ;;  %v3942_v7 = vadd.f32 1.0, %v4635_v59 }
 0x2cc   : > { %v3640_v54 = vpop.f32.mrf.mxu0  ;;  %v4639_v46 = vpop.eup %4638  ;;  %4037 = vst.msk [vmem:[%s6637_s9 + $0x10] sm:$0xff] %vm4034_vm5, %v4004_v18  ;;  %v4002_v0 = vmul.f32 %v4637_v49, %v6558_v14 }
 0x2cd   : > { %v3852_v48 = vsub.f32 0.0, %v6629_v34  ;;  %v6650_v56 = vadd.f32 %v6545_v30, %v3779_v61  ;;  %v3782_v4 = vmul.f32 %v6538_v25, %v3743_v9  ;;  %v3741_v1 = vadd.f32 %v3640_v54, %v2839_v38  ;;  %v4641_v5 = vpop.eup %4640 }
 0x2ce   : > { %4648 = vrcp.f32 %v3942_v7  ;;  %v3945_v3 = vadd.f32 1.0, %v4639_v46  ;;  %v4643_v61 = vpop.eup %4642  ;;  %4035 = vst.msk [vmem:[%s6637_s9] sm:$0xff] %vm4034_vm5, %v4002_v0  ;;  %v4005_v9 = vmul.f32 %v4641_v5, %v6565_v33 }
 0x2cf   : > { %v4459_v60 = vpop.f32.mrf.mxu0  ;;  %v3894_v17 = vmul.f32 1.442695, %v3852_v48  ;;  %v3850_v50 = vsub.f32 0.0, %v6650_v56  ;;  %v6662_v11 = vadd.f32 %v6545_v30, %v3782_v4  ;;  %v3780_v32 = vmul.f32 %v6538_v25, %v3741_v1  ;;  %v4645_v38 = vpop.eup %4644 }
 0x2d0   : > { %v3746_v43 = vadd.f32 %v4459_v60, %v2844_v27  ;;  %v3943_v27 = vadd.f32 1.0, %v4643_v61  ;;  %v4438_v48 = vpop.f32.mrf.mxu1  ;;  %4038 = vst.msk [vmem:[%s6637_s9 + $0x18] sm:$0xff] %vm4034_vm5, %v4005_v9  ;;  %v4003_v49 = vmul.f32 %v4645_v38, %v6572_v35  ;;  %v2849_v61 = vadd.f32 %v6597_v41, %v6497_v21 }
 0x2d1   : > { %v3653_v24 = vpop.f32.mrf.mxu0  ;;  %4650 = vpow2.f32 %v3894_v17  ;;  %v3890_v14 = vmul.f32 1.442695, %v3850_v50  ;;  %v3853_v54 = vsub.f32 0.0, %v6662_v11  ;;  %v6671_v59 = vadd.f32 %v6545_v30, %v3780_v32 }
 0x2d2   : > { %v3785_v8 = vmul.f32 %v6538_v25, %v3746_v43  ;;  %4652 = vrcp.f32 %v3945_v3  ;;  %v3744_v7 = vadd.f32 %v3653_v24, %v2842_v45  ;;  %4036 = vst.msk [vmem:[%s6637_s9 + $0x8] sm:$0xff] %vm4034_vm5, %v4003_v49  ;;  %v2848_v43 = vadd.f32 %v6583_v6, %v6493_v16  ;;  %v2802_v5 = vpop.f32.mrf.mxu1 }
 0x2d3   : > { %v4460_v18 = vpop.f32.mrf.mxu0  ;;  %4654 = vpow2.f32 %v3890_v14  ;;  %v3896_v4 = vmul.f32 1.442695, %v3853_v54  ;;  %v3851_v1 = vsub.f32 0.0, %v6671_v59  ;;  %v2847_v16 = vadd.f32 %v6604_v37, %v6499_v39 }
 0x2d4   : > { %v6677_v33 = vadd.f32 %v6545_v30, %v3785_v8  ;;  %4656 = vrcp.f32 %v3943_v27  ;;  %v3747_v60 = vadd.f32 %v4460_v18, %v2845_v42  ;;  %v3783_v17 = vmul.f32 %v6538_v25, %v3744_v7  ;;  %v4441_v41 = vpop.f32.mrf.mxu1 }
 0x2d5   : > { %v3656_v46 = vpop.f32.mrf.mxu0  ;;  %4658 = vpow2.f32 %v3896_v4  ;;  %v3892_v35 = vmul.f32 1.442695, %v3851_v1  ;;  %v2846_v42 = vadd.f32 %v6590_v62, %v6495_v10  ;;  %v2852_v10 = vadd.f32 %v6607_v22, %v6501_v58 }
 0x2d6   : > { %v3856_v0 = vsub.f32 0.0, %v6677_v33  ;;  %v3745_v50 = vadd.f32 %v3656_v46, %v2843_v47  ;;  %v3786_v45 = vmul.f32 %v6538_v25, %v3747_v60  ;;  %v6688_v32 = vadd.f32 %v6545_v30, %v3783_v17  ;;  %v4647_v62 = vpop.eup %4646  ;;  %v2815_v1 = vpop.f32.mrf.mxu1 }
 0x2d7   : > { %4660 = vpow2.f32 %v3892_v35  ;;  %v6709_v21 = vadd.f32 %v6612_v28, %v6503_v31  ;;  %v6713_v39 = vadd.f32 %v6615_v15, %v6505_v44  ;;  %v4008_v37 = vmul.f32 %v4647_v62, %v6586_v29 }
 0x2d8   : > { %v3902_v3 = vmul.f32 1.442695, %v3856_v0  ;;  %v3784_v24 = vmul.f32 %v6538_v25, %v3745_v50  ;;  %v6694_v47 = vadd.f32 %v6545_v30, %v3786_v45  ;;  %v3854_v6 = vsub.f32 0.0, %v6688_v32  ;;  %v4463_v14 = vpop.f32.mrf.mxu0 }
 0x2d9   : > { %v3750_v38 = vadd.f32 %v4463_v14, %v2848_v43  ;;  %v6719_v22 = vadd.f32 %v6619_v52, %v6507_v2  ;;  %v6724_v28 = vadd.f32 %v6626_v20, %v6509_v23  ;;  %4041 = vst.msk [vmem:[%s6637_s9 + $0x30] sm:$0xff] %vm4034_vm5, %v4008_v37  ;;  %v6730_v7 = vadd.f32 %v6655_v36, %v6511_v51 }
 0x2da   : > { %4662 = vpow2.f32 %v3902_v3  ;;  %v6702_v9 = vadd.f32 %v6545_v30, %v3784_v24  ;;  %v3857_v8 = vsub.f32 0.0, %v6694_v47  ;;  %v3898_v27 = vmul.f32 1.442695, %v3854_v6  ;;  %v3669_v58 = vpop.f32.mrf.mxu0 }
 0x2db   : > { %v3789_v49 = vmul.f32 %v6538_v25, %v3750_v38  ;;  %v3748_v31 = vadd.f32 %v3669_v58, %v2846_v42  ;;  %v4649_v44 = vpop.eup %4648  ;;  %v6733_v2 = vadd.f32 %v4438_v48, %v6513_v57  ;;  %v6741_v36 = vadd.f32 %v2802_v5, %v6515_v53 }
 0x2dc   : > { %v3855_v54 = vsub.f32 0.0, %v6702_v9  ;;  %v3904_v18 = vmul.f32 1.442695, %v3857_v8  ;;  %4664 = vpow2.f32 %v3898_v27  ;;  %v4464_v15 = vpop.f32.mrf.mxu0  ;;  %v4006_v4 = vmul.f32 %v4649_v44, %v6594_v55 }
 0x2dd   : > { %v6737_v23 = vadd.f32 %v6545_v30, %v3789_v49  ;;  %v3787_v20 = vmul.f32 %v6538_v25, %v3748_v31  ;;  %v3751_v0 = vadd.f32 %v4464_v15, %v2849_v61  ;;  %v6752_v53 = vadd.f32 %v4441_v41, %v6517_v13  ;;  %v4442_v61 = vpop.f32.mrf.mxu1 }
 0x2de   : > { %v3900_v29 = vmul.f32 1.442695, %v3855_v54  ;;  %v4651_v52 = vpop.eup %4650  ;;  %4666 = vpow2.f32 %v3904_v18  ;;  %v3672_v51 = vpop.f32.mrf.mxu0  ;;  %4039 = vst.msk [vmem:[%s6637_s9 + $0x20] sm:$0xff] %vm4034_vm5, %v4006_v4  ;;  %v6763_v13 = vadd.f32 %v2815_v1, %v6519_v63  ;;  %v6774_v58 = vadd.f32 %v4442_v61, %v6521_v19 }
 0x2df   : > { %v4653_v60 = vpop.eup %4652  ;;  %v3948_v46 = vadd.f32 1.0, %v4651_v52  ;;  %v3860_v48 = vsub.f32 0.0, %v6737_v23  ;;  %v6748_v17 = vadd.f32 %v6545_v30, %v3787_v20  ;;  %v3749_v50 = vadd.f32 %v3672_v51, %v2847_v16  ;;  %v2818_v44 = vpop.f32.mrf.mxu1 }
 0x2e0   : > { %4668 = vpow2.f32 %v3900_v29  ;;  %v4655_v57 = vpop.eup %4654  ;;  %v4009_v55 = vmul.f32 %v4653_v60, %v6601_v40  ;;  %v3790_v45 = vmul.f32 %v6538_v25, %v3751_v0  ;;  %v4467_v3 = vpop.f32.mrf.mxu0 }
 0x2e1   : > { %v4657_v35 = vpop.eup %4656  ;;  %4670 = vrcp.f32 %v3948_v46  ;;  %v3946_v43 = vadd.f32 1.0, %v4655_v57  ;;  %v3910_v5 = vmul.f32 1.442695, %v3860_v48  ;;  %v3858_v42 = vsub.f32 0.0, %v6748_v17 }
 0x2e2   : > { %4042 = vst.msk [vmem:[%s6637_s9 + $0x38] sm:$0xff] %vm4034_vm5, %v4009_v55  ;;  %v4007_v40 = vmul.f32 %v4657_v35, %v6610_v26  ;;  %v3788_v24 = vmul.f32 %v6538_v25, %v3749_v50  ;;  %v4659_v16 = vpop.eup %4658  ;;  %v6760_v6 = vadd.f32 %v6545_v30, %v3790_v45  ;;  %v3754_v14 = vadd.f32 %v4467_v3, %v2852_v10  ;;  %v3685_v62 = vpop.f32.mrf.mxu0 }
 0x2e3   : > { %4672 = vrcp.f32 %v3946_v43  ;;  %v3949_v8 = vadd.f32 1.0, %v4659_v16  ;;  %v3906_v26 = vmul.f32 1.442695, %v3858_v42  ;;  %v3752_v54 = vadd.f32 %v3685_v62, %v6709_v21 }
 0x2e4   : > { %4040 = vst.msk [vmem:[%s6637_s9 + $0x28] sm:$0xff] %vm4034_vm5, %v4007_v40  ;;  %4674 = vpow2.f32 %v3910_v5  ;;  %v6768_v38 = vadd.f32 %v6545_v30, %v3788_v24  ;;  %v4661_v41 = vpop.eup %4660  ;;  %v3861_v37 = vsub.f32 0.0, %v6760_v6  ;;  %v3793_v27 = vmul.f32 %v6538_v25, %v3754_v14  ;;  %v4468_v10 = vpop.f32.mrf.mxu0 }
 0x2e5   : > { %4676 = vrcp.f32 %v3949_v8  ;;  %v3947_v18 = vadd.f32 1.0, %v4661_v41  ;;  %v3755_v31 = vadd.f32 %v4468_v10, %v6713_v39  ;;  %v3791_v19 = vmul.f32 %v6538_v25, %v3752_v54 }
 0x2e6   : > { %v3859_v49 = vsub.f32 0.0, %v6768_v38  ;;  %4678 = vpow2.f32 %v3906_v26  ;;  %v3912_v15 = vmul.f32 1.442695, %v3861_v37  ;;  %v6779_v52 = vadd.f32 %v6545_v30, %v3793_v27  ;;  %v3688_v4 = vpop.f32.mrf.mxu0 }
 0x2e7   : > { %v4663_v63 = vpop.eup %4662  ;;  %4680 = vrcp.f32 %v3947_v18  ;;  %v3794_v20 = vmul.f32 %v6538_v25, %v3755_v31  ;;  %v3753_v60 = vadd.f32 %v3688_v4, %v6719_v22  ;;  %v6786_v46 = vadd.f32 %v2818_v44, %v6523_v12 }
 0x2e8   : > { %v3952_v29 = vadd.f32 1.0, %v4663_v63  ;;  %v3908_v21 = vmul.f32 1.442695, %v3859_v49  ;;  %v3864_v1 = vsub.f32 0.0, %v6779_v52  ;;  %v4471_v39 = vpop.f32.mrf.mxu0  ;;  %v6789_v51 = vadd.f32 %v6545_v30, %v3791_v19 }
 0x2e9   : > { %v4665_v0 = vpop.eup %4664  ;;  %v6792_v57 = vadd.f32 %v6545_v30, %v3794_v20  ;;  %v3758_v55 = vadd.f32 %v4471_v39, %v6724_v28  ;;  %v3792_v22 = vmul.f32 %v6538_v25, %v3753_v60 }
 0x2ea   : > { %4682 = vrcp.f32 %v3952_v29  ;;  %v3950_v50 = vadd.f32 1.0, %v4665_v0  ;;  %v3918_v35 = vmul.f32 1.442695, %v3864_v1  ;;  %v3701_v43 = vpop.f32.mrf.mxu0  ;;  %v3862_v3 = vsub.f32 0.0, %v6789_v51 }
 0x2eb   : > { %4684 = vpow2.f32 %v3912_v15  ;;  %v4667_v48 = vpop.eup %4666  ;;  %v3865_v40 = vsub.f32 0.0, %v6792_v57  ;;  %v3797_v5 = vmul.f32 %v6538_v25, %v3758_v55  ;;  %v6800_v24 = vadd.f32 %v6545_v30, %v3792_v22 }
 0x2ec   : > { %4686 = vpow2.f32 %v3908_v21  ;;  %v3953_v12 = vadd.f32 1.0, %v4667_v48  ;;  %v3756_v28 = vadd.f32 %v3701_v43, %v6730_v7  ;;  %v4472_v61 = vpop.f32.mrf.mxu0  ;;  %v3914_v14 = vmul.f32 1.442695, %v3862_v3 }
 0x2ed   : > { %v4669_v45 = vpop.eup %4668  ;;  %4688 = vrcp.f32 %v3950_v50  ;;  %v3920_v62 = vmul.f32 1.442695, %v3865_v40  ;;  %v6804_v8 = vadd.f32 %v6545_v30, %v3797_v5  ;;  %v3863_v41 = vsub.f32 0.0, %v6800_v24 }
 0x2ee   : > { %v3951_v42 = vadd.f32 1.0, %v4669_v45  ;;  %v4671_v16 = vpop.eup %4670  ;;  %4690 = vrcp.f32 %v3953_v12  ;;  %v3795_v37 = vmul.f32 %v6538_v25, %v3756_v28  ;;  %v3704_v27 = vpop.f32.mrf.mxu0  ;;  %v3759_v10 = vadd.f32 %v4472_v61, %v6733_v2 }
 0x2ef   : > { %v4012_v26 = vmul.f32 %v4671_v16, %v6629_v34  ;;  %v3868_v7 = vsub.f32 0.0, %v6804_v8  ;;  %v3757_v63 = vadd.f32 %v3704_v27, %v6741_v36  ;;  %v3916_v49 = vmul.f32 1.442695, %v3863_v41 }
 0x2f0   : > { %4692 = vrcp.f32 %v3951_v42  ;;  %v4673_v54 = vpop.eup %4672  ;;  %v6816_v31 = vadd.f32 %v6545_v30, %v3795_v37  ;;  %v4475_v44 = vpop.f32.mrf.mxu0  ;;  %v3798_v4 = vmul.f32 %v6538_v25, %v3759_v10 }
 0x2f1   : > { %4694 = vpow2.f32 %v3918_v35  ;;  %v4675_v18 = vpop.eup %4674  ;;  %4045 = vst.msk [vmem:[%s6637_s9 + $0x50] sm:$0xff] %vm4034_vm5, %v4012_v26  ;;  %v4010_v34 = vmul.f32 %v4673_v54, %v6650_v56  ;;  %v3926_v15 = vmul.f32 1.442695, %v3868_v7  ;;  %v3796_v56 = vmul.f32 %v6538_v25, %v3757_v63 }
 0x2f2   : > { %4696 = vpow2.f32 %v3914_v14  ;;  %v3956_v29 = vadd.f32 1.0, %v4675_v18  ;;  %v4677_v21 = vpop.eup %4676  ;;  %v3866_v2 = vsub.f32 0.0, %v6816_v31  ;;  %v3762_v36 = vadd.f32 %v4475_v44, %v6752_v53  ;;  %v3717_v19 = vpop.f32.mrf.mxu0 }
 0x2f3   : > { %4698 = vpow2.f32 %v3920_v62  ;;  %4043 = vst.msk [vmem:[%s6637_s9 + $0x40] sm:$0xff] %vm4034_vm5, %v4010_v34  ;;  %v4679_v20 = vpop.eup %4678  ;;  %v4013_v1 = vmul.f32 %v4677_v21, %v6662_v11  ;;  %v6826_v60 = vadd.f32 %v6545_v30, %v3798_v4  ;;  %v3760_v39 = vadd.f32 %v3717_v19, %v6763_v13 }
 0x2f4   : > { %4700 = vpow2.f32 %v3916_v49  ;;  %v4681_v0 = vpop.eup %4680  ;;  %v3954_v55 = vadd.f32 1.0, %v4679_v20  ;;  %v3922_v48 = vmul.f32 1.442695, %v3866_v2  ;;  %v6830_v50 = vadd.f32 %v6545_v30, %v3796_v56  ;;  %v4476_v35 = vpop.f32.mrf.mxu0 }
 0x2f5   : > { %4702 = vrcp.f32 %v3956_v29  ;;  %4046 = vst.msk [vmem:[%s6637_s9 + $0x58] sm:$0xff] %vm4034_vm5, %v4013_v1  ;;  %v4011_v11 = vmul.f32 %v4681_v0, %v6671_v59  ;;  %v3869_v22 = vsub.f32 0.0, %v6826_v60  ;;  %v3801_v43 = vmul.f32 %v6538_v25, %v3762_v36 }
 0x2f6   : > { %4704 = vpow2.f32 %v3926_v15  ;;  %v3799_v13 = vmul.f32 %v6538_v25, %v3760_v39  ;;  %v3867_v3 = vsub.f32 0.0, %v6830_v50  ;;  %v3763_v40 = vadd.f32 %v4476_v35, %v6774_v58  ;;  %v3720_v5 = vpop.f32.mrf.mxu0 }
 0x2f7   : > { %v4683_v53 = vpop.eup %4682  ;;  %4706 = vrcp.f32 %v3954_v55  ;;  %4044 = vst.msk [vmem:[%s6637_s9 + $0x48] sm:$0xff] %vm4034_vm5, %v4011_v11  ;;  %v3928_v28 = vmul.f32 1.442695, %v3869_v22  ;;  %v6844_v61 = vadd.f32 %v6545_v30, %v3801_v43  ;;  %v3761_v41 = vadd.f32 %v3720_v5, %v6786_v46 }
 0x2f8   : > { %v4685_v45 = vpop.eup %4684  ;;  %v4016_v12 = vmul.f32 %v4683_v53, %v6677_v33  ;;  %4708 = vpow2.f32 %v3922_v48  ;;  %v3924_v14 = vmul.f32 1.442695, %v3867_v3  ;;  %v6849_v33 = vadd.f32 %v6545_v30, %v3799_v13 }
 0x2f9   : > { %v4687_v42 = vpop.eup %4686  ;;  %v3957_v59 = vadd.f32 1.0, %v4685_v45  ;;  %v3802_v62 = vmul.f32 %v6538_v25, %v3763_v40  ;;  %v3872_v26 = vsub.f32 0.0, %v6844_v61  ;;  %v3800_v34 = vmul.f32 %v6538_v25, %v3761_v41 }
 0x2fa   : > { %4049 = vst.msk [vmem:[%s6637_s9 + $0x70] sm:$0xff] %vm4034_vm5, %v4016_v12  ;;  %v3955_v16 = vadd.f32 1.0, %v4687_v42  ;;  %v4689_v58 = vpop.eup %4688  ;;  %v3870_v54 = vsub.f32 0.0, %v6849_v33 }
 0x2fb   : > { %4710 = vrcp.f32 %v3957_v59  ;;  %v4691_v37 = vpop.eup %4690  ;;  %v4014_v27 = vmul.f32 %v4689_v58, %v6688_v32  ;;  %v6857_v7 = vadd.f32 %v6545_v30, %v3802_v62  ;;  %v3934_v18 = vmul.f32 1.442695, %v3872_v26 }
 0x2fc   : > { %4712 = vrcp.f32 %v3955_v16  ;;  %v4017_v63 = vmul.f32 %v4691_v37, %v6694_v47  ;;  %v3930_v46 = vmul.f32 1.442695, %v3870_v54  ;;  %v6868_v47 = vadd.f32 %v6545_v30, %v3800_v34 }
 0x2fd   : > { %v4693_v10 = vpop.eup %4692  ;;  %4714 = vpow2.f32 %v3928_v28  ;;  %4047 = vst.msk [vmem:[%s6637_s9 + $0x60] sm:$0xff] %vm4034_vm5, %v4014_v27  ;;  %v3873_v44 = vsub.f32 0.0, %v6857_v7 }
 0x2fe   : > { %v4695_v49 = vpop.eup %4694  ;;  %v4015_v32 = vmul.f32 %v4693_v10, %v6702_v9  ;;  %4716 = vpow2.f32 %v3924_v14  ;;  %4050 = vst.msk [vmem:[%s6637_s9 + $0x78] sm:$0xff] %vm4034_vm5, %v4017_v63  ;;  %v3871_v56 = vsub.f32 0.0, %v6868_v47 }
 0x2ff   : > { %v4697_v29 = vpop.eup %4696  ;;  %v3960_v15 = vadd.f32 1.0, %v4695_v49  ;;  %4718 = vpow2.f32 %v3934_v18  ;;  %v3936_v2 = vmul.f32 1.442695, %v3873_v44 }
 0x300   : > { %v4699_v4 = vpop.eup %4698  ;;  %4048 = vst.msk [vmem:[%s6637_s9 + $0x68] sm:$0xff] %vm4034_vm5, %v4015_v32  ;;  %v3958_v25 = vadd.f32 1.0, %v4697_v29  ;;  %4720 = vpow2.f32 %v3930_v46  ;;  %v3932_v1 = vmul.f32 1.442695, %v3871_v56 }
 0x301   : > { %v4701_v21 = vpop.eup %4700  ;;  %4722 = vrcp.f32 %v3960_v15  ;;  %v3961_v9 = vadd.f32 1.0, %v4699_v4 }
 0x302   : > { %v4703_v36 = vpop.eup %4702  ;;  %4724 = vrcp.f32 %v3958_v25  ;;  %v3959_v19 = vadd.f32 1.0, %v4701_v21 }
 0x303   : > { %v4705_v20 = vpop.eup %4704  ;;  %v4020_v30 = vmul.f32 %v4703_v36, %v6737_v23  ;;  %4726 = vrcp.f32 %v3961_v9 }
 0x304   : > { %4728 = vrcp.f32 %v3959_v19  ;;  %v3964_v39 = vadd.f32 1.0, %v4705_v20  ;;  %v4707_v0 = vpop.eup %4706 }
 0x305   : > { %4053 = vst.msk [vmem:[%s6637_s9 + $0x90] sm:$0xff] %vm4034_vm5, %v4020_v30  ;;  %4730 = vpow2.f32 %v3936_v2  ;;  %v4709_v55 = vpop.eup %4708  ;;  %v4018_v48 = vmul.f32 %v4707_v0, %v6748_v17 }
 0x306   : > { %4732 = vrcp.f32 %v3964_v39  ;;  %v3962_v35 = vadd.f32 1.0, %v4709_v55 }
 0x307   : > { %4734 = vpow2.f32 %v3932_v1  ;;  %4051 = vst.msk [vmem:[%s6637_s9 + $0x80] sm:$0xff] %vm4034_vm5, %v4018_v48 }
 0x308   : > { %v4711_v53 = vpop.eup %4710  ;;  %4736 = vrcp.f32 %v3962_v35 }
 0x309   : > { %v4713_v23 = vpop.eup %4712  ;;  %v4021_v11 = vmul.f32 %v4711_v53, %v6760_v6 }
 0x30a   : > { %v4715_v22 = vpop.eup %4714  ;;  %v4019_v43 = vmul.f32 %v4713_v23, %v6768_v38 }
 0x30b   : > { %v4717_v13 = vpop.eup %4716  ;;  %4054 = vst.msk [vmem:[%s6637_s9 + $0x98] sm:$0xff] %vm4034_vm5, %v4021_v11  ;;  %v3965_v45 = vadd.f32 1.0, %v4715_v22 }
 0x30c   : > { %v4719_v12 = vpop.eup %4718  ;;  %4052 = vst.msk [vmem:[%s6637_s9 + $0x88] sm:$0xff] %vm4034_vm5, %v4019_v43  ;;  %v3963_v17 = vadd.f32 1.0, %v4717_v13 }
 0x30d   : > { %v4721_v3 = vpop.eup %4720  ;;  %4738 = vrcp.f32 %v3965_v45  ;;  %v3968_v40 = vadd.f32 1.0, %v4719_v12 }
 0x30e   : > { %v4723_v5 = vpop.eup %4722  ;;  %4740 = vrcp.f32 %v3963_v17  ;;  %v3966_v6 = vadd.f32 1.0, %v4721_v3 }
 0x30f   : > { %v4725_v42 = vpop.eup %4724  ;;  %v4024_v38 = vmul.f32 %v4723_v5, %v6779_v52  ;;  %4742 = vrcp.f32 %v3968_v40 }
 0x310   : > { %v4727_v59 = vpop.eup %4726  ;;  %v4022_v28 = vmul.f32 %v4725_v42, %v6789_v51  ;;  %4744 = vrcp.f32 %v3966_v6 }
 0x311   : > { %v4729_v16 = vpop.eup %4728  ;;  %4057 = vst.msk [vmem:[%s6637_s9 + $0xb0] sm:$0xff] %vm4034_vm5, %v4024_v38  ;;  %v4025_v14 = vmul.f32 %v4727_v59, %v6792_v57 }
 0x312   : > { %v4731_v62 = vpop.eup %4730  ;;  %4055 = vst.msk [vmem:[%s6637_s9 + $0xa0] sm:$0xff] %vm4034_vm5, %v4022_v28  ;;  %v4023_v58 = vmul.f32 %v4729_v16, %v6800_v24 }
 0x313   : > { %v4733_v26 = vpop.eup %4732  ;;  %4058 = vst.msk [vmem:[%s6637_s9 + $0xb8] sm:$0xff] %vm4034_vm5, %v4025_v14  ;;  %v3969_v52 = vadd.f32 1.0, %v4731_v62 }
 0x314   : > { %v4735_v41 = vpop.eup %4734  ;;  %4056 = vst.msk [vmem:[%s6637_s9 + $0xa8] sm:$0xff] %vm4034_vm5, %v4023_v58  ;;  %v4028_v51 = vmul.f32 %v4733_v26, %v6804_v8 }
 0x315   : > { %4746 = vrcp.f32 %v3969_v52  ;;  %v3967_v37 = vadd.f32 1.0, %v4735_v41  ;;  %v4737_v57 = vpop.eup %4736 }
 0x316   : > { %4061 = vst.msk [vmem:[%s6637_s9 + $0xd0] sm:$0xff] %vm4034_vm5, %v4028_v51  ;;  %v4026_v24 = vmul.f32 %v4737_v57, %v6816_v31 }
 0x317   : > { %4748 = vrcp.f32 %v3967_v37 }
 0x318   : > { %4059 = vst.msk [vmem:[%s6637_s9 + $0xc0] sm:$0xff] %vm4034_vm5, %v4026_v24 }
 0x31a   : > { %v4739_v27 = vpop.eup %4738 }
 0x31b   : > { %v4741_v54 = vpop.eup %4740  ;;  %v4029_v10 = vmul.f32 %v4739_v27, %v6826_v60 }
 0x31c   : > { %v4743_v8 = vpop.eup %4742  ;;  %v4027_v63 = vmul.f32 %v4741_v54, %v6830_v50 }
 0x31d   : > { %v4745_v18 = vpop.eup %4744  ;;  %4062 = vst.msk [vmem:[%s6637_s9 + $0xd8] sm:$0xff] %vm4034_vm5, %v4029_v10  ;;  %v4032_v34 = vmul.f32 %v4743_v8, %v6844_v61 }
 0x31e   : > { %4060 = vst.msk [vmem:[%s6637_s9 + $0xc8] sm:$0xff] %vm4034_vm5, %v4027_v63  ;;  %v4030_v31 = vmul.f32 %v4745_v18, %v6849_v33 }
 0x31f   : > { %4065 = vst.msk [vmem:[%s6637_s9 + $0xf0] sm:$0xff] %vm4034_vm5, %v4032_v34 }
 0x320   : > { %4063 = vst.msk [vmem:[%s6637_s9 + $0xe0] sm:$0xff] %vm4034_vm5, %v4030_v31 }
 0x322   : > { %v4747_v49 = vpop.eup %4746 }
 0x323   : > { %v4033_v32 = vmul.f32 %v4747_v49, %v6857_v7 }
 0x324   : > { %v4749_v60 = vpop.eup %4748 }
 0x325   : > { %4066 = vst.msk [vmem:[%s6637_s9 + $0xf8] sm:$0xff] %vm4034_vm5, %v4033_v32  ;;  %v4031_v50 = vmul.f32 %v4749_v60, %v6868_v47 }
 0x327   : > { %4064 = vst.msk [vmem:[%s6637_s9 + $0xe8] sm:$0xff] %vm4034_vm5, %v4031_v50 }
 0x328 PF: > { %s17_s24 = sadd.s32 1, %s4759_s24  }
 0x329   : > { %p14_p4 = scmp.ge.s32.totalorder %s17_s24, 4  }
 0x32b   :  { %16 = sbr.rel (!%p14_p4) target bundleno = 1 (0x1), region = 86 }

</bundles_post_ra>
